<compile_context>
chip_gen: v7x
topology: tpu7x:2x2x1
jax: 0.10.0
libtpu: 0.0.40
codegen_flags: <defaults>
</compile_context>

<pallas_src>
import math

import jax
import jax.numpy as jnp
from jax.experimental import pallas as pl
from jax.experimental.pallas import tpu as pltpu


# ----------------------------- Pallas kernel ------------------------------ #
def vsa_kernel(lf_ref, hf_ref, solo_ref,
               w_lf_ref, b_lf_ref, w_hf_ref, b_hf_ref,
               wq_ref, bq_ref, wk_ref, bk_ref, wv_ref, bv_ref,
               out_ref, *, eps=1e-8):
    # Per grid step (one batch element):
    #   lf_ref   : (HW, Kpad) bf16   2x2/stride-2 patches of lower_feature
    #   hf_ref   : (HW, Ch)   bf16   higher_feature, channels-last
    #   solo_ref : (1,  D)    f32
    #   weights  : bf16 matmul layouts; biases f32 (1, N) rows
    #   out_ref  : (1,  D)    f32
    f32 = jnp.float32
    bf16 = jnp.bfloat16

    # LF_conv / HF_conv as channels-last matmuls: bf16 operands, f32 accumulate.
    lf = jnp.dot(lf_ref[...], w_lf_ref[...],
                 preferred_element_type=f32) + b_lf_ref[...]          # (HW, Cs)
    hf = jnp.dot(hf_ref[...], w_hf_ref[...],
                 preferred_element_type=f32) + b_hf_ref[...]          # (HW, Cs)

    # torch.cat([lower, higher], dim=1) + higher.mean(dim=1, keepdim=True)
    concat = jnp.concatenate([lf, hf], axis=-1)                       # (HW, D)
    concat = concat + jnp.mean(hf, axis=-1, keepdims=True)

    d = wq_ref.shape[1]
    x_bf = concat.astype(bf16)

    # concat_attention (assumed single-head SDPA + residual over HW positions).
    q = jnp.dot(x_bf, wq_ref[...], preferred_element_type=f32) + bq_ref[...]
    k = jnp.dot(x_bf, wk_ref[...], preferred_element_type=f32) + bk_ref[...]
    v = jnp.dot(x_bf, wv_ref[...], preferred_element_type=f32) + bv_ref[...]

    scale = 1.0 / math.sqrt(d)
    s = jax.lax.dot_general(                                          # q @ k.T
        q.astype(bf16), k.astype(bf16),
        dimension_numbers=(((1,), (1,)), ((), ())),
        preferred_element_type=f32) * scale                           # (HW, HW)

    # Softmax in f32; denominator through the EUP approx reciprocal.
    s = s - jnp.max(s, axis=-1, keepdims=True)
    p = jnp.exp(s)
    p = p * pl.reciprocal(jnp.sum(p, axis=-1, keepdims=True), approx=True)

    attn = jnp.dot(p.astype(bf16), v.astype(bf16),
                   preferred_element_type=f32)                        # (HW, D)
    attent = concat + attn

    # F.adaptive_avg_pool2d(., 1).squeeze == mean over HW; fused gate + l2norm.
    pooled = jnp.mean(attent, axis=0, keepdims=True)                  # (1, D)
    solo = solo_ref[...] * jax.nn.sigmoid(pooled)
    norm = jnp.sqrt(jnp.sum(solo * solo, axis=-1, keepdims=True)) + eps
    out_ref[...] = solo * pl.reciprocal(norm, approx=True)            # (1, D)


# ------------------- one-time parameter preparation ----------------------- #
def prepare_params(p):
    """Convert PyTorch-layout weights to matmul/bf16 layout. Run once, not per step."""
    cs, cl = p["w_lf_oihw"].shape[0], p["w_lf_oihw"].shape[1]
    k = 4 * cl
    kpad = ((k + 127) // 128) * 128                                   # 960 -> 1024
    w_lf = jnp.transpose(p["w_lf_oihw"], (2, 3, 1, 0)).reshape(k, cs)
    w_lf = jnp.pad(w_lf, ((0, kpad - k), (0, 0)))                     # zero-pad K
    w_hf = p["w_hf_oihw"][:, :, 0, 0].T                               # (Ch, Cs)
    bf16 = jnp.bfloat16
    row = lambda v: v.reshape(1, -1).astype(jnp.float32)
    return (w_lf.astype(bf16), row(p["b_lf"]),
            w_hf.astype(bf16), row(p["b_hf"]),
            p["wq"].astype(bf16), row(p["bq"]),
            p["wk"].astype(bf16), row(p["bk"]),
            p["wv"].astype(bf16), row(p["bv"]))


# ------------------------------ wrapper ----------------------------------- #
@jax.jit
def vsa_forward(lower_nchw, higher_nchw, solo, prepped):
    """lower: (B, Cl, Hl, Wl), higher: (B, Ch, Hh, Wh), solo: (B, D) -> (B, D)."""
    B, Cl, Hl, Wl = lower_nchw.shape
    _, Ch, Hh, Wh = higher_nchw.shape
    Ho, Wo = Hl // 2, Wl // 2
    assert (Ho, Wo) == (Hh, Wh), "LF_conv(2x2,s2) output must match higher_feature"
    HW = Hh * Wh
    D = solo.shape[1]
    (w_lf, b_lf, w_hf, b_hf, wq, bq, wk, bk, wv, bv) = prepped
    Kpad, Cs = w_lf.shape

    # space-to-depth for the 2x2/stride-2 conv; zero-pad K to 1024; bf16 operands.
    # TODO(synk): keep features channels-last upstream to avoid this HBM round trip.
    lf_patches = (lower_nchw
                  .reshape(B, Cl, Ho, 2, Wo, 2)
                  .transpose(0, 2, 4, 3, 5, 1)           # (B, Ho, Wo, kh, kw, Cl)
                  .reshape(B, HW, 4 * Cl))
    lf_patches = jnp.pad(lf_patches, ((0, 0), (0, 0), (0, Kpad - 4 * Cl)))
    lf_patches = lf_patches.astype(jnp.bfloat16)
    hf_flat = higher_nchw.transpose(0, 2, 3, 1).reshape(B, HW, Ch).astype(jnp.bfloat16)
    solo3 = solo.reshape(B, 1, D)

    flops = 2 * B * HW * (Kpad * Cs + Ch * Cs + 3 * D * D) + 4 * B * HW * HW * D
    bytes_accessed = ((lf_patches.size + hf_flat.size) * 2
                      + (w_lf.size + w_hf.size + wq.size + wk.size + wv.size) * 2
                      + (solo.size + B * D) * 4)
    cost = pl.CostEstimate(flops=flops,
                           transcendentals=B * (HW * HW + D),
                           bytes_accessed=bytes_accessed)

    def weight_spec(shape):
        return pl.BlockSpec(shape, lambda b: (0, 0))      # resident across the grid

    out3 = pl.pallas_call(
        vsa_kernel,
        out_shape=jax.ShapeDtypeStruct((B, 1, D), jnp.float32),
        grid_spec=pltpu.PrefetchScalarGridSpec(
            num_scalar_prefetch=0,
            grid=(B,),
            in_specs=[
                pl.BlockSpec((None, HW, Kpad), lambda b: (b, 0, 0)),   # lf patches
                pl.BlockSpec((None, HW, Ch), lambda b: (b, 0, 0)),     # hf flat
                pl.BlockSpec((None, 1, D), lambda b: (b, 0, 0)),       # solo
                weight_spec((Kpad, Cs)), weight_spec((1, Cs)),         # w_lf, b_lf
                weight_spec((Ch, Cs)), weight_spec((1, Cs)),           # w_hf, b_hf
                weight_spec((D, D)), weight_spec((1, D)),              # wq, bq
                weight_spec((D, D)), weight_spec((1, D)),              # wk, bk
                weight_spec((D, D)), weight_spec((1, D)),              # wv, bv
            ],
            out_specs=pl.BlockSpec((None, 1, D), lambda b: (b, 0, 0)),
        ),
        compiler_params=pltpu.CompilerParams(
            dimension_semantics=("parallel",),
            vmem_limit_bytes=32 * 1024 * 1024),
        cost_estimate=cost,
    )(lf_patches, hf_flat, solo3,
      w_lf, b_lf, w_hf, b_hf, wq, bq, wk, bk, wv, bv)
    return out3.reshape(B, D)


# --------------------- parameter setup (deterministic) -------------------- #
def make_params(key, cl, ch, cs, d):
    ks = jax.random.split(key, 10)

    def init(k, shape, fan_in):
        return jax.random.normal(k, shape, jnp.float32) / jnp.sqrt(jnp.float32(fan_in))

    return {
        "w_lf_oihw": init(ks[0], (cs, cl, 2, 2), 4 * cl),
        "b_lf": 0.1 * init(ks[1], (cs,), 1.0),
        "w_hf_oihw": init(ks[2], (cs, ch, 1, 1), ch),
        "b_hf": 0.1 * init(ks[3], (cs,), 1.0),
        "wq": init(ks[4], (d, d), d), "bq": 0.1 * init(ks[5], (d,), 1.0),
        "wk": init(ks[6], (d, d), d), "bk": 0.1 * init(ks[7], (d,), 1.0),
        "wv": init(ks[8], (d, d), d), "bv": 0.1 * init(ks[9], (d,), 1.0),
    }


# ----------------------- pure-JAX reference (check) ------------------------ #
def vsa_reference(lower, higher, solo, p):
    lf = jax.lax.conv_general_dilated(
        lower, p["w_lf_oihw"], window_strides=(2, 2), padding="VALID",
        dimension_numbers=("NCHW", "OIHW", "NCHW")) + p["b_lf"][None, :, None, None]
    hf = jax.lax.conv_general_dilated(
        higher, p["w_hf_oihw"], window_strides=(1, 1), padding="VALID",
        dimension_numbers=("NCHW", "OIHW", "NCHW")) + p["b_hf"][None, :, None, None]
    concat = jnp.concatenate([lf, hf], axis=1)                   # (B, D, H, W)
    concat = hf.mean(axis=1, keepdims=True) + concat
    B, D, H, W = concat.shape
    x = concat.transpose(0, 2, 3, 1).reshape(B, H * W, D)
    q = x @ p["wq"] + p["bq"]
    k = x @ p["wk"] + p["bk"]
    v = x @ p["wv"] + p["bv"]
    s = jnp.einsum("bqd,bkd->bqk", q, k) / jnp.sqrt(jnp.float32(D))
    a = jax.nn.softmax(s, axis=-1)
    attent = x + jnp.einsum("bqk,bkd->bqd", a, v)
    pooled = attent.mean(axis=1)                                 # adaptive_avg_pool2d(.,1)
    out = solo * jax.nn.sigmoid(pooled)
    norm = jnp.sqrt(jnp.sum(out * out, axis=-1, keepdims=True)) + 1e-8
    return out / norm


# --------------------------------- main ------------------------------------ #
if __name__ == "__main__":
    # Channel counts follow the module (240 -> 256 LF, 384 -> 256 HF, concat 512);
    # batch/spatial kept small: lower 8x8 -> LF_conv(2x2,s2) -> 4x4 == higher 4x4.
    B = 2
    Cl, Ch, Cs, D = 240, 384, 256, 512
    Hl = Wl = 8
    Hh = Wh = 4

    key = jax.random.PRNGKey(0)
    k1, k2, k3, k4 = jax.random.split(key, 4)
    lower_feature = jax.random.normal(k1, (B, Cl, Hl, Wl), jnp.float32) * 0.5
    higher_feature = jax.random.normal(k2, (B, Ch, Hh, Wh), jnp.float32) * 0.5
    solo_feature = jax.random.normal(k3, (B, D), jnp.float32) * 0.5
    params = make_params(k4, Cl, Ch, Cs, D)

    prepped = jax.block_until_ready(prepare_params(params))     # one-time, out of jit

    out = jax.block_until_ready(
        vsa_forward(lower_feature, higher_feature, solo_feature, prepped))
    ref = jax.block_until_ready(
        vsa_reference(lower_feature, higher_feature, solo_feature, params))

    assert out.shape == (B, D)
    assert jnp.allclose(out, ref, rtol=1e-2, atol=1e-2), (
        f"max abs diff {jnp.max(jnp.abs(out - ref))}")

    print("KERNEL_OK")
</pallas_src>

<mosaic_0001>
module attributes {stable_mosaic.version = 11 : i64} {
  func.func @vsa_kernel(%arg0: i32, %arg1: memref<1x16x1024xbf16, #tpu.memory_space<vmem>>, %arg2: memref<1x16x384xbf16, #tpu.memory_space<vmem>>, %arg3: memref<1x1x512xf32, #tpu.memory_space<vmem>>, %arg4: memref<1024x256xbf16, #tpu.memory_space<vmem>>, %arg5: memref<1x256xf32, #tpu.memory_space<vmem>>, %arg6: memref<384x256xbf16, #tpu.memory_space<vmem>>, %arg7: memref<1x256xf32, #tpu.memory_space<vmem>>, %arg8: memref<512x512xbf16, #tpu.memory_space<vmem>>, %arg9: memref<1x512xf32, #tpu.memory_space<vmem>>, %arg10: memref<512x512xbf16, #tpu.memory_space<vmem>>, %arg11: memref<1x512xf32, #tpu.memory_space<vmem>>, %arg12: memref<512x512xbf16, #tpu.memory_space<vmem>>, %arg13: memref<1x512xf32, #tpu.memory_space<vmem>>, %arg14: memref<1x1x512xf32, #tpu.memory_space<vmem>>) attributes {dimension_semantics = [#tpu.dimension_semantics<parallel>], iteration_bounds = array<i64: 2>, scalar_prefetch = 0 : i64, scratch_operands = 0 : i64, tpu.core_type = #tpu.core_type<tc>, window_params = [{transform_indices = @transform_0, window_bounds = array<i64: 1, 16, 1024>}, {transform_indices = @transform_1, window_bounds = array<i64: 1, 16, 384>}, {transform_indices = @transform_2, window_bounds = array<i64: 1, 1, 512>}, {pipeline_mode = #tpu.pipeline_mode<synchronous>, transform_indices = @transform_3, window_bounds = array<i64: 1024, 256>}, {pipeline_mode = #tpu.pipeline_mode<synchronous>, transform_indices = @transform_4, window_bounds = array<i64: 1, 256>}, {pipeline_mode = #tpu.pipeline_mode<synchronous>, transform_indices = @transform_5, window_bounds = array<i64: 384, 256>}, {pipeline_mode = #tpu.pipeline_mode<synchronous>, transform_indices = @transform_6, window_bounds = array<i64: 1, 256>}, {pipeline_mode = #tpu.pipeline_mode<synchronous>, transform_indices = @transform_7, window_bounds = array<i64: 512, 512>}, {pipeline_mode = #tpu.pipeline_mode<synchronous>, transform_indices = @transform_8, window_bounds = array<i64: 1, 512>}, {pipeline_mode = #tpu.pipeline_mode<synchronous>, transform_indices = @transform_9, window_bounds = array<i64: 512, 512>}, {pipeline_mode = #tpu.pipeline_mode<synchronous>, transform_indices = @transform_10, window_bounds = array<i64: 1, 512>}, {pipeline_mode = #tpu.pipeline_mode<synchronous>, transform_indices = @transform_11, window_bounds = array<i64: 512, 512>}, {pipeline_mode = #tpu.pipeline_mode<synchronous>, transform_indices = @transform_12, window_bounds = array<i64: 1, 512>}, {transform_indices = @transform_13, window_bounds = array<i64: 1, 1, 512>}]} {
    %c0 = arith.constant 0 : index
    %c0_0 = arith.constant 0 : index
    %c0_1 = arith.constant 0 : index
    %0 = vector.load %arg1[%c0, %c0_0, %c0_1] : memref<1x16x1024xbf16, #tpu.memory_space<vmem>>, vector<1x16x1024xbf16>
    %1 = vector.shape_cast %0 : vector<1x16x1024xbf16> to vector<16x1024xbf16>
    %c0_2 = arith.constant 0 : index
    %c0_3 = arith.constant 0 : index
    %2 = vector.load %arg4[%c0_2, %c0_3] : memref<1024x256xbf16, #tpu.memory_space<vmem>>, vector<1024x256xbf16>
    %cst = arith.constant dense<0.000000e+00> : vector<16x256xf32>
    %3 = tpu.matmul %1, %2, %cst {dimension_numbers = #tpu.dot_dimension_numbers<[1], [0], [0], [1], [0, 0, 1, 1], [], []>} : vector<16x1024xbf16>, vector<1024x256xbf16>, vector<16x256xf32> -> vector<16x256xf32>
    %c0_4 = arith.constant 0 : index
    %c0_5 = arith.constant 0 : index
    %4 = vector.load %arg5[%c0_4, %c0_5] : memref<1x256xf32, #tpu.memory_space<vmem>>, vector<1x256xf32>
    %5 = vector.broadcast %4 : vector<1x256xf32> to vector<16x256xf32>
    %6 = arith.addf %3, %5 : vector<16x256xf32>
    %c0_6 = arith.constant 0 : index
    %c0_7 = arith.constant 0 : index
    %c0_8 = arith.constant 0 : index
    %7 = vector.load %arg2[%c0_6, %c0_7, %c0_8] : memref<1x16x384xbf16, #tpu.memory_space<vmem>>, vector<1x16x384xbf16>
    %8 = vector.shape_cast %7 : vector<1x16x384xbf16> to vector<16x384xbf16>
    %c0_9 = arith.constant 0 : index
    %c0_10 = arith.constant 0 : index
    %9 = vector.load %arg6[%c0_9, %c0_10] : memref<384x256xbf16, #tpu.memory_space<vmem>>, vector<384x256xbf16>
    %cst_11 = arith.constant dense<0.000000e+00> : vector<16x256xf32>
    %10 = tpu.matmul %8, %9, %cst_11 {dimension_numbers = #tpu.dot_dimension_numbers<[1], [0], [0], [1], [0, 0, 1, 1], [], []>} : vector<16x384xbf16>, vector<384x256xbf16>, vector<16x256xf32> -> vector<16x256xf32>
    %c0_12 = arith.constant 0 : index
    %c0_13 = arith.constant 0 : index
    %11 = vector.load %arg7[%c0_12, %c0_13] : memref<1x256xf32, #tpu.memory_space<vmem>>, vector<1x256xf32>
    %12 = vector.broadcast %11 : vector<1x256xf32> to vector<16x256xf32>
    %13 = arith.addf %10, %12 : vector<16x256xf32>
    %14 = tpu.concatenate %6, %13 in 1 : vector<16x256xf32>, vector<16x256xf32> -> vector<16x512xf32>
    %cst_14 = arith.constant dense<0.000000e+00> : vector<16xf32>
    %15 = vector.multi_reduction <add>, %13, %cst_14 [1] : vector<16x256xf32> to vector<16xf32>
    %16 = vector.shape_cast %15 : vector<16xf32> to vector<16x1xf32>
    %cst_15 = arith.constant 2.560000e+02 : f32
    %17 = vector.broadcast %cst_15 : f32 to vector<16x1xf32>
    %18 = arith.divf %16, %17 : vector<16x1xf32>
    %19 = vector.broadcast %18 : vector<16x1xf32> to vector<16x512xf32>
    %20 = arith.addf %14, %19 : vector<16x512xf32>
    %21 = arith.truncf %20 : vector<16x512xf32> to vector<16x512xbf16>
    %c0_16 = arith.constant 0 : index
    %c0_17 = arith.constant 0 : index
    %22 = vector.load %arg8[%c0_16, %c0_17] : memref<512x512xbf16, #tpu.memory_space<vmem>>, vector<512x512xbf16>
    %cst_18 = arith.constant dense<0.000000e+00> : vector<16x512xf32>
    %23 = tpu.matmul %21, %22, %cst_18 {dimension_numbers = #tpu.dot_dimension_numbers<[1], [0], [0], [1], [0, 0, 1, 1], [], []>} : vector<16x512xbf16>, vector<512x512xbf16>, vector<16x512xf32> -> vector<16x512xf32>
    %c0_19 = arith.constant 0 : index
    %c0_20 = arith.constant 0 : index
    %24 = vector.load %arg9[%c0_19, %c0_20] : memref<1x512xf32, #tpu.memory_space<vmem>>, vector<1x512xf32>
    %25 = vector.broadcast %24 : vector<1x512xf32> to vector<16x512xf32>
    %26 = arith.addf %23, %25 : vector<16x512xf32>
    %c0_21 = arith.constant 0 : index
    %c0_22 = arith.constant 0 : index
    %27 = vector.load %arg10[%c0_21, %c0_22] : memref<512x512xbf16, #tpu.memory_space<vmem>>, vector<512x512xbf16>
    %cst_23 = arith.constant dense<0.000000e+00> : vector<16x512xf32>
    %28 = tpu.matmul %21, %27, %cst_23 {dimension_numbers = #tpu.dot_dimension_numbers<[1], [0], [0], [1], [0, 0, 1, 1], [], []>} : vector<16x512xbf16>, vector<512x512xbf16>, vector<16x512xf32> -> vector<16x512xf32>
    %c0_24 = arith.constant 0 : index
    %c0_25 = arith.constant 0 : index
    %29 = vector.load %arg11[%c0_24, %c0_25] : memref<1x512xf32, #tpu.memory_space<vmem>>, vector<1x512xf32>
    %30 = vector.broadcast %29 : vector<1x512xf32> to vector<16x512xf32>
    %31 = arith.addf %28, %30 : vector<16x512xf32>
    %c0_26 = arith.constant 0 : index
    %c0_27 = arith.constant 0 : index
    %32 = vector.load %arg12[%c0_26, %c0_27] : memref<512x512xbf16, #tpu.memory_space<vmem>>, vector<512x512xbf16>
    %cst_28 = arith.constant dense<0.000000e+00> : vector<16x512xf32>
    %33 = tpu.matmul %21, %32, %cst_28 {dimension_numbers = #tpu.dot_dimension_numbers<[1], [0], [0], [1], [0, 0, 1, 1], [], []>} : vector<16x512xbf16>, vector<512x512xbf16>, vector<16x512xf32> -> vector<16x512xf32>
    %c0_29 = arith.constant 0 : index
    %c0_30 = arith.constant 0 : index
    %34 = vector.load %arg13[%c0_29, %c0_30] : memref<1x512xf32, #tpu.memory_space<vmem>>, vector<1x512xf32>
    %35 = vector.broadcast %34 : vector<1x512xf32> to vector<16x512xf32>
    %36 = arith.addf %33, %35 : vector<16x512xf32>
    %37 = arith.truncf %26 : vector<16x512xf32> to vector<16x512xbf16>
    %38 = arith.truncf %31 : vector<16x512xf32> to vector<16x512xbf16>
    %cst_31 = arith.constant dense<0.000000e+00> : vector<16x16xf32>
    %39 = tpu.matmul %37, %38, %cst_31 {dimension_numbers = #tpu.dot_dimension_numbers<[1], [1], [0], [0], [0, 0, 1, 0], [], []>} : vector<16x512xbf16>, vector<16x512xbf16>, vector<16x16xf32> -> vector<16x16xf32>
    %cst_32 = arith.constant 0.0441941731 : f32
    %40 = vector.broadcast %cst_32 : f32 to vector<16x16xf32>
    %41 = arith.mulf %39, %40 : vector<16x16xf32>
    %cst_33 = arith.constant dense<0xFF800000> : vector<16xf32>
    %42 = vector.multi_reduction <maximumf>, %41, %cst_33 [1] : vector<16x16xf32> to vector<16xf32>
    %43 = vector.shape_cast %42 : vector<16xf32> to vector<16x1xf32>
    %44 = vector.broadcast %43 : vector<16x1xf32> to vector<16x16xf32>
    %45 = arith.subf %41, %44 : vector<16x16xf32>
    %46 = math.exp %45 : vector<16x16xf32>
    %cst_34 = arith.constant dense<0.000000e+00> : vector<16xf32>
    %47 = vector.multi_reduction <add>, %46, %cst_34 [1] : vector<16x16xf32> to vector<16xf32>
    %48 = vector.shape_cast %47 : vector<16xf32> to vector<16x1xf32>
    %49 = tpu.reciprocal %48 {approx = true} : vector<16x1xf32> -> vector<16x1xf32>
    %50 = vector.broadcast %49 : vector<16x1xf32> to vector<16x16xf32>
    %51 = arith.mulf %46, %50 : vector<16x16xf32>
    %52 = arith.truncf %51 : vector<16x16xf32> to vector<16x16xbf16>
    %53 = arith.truncf %36 : vector<16x512xf32> to vector<16x512xbf16>
    %cst_35 = arith.constant dense<0.000000e+00> : vector<16x512xf32>
    %54 = tpu.matmul %52, %53, %cst_35 {dimension_numbers = #tpu.dot_dimension_numbers<[1], [0], [0], [1], [0, 0, 1, 1], [], []>} : vector<16x16xbf16>, vector<16x512xbf16>, vector<16x512xf32> -> vector<16x512xf32>
    %55 = arith.addf %20, %54 : vector<16x512xf32>
    %cst_36 = arith.constant dense<0.000000e+00> : vector<512xf32>
    %56 = vector.multi_reduction <add>, %55, %cst_36 [0] : vector<16x512xf32> to vector<512xf32>
    %57 = vector.shape_cast %56 : vector<512xf32> to vector<1x512xf32>
    %cst_37 = arith.constant 1.600000e+01 : f32
    %58 = vector.broadcast %cst_37 : f32 to vector<1x512xf32>
    %59 = arith.divf %57, %58 : vector<1x512xf32>
    %c0_38 = arith.constant 0 : index
    %c0_39 = arith.constant 0 : index
    %c0_40 = arith.constant 0 : index
    %60 = vector.load %arg3[%c0_38, %c0_39, %c0_40] : memref<1x1x512xf32, #tpu.memory_space<vmem>>, vector<1x1x512xf32>
    %61 = vector.shape_cast %60 : vector<1x1x512xf32> to vector<1x512xf32>
    %62 = arith.negf %59 : vector<1x512xf32>
    %63 = math.exp %62 : vector<1x512xf32>
    %cst_41 = arith.constant 1.000000e+00 : f32
    %64 = vector.broadcast %cst_41 : f32 to vector<1x512xf32>
    %65 = arith.addf %64, %63 : vector<1x512xf32>
    %66 = arith.divf %64, %65 : vector<1x512xf32>
    %67 = arith.mulf %61, %66 : vector<1x512xf32>
    %68 = arith.mulf %67, %67 : vector<1x512xf32>
    %cst_42 = arith.constant dense<0.000000e+00> : vector<1xf32>
    %69 = vector.multi_reduction <add>, %68, %cst_42 [1] : vector<1x512xf32> to vector<1xf32>
    %70 = vector.shape_cast %69 : vector<1xf32> to vector<1x1xf32>
    %71 = math.sqrt %70 : vector<1x1xf32>
    %cst_43 = arith.constant 9.99999993E-9 : f32
    %72 = vector.broadcast %cst_43 : f32 to vector<1x1xf32>
    %73 = arith.addf %71, %72 : vector<1x1xf32>
    %74 = tpu.reciprocal %73 {approx = true} : vector<1x1xf32> -> vector<1x1xf32>
    %75 = vector.broadcast %74 : vector<1x1xf32> to vector<1x512xf32>
    %76 = arith.mulf %67, %75 : vector<1x512xf32>
    %c0_44 = arith.constant 0 : index
    %c0_45 = arith.constant 0 : index
    %c0_46 = arith.constant 0 : index
    %77 = vector.load %arg14[%c0_44, %c0_45, %c0_46] : memref<1x1x512xf32, #tpu.memory_space<vmem>>, vector<1x1x512xf32>
    %78 = vector.shape_cast %77 : vector<1x1x512xf32> to vector<1x512xf32>
    %79 = vector.shape_cast %76 : vector<1x512xf32> to vector<1x1x512xf32>
    tpu.vector_store %arg14[%c0_44, %c0_45, %c0_46], %79 {strides = array<i32>} : memref<1x1x512xf32, #tpu.memory_space<vmem>>, vector<1x1x512xf32>,
    return
  }
  func.func @transform_0(%arg0: i32) -> (i32, i32, i32) {
    %c0_i32 = arith.constant 0 : i32
    %c0_i32_0 = arith.constant 0 : i32
    %c0_i32_1 = arith.constant 0 : i32
    return %arg0, %c0_i32, %c0_i32_0 : i32, i32, i32
  }
  func.func @transform_1(%arg0: i32) -> (i32, i32, i32) {
    %c0_i32 = arith.constant 0 : i32
    %c0_i32_0 = arith.constant 0 : i32
    %c0_i32_1 = arith.constant 0 : i32
    return %arg0, %c0_i32, %c0_i32_0 : i32, i32, i32
  }
  func.func @transform_2(%arg0: i32) -> (i32, i32, i32) {
    %c0_i32 = arith.constant 0 : i32
    %c0_i32_0 = arith.constant 0 : i32
    %c0_i32_1 = arith.constant 0 : i32
    return %arg0, %c0_i32, %c0_i32_0 : i32, i32, i32
  }
  func.func @transform_3(%arg0: i32) -> (i32, i32) {
    %c0_i32 = arith.constant 0 : i32
    %c0_i32_0 = arith.constant 0 : i32
    %c0_i32_1 = arith.constant 0 : i32
    return %c0_i32, %c0_i32_0 : i32, i32
  }
  func.func @transform_4(%arg0: i32) -> (i32, i32) {
    %c0_i32 = arith.constant 0 : i32
    %c0_i32_0 = arith.constant 0 : i32
    %c0_i32_1 = arith.constant 0 : i32
    return %c0_i32, %c0_i32_0 : i32, i32
  }
  func.func @transform_5(%arg0: i32) -> (i32, i32) {
    %c0_i32 = arith.constant 0 : i32
    %c0_i32_0 = arith.constant 0 : i32
    %c0_i32_1 = arith.constant 0 : i32
    return %c0_i32, %c0_i32_0 : i32, i32
  }
  func.func @transform_6(%arg0: i32) -> (i32, i32) {
    %c0_i32 = arith.constant 0 : i32
    %c0_i32_0 = arith.constant 0 : i32
    %c0_i32_1 = arith.constant 0 : i32
    return %c0_i32, %c0_i32_0 : i32, i32
  }
  func.func @transform_7(%arg0: i32) -> (i32, i32) {
    %c0_i32 = arith.constant 0 : i32
    %c0_i32_0 = arith.constant 0 : i32
    %c0_i32_1 = arith.constant 0 : i32
    return %c0_i32, %c0_i32_0 : i32, i32
  }
  func.func @transform_8(%arg0: i32) -> (i32, i32) {
    %c0_i32 = arith.constant 0 : i32
    %c0_i32_0 = arith.constant 0 : i32
    %c0_i32_1 = arith.constant 0 : i32
    return %c0_i32, %c0_i32_0 : i32, i32
  }
  func.func @transform_9(%arg0: i32) -> (i32, i32) {
    %c0_i32 = arith.constant 0 : i32
    %c0_i32_0 = arith.constant 0 : i32
    %c0_i32_1 = arith.constant 0 : i32
    return %c0_i32, %c0_i32_0 : i32, i32
  }
  func.func @transform_10(%arg0: i32) -> (i32, i32) {
    %c0_i32 = arith.constant 0 : i32
    %c0_i32_0 = arith.constant 0 : i32
    %c0_i32_1 = arith.constant 0 : i32
    return %c0_i32, %c0_i32_0 : i32, i32
  }
  func.func @transform_11(%arg0: i32) -> (i32, i32) {
    %c0_i32 = arith.constant 0 : i32
    %c0_i32_0 = arith.constant 0 : i32
    %c0_i32_1 = arith.constant 0 : i32
    return %c0_i32, %c0_i32_0 : i32, i32
  }
  func.func @transform_12(%arg0: i32) -> (i32, i32) {
    %c0_i32 = arith.constant 0 : i32
    %c0_i32_0 = arith.constant 0 : i32
    %c0_i32_1 = arith.constant 0 : i32
    return %c0_i32, %c0_i32_0 : i32, i32
  }
  func.func @transform_13(%arg0: i32) -> (i32, i32, i32) {
    %c0_i32 = arith.constant 0 : i32
    %c0_i32_0 = arith.constant 0 : i32
    %c0_i32_1 = arith.constant 0 : i32
    return %arg0, %c0_i32, %c0_i32_0 : i32, i32, i32
  }
}

</mosaic_0001>

<bundles_post_ra>
// kernel: vsa_forward.1
= control target key start
LH: loop header
LB: loop body
LE: loop exit
PB: predicated region body
PF: predicated region fallthrough
CT: control target
= control target key end

     0   :  { %s7962_s0 = inlined_call_operand.vmem [shape: bf16[2,16,1024], index: 0, kind: input, shape index: {}]   ;;  %s7963_s1 = inlined_call_operand.vmem [shape: bf16[2,16,384], index: 1, kind: input, shape index: {}]   ;;  %s7964_s2 = inlined_call_operand.vmem [shape: f32[2,1,512], index: 2, kind: input, shape index: {}]   ;;  %s7965_s3 = inlined_call_operand.vmem [shape: bf16[1024,256], index: 3, kind: input, shape index: {}]   ;;  %s7966_s4 = inlined_call_operand.vmem [shape: f32[1,256], index: 4, kind: input, shape index: {}]   ;;  %s7967_s5 = inlined_call_operand.vmem [shape: bf16[384,256], index: 5, kind: input, shape index: {}]   ;;  %s7968_s6 = inlined_call_operand.vmem [shape: f32[1,256], index: 6, kind: input, shape index: {}]   ;;  %s7969_s7 = inlined_call_operand.hbm [shape: bf16[512,512], index: 7, kind: input, shape index: {}]   ;;  %s7970_s8 = inlined_call_operand.vmem [shape: f32[1,512], index: 8, kind: input, shape index: {}]   ;;  %s7971_s9 = inlined_call_operand.hbm [shape: bf16[512,512], index: 9, kind: input, shape index: {}]   ;;  %s7972_s10 = inlined_call_operand.vmem [shape: f32[1,512], index: 10, kind: input, shape index: {}]   ;;  %s7973_s11 = inlined_call_operand.hbm [shape: bf16[512,512], index: 11, kind: input, shape index: {}]   ;;  %s7974_s12 = inlined_call_operand.vmem [shape: f32[1,512], index: 12, kind: input, shape index: {}]   ;;  %s7975_s13 = inlined_call_operand.vmem [shape: f32[2,1,512], index: 13, kind: output, shape index: {}]  }
   0x1   :  { %7979 = sst [smem:[#allocation10_spill]] %s7975_s13 }
   0x2   :  { %18 = vsyncpa [#allocation3], 0 }
   0x3   :  { %19 = vsyncpa [#allocation5], 0  ;;  %s7065_s25 = smov 0  }
   0x4 LB: > { %7980 = sst [smem:[#allocation9_spill]] %s6986_s25  ;;  %s7071_s26 = sadd.s32 4294967295, %s6986_s25   ;;  %s6986_s25 = sphi %s7065_s25, %s25_s25  }
   0x5   : > { %p5302_p0 = scmp.ge.s32.totalorder %s6986_s25, 1  ;;  %p344_p1 = scmp.lt.s32.totalorder %s6986_s25, 3 }
   0x6   : > { %p7976_p2 = scmp.eq.s32.totalorder %s7071_s26, 0  ;;  %s6988_s28 = smov [#allocation4]  }
   0x7   : > { %p7076_p3 = pnand %p5302_p0, %p344_p1  ;;  %s384_s29 = sshll.u32 %s6988_s28, 4  ;;  %s385_s29 = int_to_ptr.vmem [resolvable:$true] %s384_s29 }
   0x8   : > { %s6989_s30 = smov [#allocation2]   ;;  %s6990_s16 = smov [#allocation6]  }
   0x9   : > { %s7981_s27 = scalar_select %p7076_p3, 1, 0 }
   0xa   : > { %p5985_p4 = pneg %p7076_p3  ;;  %s368_s14 = sshll.u32 %s6989_s30, 4  ;;  %s7088_s14 = int_to_ptr.vmem [resolvable:$true] %s368_s14 }
   0xb   : > { %s400_s17 = sshll.u32 %s6990_s16, 4  ;;  %s6888_s20 = scalar_lea.hbm %s7971_s9, 16384  ;;  %s7090_s17 = int_to_ptr.vmem [resolvable:$true] %s400_s17 }
   0xc   : > { %p7084_p5 = pnand %p7976_p2, %p5985_p4  ;;  %p6889_p6 = scmp.ne.s32.totalorder %s7971_s9, %s6888_s20 }
   0xd   : > { %p6895_p10 = scmp.lt.u32.totalorder %s6888_s20, %s7971_s9 }
   0xe   : > { %p7100_p7 = pneg %p7084_p5 }
  0x10   : > { %p6891_p8 = pnand %p7100_p7, %p6889_p6 }
  0x12   : > { %p6892_p9 = pneg %p6891_p8 }
  0x14   : > { %p6897_p11 = pnand %p6895_p10, %p6892_p9 }
  0x16   : > { %6900 = shalt.err (!%p6897_p11)
}
  0x17   : > { %s6901_s30 = scalar_lea.vmem %s385_s29, 16384  ;;  %p6909_p1 = scmp.lt.s32.totalorder %s385_s29, %s385_s29 }
  0x18   : > { %p6902_p12 = scmp.ne.s32.totalorder %s385_s29, %s6901_s30  ;;  %p6910_p4 = scmp.lt.s32.totalorder %s6901_s30, %s6901_s30 }
  0x1a   : > { %p6904_p13 = pnand %p6902_p12, %p7100_p7  ;;  %p6911_p2 = por %p6910_p4, %p6909_p1 }
  0x1c   : > { %p6905_p0 = pneg %p6904_p13 }
  0x1e   : > { %p6912_p3 = pnand %p6911_p2, %p6905_p0 }
  0x20   : > { %6915 = shalt.err (!%p6912_p3)
}
  0x21   : > { %s6991_s16 = smov 256   ;;  %s6992_s18 = smov 16  }
  0x22   : > { %5991 = dma.hbm_to_vmem [thread:$0]  (!%p7084_p5), %s7971_s9, 16384, %s385_s29, [#allocation5], %s6991_s16, %s6991_s16, %s6992_s18  }
  0x23   : > { %s6916_s24 = scalar_lea.hbm %s7969_s7, 16384 }
  0x24   : > { %p6917_p2 = scmp.ne.s32.totalorder %s7969_s7, %s6916_s24  ;;  %p6923_p8 = scmp.lt.u32.totalorder %s6916_s24, %s7969_s7 }
  0x26   : > { %p6919_p3 = pnand %p6917_p2, %p7100_p7 }
  0x28   : > { %p6920_p6 = pneg %p6919_p3 }
  0x2a   : > { %p6925_p9 = pnand %p6923_p8, %p6920_p6 }
  0x2c   : > { %6928 = shalt.err (!%p6925_p9)
}
  0x2d   : > { %s6929_s29 = scalar_lea.vmem %s7088_s14, 16384  ;;  %p6937_p13 = scmp.lt.s32.totalorder %s7088_s14, %s7088_s14 }
  0x2e   : > { %p6930_p10 = scmp.ne.s32.totalorder %s7088_s14, %s6929_s29  ;;  %p6938_p0 = scmp.lt.s32.totalorder %s6929_s29, %s6929_s29 }
  0x30   : > { %p6932_p11 = pnand %p6930_p10, %p7100_p7  ;;  %p6939_p1 = por %p6938_p0, %p6937_p13 }
  0x32   : > { %p6933_p12 = pneg %p6932_p11 }
  0x34   : > { %p6940_p4 = pnand %p6939_p1, %p6933_p12 }
  0x36   : > { %6943 = shalt.err (!%p6940_p4)
}
  0x37   : > { %5988 = dma.hbm_to_vmem [thread:$0]  (!%p7084_p5), %s7969_s7, 16384, %s7088_s14, [#allocation3], %s6991_s16, %s6991_s16, %s6992_s18  }
  0x38   : > { %s6944_s21 = scalar_lea.hbm %s7973_s11, 16384 }
  0x39   : > { %p6945_p2 = scmp.ne.s32.totalorder %s7973_s11, %s6944_s21  ;;  %p6951_p8 = scmp.lt.u32.totalorder %s6944_s21, %s7973_s11 }
  0x3b   : > { %p6947_p3 = pnand %p6945_p2, %p7100_p7 }
  0x3d   : > { %p6948_p6 = pneg %p6947_p3 }
  0x3f   : > { %p6953_p9 = pnand %p6951_p8, %p6948_p6 }
  0x41   : > { %6956 = shalt.err (!%p6953_p9)
}
  0x42   : > { %s6957_s14 = scalar_lea.vmem %s7090_s17, 16384  ;;  %p6965_p13 = scmp.lt.s32.totalorder %s7090_s17, %s7090_s17 }
  0x43   : > { %p6958_p10 = scmp.ne.s32.totalorder %s7090_s17, %s6957_s14  ;;  %p6966_p0 = scmp.lt.s32.totalorder %s6957_s14, %s6957_s14 }
  0x45   : > { %p6960_p11 = pnand %p6958_p10, %p7100_p7  ;;  %p6967_p1 = por %p6966_p0, %p6965_p13 }
  0x47   : > { %p6961_p12 = pneg %p6960_p11 }
  0x49   : > { %p6968_p4 = pnand %p6967_p1, %p6961_p12 }
  0x4b   : > { %6971 = shalt.err (!%p6968_p4)
}
  0x4c   : > { %5994 = dma.hbm_to_vmem [thread:$0]  (!%p7084_p5), %s7973_s11, 16384, %s7090_s17, [#allocation5], %s6991_s16, %s6991_s16, %s6992_s18  }
  0x4d   : > { %p7984_p2 = scmp.ne.s32.totalorder %s7981_s27, 0 }
  0x4e   : > { %p7985_p7 = scmp.eq.s32.totalorder (!%p7984_p2), %s7071_s26, 0 }
  0x4f   : > { %442 = sbr.rel (%p7984_p2) target bundleno = 2294 (0x8f6), region = 72 }
  0x56   : > { %6977 = dma.done.wait (%p7985_p7), [#allocation3], 16384   ;;  %p7986_p3 = pmov %p7985_p7 }
  0x58   : > { %6979 = vsyncadd (%p7986_p3), [#allocation3], 4294950912  ;;  %p7987_p6 = pmov %p7986_p3 }
  0x59   : > { %p7988_p8 = pmov %p7986_p3 }
  0x5a   : > { %6981 = dma.done.wait (%p7987_p6), [#allocation5], 32768  }
  0x5b   : > { %6983 = vsyncadd (%p7988_p8), [#allocation5], 4294934528  ;;  %v6016_v0 = vld [vmem:[%s7965_s3 + $0x4] ss:$8 sps:$4 sm:$0xff]   ;;  %v6018_v1 = vld [vmem:[%s7965_s3] ss:$8 sps:$4 sm:$0xff]  }
  0x5c   : > { %1349 = vmatprep.subr.bf16.mxu0 %v6016_v0  ;;  %v6019_v2 = vld [vmem:[%s7965_s3 + $0x14] ss:$8 sps:$4 sm:$0xff]   ;;  %v6021_v3 = vld [vmem:[%s7965_s3 + $0x10] ss:$8 sps:$4 sm:$0xff]   ;;  %v6022_v4 = vld [vmem:[%s7965_s3 + $0x24] ss:$8 sps:$4 sm:$0xff]  }
  0x5d   : > { %1350 = vmatpush1.bf16.msra.mxu0 %v6018_v1  ;;  %v6024_v5 = vld [vmem:[%s7965_s3 + $0x20] ss:$8 sps:$4 sm:$0xff]   ;;  %p502_p5 = scmp.lt.s32.totalorder %s7071_s26, 1  ;;  %v6025_v6 = vld [vmem:[%s7965_s3 + $0x34] ss:$8 sps:$4 sm:$0xff]   ;;  %vm4926_vm0 = vcmask 130048  }
  0x5e   : > { %1351 = vmatprep.subr.bf16.mxu0 %v6019_v2  ;;  %v6027_v7 = vld [vmem:[%s7965_s3 + $0x30] ss:$8 sps:$4 sm:$0xff]   ;;  %v6028_v8 = vld [vmem:[%s7965_s3 + $0x44] ss:$8 sps:$4 sm:$0xff]   ;;  %v6030_v9 = vld [vmem:[%s7965_s3 + $0x40] ss:$8 sps:$4 sm:$0xff]  }
  0x5f   : > { %s7992_s26 = smov (!%p502_p5, %s7071_s26), 1  ;;  %v6031_v10 = vld [vmem:[%s7965_s3 + $0x54] ss:$8 sps:$4 sm:$0xff]   ;;  %v6033_v11 = vld [vmem:[%s7965_s3 + $0x50] ss:$8 sps:$4 sm:$0xff]   ;;  %vm5161_vm1 = vcmask 1040384  }
  0x60   : > { %s5895_s17 = sshll.u32 %s7992_s26, 6  ;;  %v6034_v12 = vld [vmem:[%s7965_s3 + $0x64] ss:$8 sps:$4 sm:$0xff]   ;;  %v6036_v16 = vld [vmem:[%s7965_s3 + $0x60] ss:$8 sps:$4 sm:$0xff]   ;;  %s5972_s15 = smul.u32 24, %s7992_s26 }
  0x61   : > { %1352 = vmatpush1.bf16.msra.mxu0 %v6021_v3  ;;  %s7222_s20 = scalar_lea.vmem %s7962_s0, %s5895_s17  ;;  %v6037_v17 = vld [vmem:[%s7965_s3 + $0x74] ss:$8 sps:$4 sm:$0xff]   ;;  %v6039_v18 = vld [vmem:[%s7965_s3 + $0x70] ss:$8 sps:$4 sm:$0xff]   ;;  %v6040_v19 = vld [vmem:[%s7965_s3 + $0x84] ss:$8 sps:$4 sm:$0xff]  }
  0x62   : > { %1353 = vmatprep.subr.bf16.mxu0 %v6022_v4  ;;  %v521_v13 = vld [vmem:[%s7222_s20] sm:$0xff]  ;;  %v6043_v21 = vld [vmem:[%s7965_s3 + $0x94] ss:$8 sps:$4 sm:$0xff]   ;;  %v6045_v22 = vld [vmem:[%s7965_s3 + $0x90] ss:$8 sps:$4 sm:$0xff]   ;;  %s7551_s18 = scalar_lea.vmem %s7963_s1, %s5972_s15  ;;  %s5314_s15 = sshll.u32 %s7992_s26, 2 }
  0x63   : > { %v525_v14 = vld [vmem:[%s7222_s20 + $0x20] sm:$0xff]  ;;  %v6049_v25 = vld [vmem:[%s7965_s3 + $0xb4] ss:$8 sps:$4 sm:$0xff]   ;;  %v6051_v26 = vld [vmem:[%s7965_s3 + $0xb0] ss:$8 sps:$4 sm:$0xff]   ;;  %s515_s17 = scalar_lea.vmem %s7964_s2, %s5314_s15  ;;  %s7989_s19 = sld [smem:[#allocation10_spill]] }
  0x64   : > { %v5317_v15 = vcombine.high %v521_v13, %v525_v14  ;;  %v6042_v20 = vld [vmem:[%s7965_s3 + $0x80] ss:$8 sps:$4 sm:$0xff]   ;;  %v6046_v23 = vld [vmem:[%s7965_s3 + $0xa4] ss:$8 sps:$4 sm:$0xff]   ;;  %v6055_v29 = vld [vmem:[%s7965_s3 + $0xd4] ss:$8 sps:$4 sm:$0xff]   ;;  %v5316_v38 = vcombine.low %v521_v13, %v525_v14 }
  0x65   : > { %1354 = vmatpush1.bf16.msra.mxu0 %v6024_v5  ;;  %v6048_v24 = vld [vmem:[%s7965_s3 + $0xa0] ss:$8 sps:$4 sm:$0xff]   ;;  %v6052_v27 = vld [vmem:[%s7965_s3 + $0xc4] ss:$8 sps:$4 sm:$0xff]   ;;  %v6057_v30 = vld [vmem:[%s7965_s3 + $0xd0] ss:$8 sps:$4 sm:$0xff]  }
  0x66   : > { %1355 = vmatprep.subr.bf16.mxu0 %v6025_v6  ;;  %1381 = vmatprep.mubr.bf16.mxu0 %v5317_v15  ;;  %v6054_v28 = vld [vmem:[%s7965_s3 + $0xc0] ss:$8 sps:$4 sm:$0xff]   ;;  %v6058_v31 = vld [vmem:[%s7965_s3 + $0xe4] ss:$8 sps:$4 sm:$0xff]   ;;  %v6061_v33 = vld [vmem:[%s7965_s3 + $0xf4] ss:$8 sps:$4 sm:$0xff]  }
  0x67   : > { %v6060_v32 = vld [vmem:[%s7965_s3 + $0xe0] ss:$8 sps:$4 sm:$0xff]   ;;  %v6063_v34 = vld [vmem:[%s7965_s3 + $0xf0] ss:$8 sps:$4 sm:$0xff]   ;;  %v6066_v35 = vld [vmem:[%s7965_s3 + $0x104] ss:$8 sps:$4 sm:$0xff]  }
  0x68   : > { %v7293_v36 = vld [vmem:[%s7222_s20 + $0x8] sm:$0xff]  ;;  %v6069_v41 = vld [vmem:[%s7965_s3 + $0x114] ss:$8 sps:$4 sm:$0xff]   ;;  %v6067_v42 = vld [vmem:[%s7965_s3 + $0x110] ss:$8 sps:$4 sm:$0xff]  }
  0x69   : > { %1356 = vmatpush1.bf16.msra.mxu0 %v6027_v7  ;;  %v7296_v37 = vld [vmem:[%s7222_s20 + $0x28] sm:$0xff]  ;;  %v6075_v45 = vld [vmem:[%s7965_s3 + $0x134] ss:$8 sps:$4 sm:$0xff]   ;;  %v6073_v46 = vld [vmem:[%s7965_s3 + $0x130] ss:$8 sps:$4 sm:$0xff]  }
  0x6a   : > { %1357 = vmatprep.subr.bf16.mxu0 %v6028_v8  ;;  %v6064_v39 = vld [vmem:[%s7965_s3 + $0x100] ss:$8 sps:$4 sm:$0xff]   ;;  %v5319_v40 = vcombine.high %v7293_v36, %v7296_v37  ;;  %v6072_v43 = vld [vmem:[%s7965_s3 + $0x124] ss:$8 sps:$4 sm:$0xff]   ;;  %v6081_v49 = vld [vmem:[%s7965_s3 + $0x154] ss:$8 sps:$4 sm:$0xff]  }
  0x6b   : > { %v6070_v44 = vld [vmem:[%s7965_s3 + $0x120] ss:$8 sps:$4 sm:$0xff]   ;;  %v6078_v47 = vld [vmem:[%s7965_s3 + $0x144] ss:$8 sps:$4 sm:$0xff]   ;;  %v6079_v50 = vld [vmem:[%s7965_s3 + $0x150] ss:$8 sps:$4 sm:$0xff]  }
  0x6c   : > { %v6076_v48 = vld [vmem:[%s7965_s3 + $0x140] ss:$8 sps:$4 sm:$0xff]   ;;  %v6084_v51 = vld [vmem:[%s7965_s3 + $0x164] ss:$8 sps:$4 sm:$0xff]   ;;  %v6087_v53 = vld [vmem:[%s7965_s3 + $0x174] ss:$8 sps:$4 sm:$0xff]  }
  0x6d   : > { %1358 = vmatpush1.bf16.msra.mxu0 %v6030_v9  ;;  %v6082_v52 = vld [vmem:[%s7965_s3 + $0x160] ss:$8 sps:$4 sm:$0xff]   ;;  %v6085_v54 = vld [vmem:[%s7965_s3 + $0x170] ss:$8 sps:$4 sm:$0xff]   ;;  %v6090_v55 = vld [vmem:[%s7965_s3 + $0x184] ss:$8 sps:$4 sm:$0xff]  }
  0x6e   : > { %1359 = vmatprep.subr.bf16.mxu0 %v6031_v10  ;;  %v6181_v56 = vld [vmem:[%s7967_s5 + $0x4] ss:$8 sps:$4 sm:$0xff]   ;;  %v6186_v57 = vld [vmem:[%s7967_s5] ss:$8 sps:$4 sm:$0xff]   ;;  %v6093_v59 = vld [vmem:[%s7965_s3 + $0x194] ss:$8 sps:$4 sm:$0xff]  }
  0x6f   : > { %1841 = vmatprep.subr.bf16.mxu1 %v6181_v56  ;;  %v6088_v58 = vld [vmem:[%s7965_s3 + $0x180] ss:$8 sps:$4 sm:$0xff]   ;;  %v6187_v60 = vld [vmem:[%s7967_s5 + $0x14] ss:$8 sps:$4 sm:$0xff]   ;;  %v6192_v61 = vld [vmem:[%s7967_s5 + $0x10] ss:$8 sps:$4 sm:$0xff]  }
  0x70   : > { %1842 = vmatpush1.bf16.msra.mxu1 %v6186_v57  ;;  %v6091_v62 = vld [vmem:[%s7965_s3 + $0x190] ss:$8 sps:$4 sm:$0xff]   ;;  %v6096_v63 = vld [vmem:[%s7965_s3 + $0x1a4] ss:$8 sps:$4 sm:$0xff]   ;;  %v6198_v1 = vld [vmem:[%s7967_s5 + $0x20] ss:$8 sps:$4 sm:$0xff]  }
  0x71   : > { %1360 = vmatpush1.bf16.msra.mxu0 %v6033_v11  ;;  %1843 = vmatprep.subr.bf16.mxu1 %v6187_v60  ;;  %v6193_v0 = vld [vmem:[%s7967_s5 + $0x24] ss:$8 sps:$4 sm:$0xff]   ;;  %v6094_v2 = vld [vmem:[%s7965_s3 + $0x1a0] ss:$8 sps:$4 sm:$0xff]   ;;  %v6099_v3 = vld [vmem:[%s7965_s3 + $0x1b4] ss:$8 sps:$4 sm:$0xff]  }
  0x72   : > { %1361 = vmatprep.subr.bf16.mxu0 %v6034_v12  ;;  %v6199_v4 = vld [vmem:[%s7967_s5 + $0x34] ss:$8 sps:$4 sm:$0xff]   ;;  %v6204_v5 = vld [vmem:[%s7967_s5 + $0x30] ss:$8 sps:$4 sm:$0xff]   ;;  %v6102_v7 = vld [vmem:[%s7965_s3 + $0x1c4] ss:$8 sps:$4 sm:$0xff]  }
  0x73   : > { %v6097_v6 = vld [vmem:[%s7965_s3 + $0x1b0] ss:$8 sps:$4 sm:$0xff]   ;;  %v6205_v8 = vld [vmem:[%s7967_s5 + $0x44] ss:$8 sps:$4 sm:$0xff]   ;;  %v6210_v9 = vld [vmem:[%s7967_s5 + $0x40] ss:$8 sps:$4 sm:$0xff]  }
  0x74   : > { %1844 = vmatpush1.bf16.msra.mxu1 %v6192_v61  ;;  %v6100_v10 = vld [vmem:[%s7965_s3 + $0x1c0] ss:$8 sps:$4 sm:$0xff]   ;;  %v6105_v11 = vld [vmem:[%s7965_s3 + $0x1d4] ss:$8 sps:$4 sm:$0xff]   ;;  %v6216_v13 = vld [vmem:[%s7967_s5 + $0x50] ss:$8 sps:$4 sm:$0xff]  }
  0x75   : > { %1362 = vmatpush1.bf16.msra.mxu0 %v6036_v16  ;;  %1845 = vmatprep.subr.bf16.mxu1 %v6193_v0  ;;  %v6211_v12 = vld [vmem:[%s7967_s5 + $0x54] ss:$8 sps:$4 sm:$0xff]   ;;  %v6103_v14 = vld [vmem:[%s7965_s3 + $0x1d0] ss:$8 sps:$4 sm:$0xff]   ;;  %v6108_v15 = vld [vmem:[%s7965_s3 + $0x1e4] ss:$8 sps:$4 sm:$0xff]  }
  0x76   : > { %1363 = vmatprep.subr.bf16.mxu0 %v6037_v17  ;;  %v6217_v16 = vld [vmem:[%s7967_s5 + $0x64] ss:$8 sps:$4 sm:$0xff]   ;;  %v6222_v17 = vld [vmem:[%s7967_s5 + $0x60] ss:$8 sps:$4 sm:$0xff]   ;;  %v6273_v56 = vld [vmem:[%s7967_s5 + $0xf0] ss:$8 sps:$4 sm:$0xff]  }
  0x77   : > { %v6135_v57 = vld [vmem:[%s7965_s3 + $0x274] ss:$8 sps:$4 sm:$0xff]   ;;  %v6138_v60 = vld [vmem:[%s7965_s3 + $0x284] ss:$8 sps:$4 sm:$0xff]   ;;  %v6139_v0 = vld [vmem:[%s7965_s3 + $0x290] ss:$8 sps:$4 sm:$0xff]  }
  0x78   : > { %1846 = vmatpush1.bf16.msra.mxu1 %v6198_v1  ;;  %v6279_v61 = vld [vmem:[%s7551_s18 + $0x4] ss:$12 sps:$4 sm:$0xff]  }
  0x79   : > { %1364 = vmatpush1.bf16.msra.mxu0 %v6039_v18  ;;  %1847 = vmatprep.subr.bf16.mxu1 %v6199_v4  ;;  %v6106_v18 = vld [vmem:[%s7965_s3 + $0x1e0] ss:$8 sps:$4 sm:$0xff]   ;;  %v6144_v1 = vld [vmem:[%s7965_s3 + $0x2a4] ss:$8 sps:$4 sm:$0xff]   ;;  %v6145_v4 = vld [vmem:[%s7965_s3 + $0x2b0] ss:$8 sps:$4 sm:$0xff]  }
  0x7a   : > { %1365 = vmatprep.subr.bf16.mxu0 %v6040_v19  ;;  %v6111_v19 = vld [vmem:[%s7965_s3 + $0x1f4] ss:$8 sps:$4 sm:$0xff]   ;;  %1873 = vmatprep.mubr.bf16.mxu1 %v6279_v61 }
  0x7b   : > { %v6270_v61 = vld [vmem:[%s7967_s5 + $0x154] ss:$8 sps:$4 sm:$0xff]  }
  0x7c   : > { %1848 = vmatpush1.bf16.msra.mxu1 %v6204_v5  ;;  %v6150_v5 = vld [vmem:[%s7965_s3 + $0x2c4] ss:$8 sps:$4 sm:$0xff]  }
  0x7d   : > { %1366 = vmatpush1.bf16.msra.mxu0 %v6042_v20  ;;  %1849 = vmatprep.subr.bf16.mxu1 %v6205_v8  ;;  %v6223_v20 = vld [vmem:[%s7967_s5 + $0x74] ss:$8 sps:$4 sm:$0xff]   ;;  %v6151_v8 = vld [vmem:[%s7965_s3 + $0x2d0] ss:$8 sps:$4 sm:$0xff]  }
  0x7e   : > { %1367 = vmatprep.subr.bf16.mxu0 %v6043_v21  ;;  %v6228_v21 = vld [vmem:[%s7967_s5 + $0x70] ss:$8 sps:$4 sm:$0xff]  }
  0x80   : > { %1850 = vmatpush1.bf16.msra.mxu1 %v6210_v9  ;;  %v6156_v9 = vld [vmem:[%s7965_s3 + $0x2e4] ss:$8 sps:$4 sm:$0xff]  }
  0x81   : > { %1368 = vmatpush1.bf16.msra.mxu0 %v6045_v22  ;;  %1851 = vmatprep.subr.bf16.mxu1 %v6211_v12  ;;  %v6109_v22 = vld [vmem:[%s7965_s3 + $0x1f0] ss:$8 sps:$4 sm:$0xff]  }
  0x82   : > { %1369 = vmatprep.subr.bf16.mxu0 %v6046_v23  ;;  %v6114_v23 = vld [vmem:[%s7965_s3 + $0x204] ss:$8 sps:$4 sm:$0xff]   ;;  %v6157_v12 = vld [vmem:[%s7965_s3 + $0x2f0] ss:$8 sps:$4 sm:$0xff]  }
  0x84   : > { %1852 = vmatpush1.bf16.msra.mxu1 %v6216_v13  ;;  %v6162_v13 = vld [vmem:[%s7965_s3 + $0x304] ss:$8 sps:$4 sm:$0xff]  }
  0x85   : > { %1370 = vmatpush1.bf16.msra.mxu0 %v6048_v24  ;;  %1853 = vmatprep.subr.bf16.mxu1 %v6217_v16  ;;  %v7445_v24 = vld [vmem:[%s7222_s20 + $0x10] sm:$0xff]  ;;  %v6160_v16 = vld [vmem:[%s7965_s3 + $0x300] ss:$8 sps:$4 sm:$0xff]  }
  0x86   : > { %1371 = vmatprep.subr.bf16.mxu0 %v6049_v25  ;;  %v7448_v25 = vld [vmem:[%s7222_s20 + $0x30] sm:$0xff] }
  0x88   : > { %1854 = vmatpush1.bf16.msra.mxu1 %v6222_v17  ;;  %v5320_v17 = vcombine.low %v7445_v24, %v7448_v25 }
  0x89   : > { %1372 = vmatpush1.bf16.msra.mxu0 %v6051_v26  ;;  %1855 = vmatprep.subr.bf16.mxu1 %v6223_v20  ;;  %v6229_v26 = vld [vmem:[%s7967_s5 + $0x84] ss:$8 sps:$4 sm:$0xff]   ;;  %v6163_v20 = vld [vmem:[%s7965_s3 + $0x310] ss:$8 sps:$4 sm:$0xff]  }
  0x8a   : > { %1373 = vmatprep.subr.bf16.mxu0 %v6052_v27  ;;  %v6234_v27 = vld [vmem:[%s7967_s5 + $0x80] ss:$8 sps:$4 sm:$0xff]  }
  0x8c   : > { %1856 = vmatpush1.bf16.msra.mxu1 %v6228_v21  ;;  %v6168_v21 = vld [vmem:[%s7965_s3 + $0x324] ss:$8 sps:$4 sm:$0xff]  }
  0x8d   : > { %1374 = vmatpush1.bf16.msra.mxu0 %v6054_v28  ;;  %1857 = vmatprep.subr.bf16.mxu1 %v6229_v26  ;;  %v5318_v28 = vcombine.low %v7293_v36, %v7296_v37  ;;  %v6243_v36 = vld [vmem:[%s7967_s5 + $0xa0] ss:$8 sps:$4 sm:$0xff]   ;;  %v6120_v37 = vld [vmem:[%s7965_s3 + $0x224] ss:$8 sps:$4 sm:$0xff]  }
  0x8e   : > { %1375 = vmatprep.subr.bf16.mxu0 %v6055_v29  ;;  %v6112_v29 = vld [vmem:[%s7965_s3 + $0x200] ss:$8 sps:$4 sm:$0xff]  }
  0x8f   : > { %v6172_v26 = vld [vmem:[%s7965_s3 + $0x340] ss:$8 sps:$4 sm:$0xff]  }
  0x90   : > { %1858 = vmatpush1.bf16.msra.mxu1 %v6234_v27  ;;  %v6177_v27 = vld [vmem:[%s7965_s3 + $0x354] ss:$8 sps:$4 sm:$0xff]  }
  0x91   : > { %1376 = vmatpush1.bf16.msra.mxu0 %v6057_v30  ;;  %v5321_v30 = vcombine.high %v7445_v24, %v7448_v25  ;;  %v6169_v24 = vld [vmem:[%s7965_s3 + $0x330] ss:$8 sps:$4 sm:$0xff]   ;;  %v6174_v25 = vld [vmem:[%s7965_s3 + $0x344] ss:$8 sps:$4 sm:$0xff]  }
  0x92   : > { %1377 = vmatprep.subr.bf16.mxu0 %v6058_v31  ;;  %v6235_v31 = vld [vmem:[%s7967_s5 + $0x94] ss:$8 sps:$4 sm:$0xff]  }
  0x93   : > { %1859 = vmatprep.subr.bf16.mxu1 %v6235_v31  ;;  %v6185_v31 = vld [vmem:[%s7965_s3 + $0x374] ss:$8 sps:$4 sm:$0xff]  }
  0x95   : > { %1378 = vmatpush1.bf16.msra.mxu0 %v6060_v32  ;;  %v6117_v32 = vld [vmem:[%s7965_s3 + $0x214] ss:$8 sps:$4 sm:$0xff]  }
  0x96   : > { %1379 = vmatprep.subr.bf16.mxu0 %v6061_v33  ;;  %v6237_v33 = vld [vmem:[%s7967_s5 + $0x90] ss:$8 sps:$4 sm:$0xff]  }
  0x97   : > { %1860 = vmatpush1.bf16.msra.mxu1 %v6237_v33  ;;  %v6191_v33 = vld [vmem:[%s7965_s3 + $0x384] ss:$8 sps:$4 sm:$0xff]  }
  0x99   : > { %1380 = vmatpush1.bf16.msra.mxu0 %v6063_v34  ;;  %v6115_v34 = vld [vmem:[%s7965_s3 + $0x210] ss:$8 sps:$4 sm:$0xff]  }
  0x9a   : > { %1392 = vmatprep.subr.bf16.mxu0 %v6066_v35  ;;  %v6241_v35 = vld [vmem:[%s7967_s5 + $0xa4] ss:$8 sps:$4 sm:$0xff]  }
  0x9b   : > { %1861 = vmatprep.subr.bf16.mxu1 %v6241_v35  ;;  %v6197_v35 = vld [vmem:[%s7965_s3 + $0x394] ss:$8 sps:$4 sm:$0xff]  }
  0x9c   : > { %1382 = vmatmul.mubr.bf16.vlgmr.msra.gmra.mrb[0].mxu0 %v5316_v38  ;;  %1862 = vmatpush1.bf16.msra.mxu1 %v6243_v36  ;;  %v6118_v38 = vld [vmem:[%s7965_s3 + $0x220] ss:$8 sps:$4 sm:$0xff]   ;;  %v6195_v36 = vld [vmem:[%s7965_s3 + $0x390] ss:$8 sps:$4 sm:$0xff]  }
  0x9d   : > { %1393 = vmatpush1.bf16.msra.mxu0 %v6064_v39  ;;  %1424 = vmatprep.mubr.bf16.mxu0 %v5319_v40  ;;  %v6247_v39 = vld [vmem:[%s7967_s5 + $0xb4] ss:$8 sps:$4 sm:$0xff]   ;;  %v6249_v40 = vld [vmem:[%s7967_s5 + $0xb0] ss:$8 sps:$4 sm:$0xff]  }
  0x9e   : > { %1394 = vmatprep.subr.bf16.mxu0 %v6069_v41  ;;  %v6123_v41 = vld [vmem:[%s7965_s3 + $0x234] ss:$8 sps:$4 sm:$0xff]   ;;  %1863 = vmatprep.subr.bf16.mxu1 %v6247_v39 }
  0x9f   : > { %v6209_v39 = vld [vmem:[%s7965_s3 + $0x3b4] ss:$8 sps:$4 sm:$0xff]  }
  0xa0   : > { %1864 = vmatpush1.bf16.msra.mxu1 %v6249_v40  ;;  %v6207_v40 = vld [vmem:[%s7965_s3 + $0x3b0] ss:$8 sps:$4 sm:$0xff]  }
  0xa1   : > { %1395 = vmatpush1.bf16.msra.mxu0 %v6067_v42  ;;  %v6121_v42 = vld [vmem:[%s7965_s3 + $0x230] ss:$8 sps:$4 sm:$0xff]  }
  0xa2   : > { %1396 = vmatprep.subr.bf16.mxu0 %v6072_v43  ;;  %v6253_v43 = vld [vmem:[%s7967_s5 + $0xc4] ss:$8 sps:$4 sm:$0xff]  }
  0xa3   : > { %1865 = vmatprep.subr.bf16.mxu1 %v6253_v43  ;;  %v6221_v43 = vld [vmem:[%s7965_s3 + $0x3d4] ss:$8 sps:$4 sm:$0xff]  }
  0xa5   : > { %1397 = vmatpush1.bf16.msra.mxu0 %v6070_v44  ;;  %v6255_v44 = vld [vmem:[%s7967_s5 + $0xc0] ss:$8 sps:$4 sm:$0xff]  }
  0xa6   : > { %1398 = vmatprep.subr.bf16.mxu0 %v6075_v45  ;;  %v6126_v45 = vld [vmem:[%s7965_s3 + $0x244] ss:$8 sps:$4 sm:$0xff]   ;;  %1866 = vmatpush1.bf16.msra.mxu1 %v6255_v44  ;;  %v6219_v44 = vld [vmem:[%s7965_s3 + $0x3d0] ss:$8 sps:$4 sm:$0xff]  }
  0xa9   : > { %1399 = vmatpush1.bf16.msra.mxu0 %v6073_v46  ;;  %v6124_v46 = vld [vmem:[%s7965_s3 + $0x240] ss:$8 sps:$4 sm:$0xff]  }
  0xaa   : > { %1400 = vmatprep.subr.bf16.mxu0 %v6078_v47  ;;  %v6259_v47 = vld [vmem:[%s7967_s5 + $0xd4] ss:$8 sps:$4 sm:$0xff]  }
  0xab   : > { %1867 = vmatprep.subr.bf16.mxu1 %v6259_v47  ;;  %v6233_v47 = vld [vmem:[%s7965_s3 + $0x3f4] ss:$8 sps:$4 sm:$0xff]  }
  0xad   : > { %1401 = vmatpush1.bf16.msra.mxu0 %v6076_v48  ;;  %v6261_v48 = vld [vmem:[%s7967_s5 + $0xd0] ss:$8 sps:$4 sm:$0xff]  }
  0xae   : > { %1402 = vmatprep.subr.bf16.mxu0 %v6081_v49  ;;  %v6129_v49 = vld [vmem:[%s7965_s3 + $0x254] ss:$8 sps:$4 sm:$0xff]   ;;  %1868 = vmatpush1.bf16.msra.mxu1 %v6261_v48  ;;  %v6231_v48 = vld [vmem:[%s7965_s3 + $0x3f0] ss:$8 sps:$4 sm:$0xff]  }
  0xb1   : > { %1403 = vmatpush1.bf16.msra.mxu0 %v6079_v50  ;;  %v6127_v50 = vld [vmem:[%s7965_s3 + $0x250] ss:$8 sps:$4 sm:$0xff]  }
  0xb2   : > { %1404 = vmatprep.subr.bf16.mxu0 %v6084_v51  ;;  %v6265_v51 = vld [vmem:[%s7967_s5 + $0xe4] ss:$8 sps:$4 sm:$0xff]  }
  0xb3   : > { %1869 = vmatprep.subr.bf16.mxu1 %v6265_v51  ;;  %v6238_v51 = vld [vmem:[%s7967_s5 + $0x100] ss:$8 sps:$4 sm:$0xff]  }
  0xb5   : > { %1405 = vmatpush1.bf16.msra.mxu0 %v6082_v52  ;;  %v6267_v52 = vld [vmem:[%s7967_s5 + $0xe0] ss:$8 sps:$4 sm:$0xff]  }
  0xb6   : > { %1406 = vmatprep.subr.bf16.mxu0 %v6087_v53  ;;  %v6132_v53 = vld [vmem:[%s7965_s3 + $0x264] ss:$8 sps:$4 sm:$0xff]   ;;  %1870 = vmatpush1.bf16.msra.mxu1 %v6267_v52  ;;  %v6246_v52 = vld [vmem:[%s7967_s5 + $0x114] ss:$8 sps:$4 sm:$0xff]  }
  0xb9   : > { %1407 = vmatpush1.bf16.msra.mxu0 %v6085_v54  ;;  %v6130_v54 = vld [vmem:[%s7965_s3 + $0x260] ss:$8 sps:$4 sm:$0xff]  }
  0xba   : > { %1408 = vmatprep.subr.bf16.mxu0 %v6090_v55  ;;  %v6271_v55 = vld [vmem:[%s7967_s5 + $0xf4] ss:$8 sps:$4 sm:$0xff]  }
  0xbb   : > { %1871 = vmatprep.subr.bf16.mxu1 %v6271_v55  ;;  %v6252_v55 = vld [vmem:[%s7967_s5 + $0x124] ss:$8 sps:$4 sm:$0xff]  }
  0xbc   : > { %1872 = vmatpush1.bf16.msra.mxu1 %v6273_v56  ;;  %v6250_v56 = vld [vmem:[%s7967_s5 + $0x120] ss:$8 sps:$4 sm:$0xff]  }
  0xbd   : > { %1409 = vmatpush1.bf16.msra.mxu0 %v6088_v58  ;;  %v6133_v58 = vld [vmem:[%s7965_s3 + $0x270] ss:$8 sps:$4 sm:$0xff]  }
  0xbe   : > { %1410 = vmatprep.subr.bf16.mxu0 %v6093_v59  ;;  %v6277_v59 = vld [vmem:[%s7551_s18] ss:$12 sps:$4 sm:$0xff]  }
  0xbf   : > { %1874 = vmatmul.mubr.bf16.vlgmr.msra.gmra.mrb[0].mxu1 %v6277_v59  ;;  %v6264_v59 = vld [vmem:[%s7967_s5 + $0x144] ss:$8 sps:$4 sm:$0xff]  }
  0xc1   : > { %1411 = vmatpush1.bf16.msra.mxu0 %v6091_v62  ;;  %v6136_v62 = vld [vmem:[%s7965_s3 + $0x280] ss:$8 sps:$4 sm:$0xff]  }
  0xc2   : > { %1412 = vmatprep.subr.bf16.mxu0 %v6096_v63  ;;  %v6141_v63 = vld [vmem:[%s7965_s3 + $0x294] ss:$8 sps:$4 sm:$0xff]  }
  0xc5   : > { %1413 = vmatpush1.bf16.msra.mxu0 %v6094_v2  ;;  %v6142_v2 = vld [vmem:[%s7965_s3 + $0x2a0] ss:$8 sps:$4 sm:$0xff]  }
  0xc6   : > { %1414 = vmatprep.subr.bf16.mxu0 %v6099_v3  ;;  %v6147_v3 = vld [vmem:[%s7965_s3 + $0x2b4] ss:$8 sps:$4 sm:$0xff]  }
  0xc9   : > { %1415 = vmatpush1.bf16.msra.mxu0 %v6097_v6  ;;  %v6148_v6 = vld [vmem:[%s7965_s3 + $0x2c0] ss:$8 sps:$4 sm:$0xff]  }
  0xca   : > { %1416 = vmatprep.subr.bf16.mxu0 %v6102_v7  ;;  %v6153_v7 = vld [vmem:[%s7965_s3 + $0x2d4] ss:$8 sps:$4 sm:$0xff]  }
  0xcd   : > { %1417 = vmatpush1.bf16.msra.mxu0 %v6100_v10  ;;  %v6154_v10 = vld [vmem:[%s7965_s3 + $0x2e0] ss:$8 sps:$4 sm:$0xff]  }
  0xce   : > { %1418 = vmatprep.subr.bf16.mxu0 %v6105_v11  ;;  %v6159_v11 = vld [vmem:[%s7965_s3 + $0x2f4] ss:$8 sps:$4 sm:$0xff]  }
  0xd1   : > { %1419 = vmatpush1.bf16.msra.mxu0 %v6103_v14  ;;  %v7607_v14 = vld [vmem:[%s7222_s20 + $0x18] sm:$0xff] }
  0xd2   : > { %1420 = vmatprep.subr.bf16.mxu0 %v6108_v15  ;;  %v7610_v15 = vld [vmem:[%s7222_s20 + $0x38] sm:$0xff] }
  0xd5   : > { %1421 = vmatpush1.bf16.msra.mxu0 %v6106_v18  ;;  %v6165_v18 = vld [vmem:[%s7965_s3 + $0x314] ss:$8 sps:$4 sm:$0xff]  }
  0xd6   : > { %1422 = vmatprep.subr.bf16.mxu0 %v6111_v19  ;;  %v5323_v19 = vcombine.high %v7607_v14, %v7610_v15 }
  0xd9   : > { %1423 = vmatpush1.bf16.msra.mxu0 %v6109_v22  ;;  %v6166_v22 = vld [vmem:[%s7965_s3 + $0x320] ss:$8 sps:$4 sm:$0xff]  }
  0xda   : > { %1435 = vmatprep.subr.bf16.mxu0 %v6114_v23  ;;  %v6171_v23 = vld [vmem:[%s7965_s3 + $0x334] ss:$8 sps:$4 sm:$0xff]  }
  0xdc   : > { %1425 = vmatmul.mubr.bf16.vlgmr.msra.gmra.mrb[0].mxu0 %v5318_v28  ;;  %v6175_v28 = vld [vmem:[%s7965_s3 + $0x350] ss:$8 sps:$4 sm:$0xff]  }
  0xdd   : > { %1436 = vmatpush1.bf16.msra.mxu0 %v6112_v29  ;;  %1467 = vmatprep.mubr.bf16.mxu0 %v5321_v30  ;;  %v6180_v29 = vld [vmem:[%s7965_s3 + $0x364] ss:$8 sps:$4 sm:$0xff]   ;;  %v6178_v30 = vld [vmem:[%s7965_s3 + $0x360] ss:$8 sps:$4 sm:$0xff]  }
  0xde   : > { %1437 = vmatprep.subr.bf16.mxu0 %v6117_v32  ;;  %v6183_v32 = vld [vmem:[%s7965_s3 + $0x370] ss:$8 sps:$4 sm:$0xff]  }
  0xe1   : > { %1438 = vmatpush1.bf16.msra.mxu0 %v6115_v34  ;;  %v6189_v34 = vld [vmem:[%s7965_s3 + $0x380] ss:$8 sps:$4 sm:$0xff]  }
  0xe2   : > { %1439 = vmatprep.subr.bf16.mxu0 %v6120_v37  ;;  %v6203_v37 = vld [vmem:[%s7965_s3 + $0x3a4] ss:$8 sps:$4 sm:$0xff]  }
  0xe5   : > { %1440 = vmatpush1.bf16.msra.mxu0 %v6118_v38  ;;  %v6201_v38 = vld [vmem:[%s7965_s3 + $0x3a0] ss:$8 sps:$4 sm:$0xff]  }
  0xe6   : > { %1441 = vmatprep.subr.bf16.mxu0 %v6123_v41  ;;  %v6215_v41 = vld [vmem:[%s7965_s3 + $0x3c4] ss:$8 sps:$4 sm:$0xff]  }
  0xe9   : > { %1442 = vmatpush1.bf16.msra.mxu0 %v6121_v42  ;;  %v6213_v42 = vld [vmem:[%s7965_s3 + $0x3c0] ss:$8 sps:$4 sm:$0xff]  }
  0xea   : > { %1443 = vmatprep.subr.bf16.mxu0 %v6126_v45  ;;  %v6227_v45 = vld [vmem:[%s7965_s3 + $0x3e4] ss:$8 sps:$4 sm:$0xff]  }
  0xed   : > { %1444 = vmatpush1.bf16.msra.mxu0 %v6124_v46  ;;  %v6225_v46 = vld [vmem:[%s7965_s3 + $0x3e0] ss:$8 sps:$4 sm:$0xff]  }
  0xee   : > { %1445 = vmatprep.subr.bf16.mxu0 %v6129_v49  ;;  %v6240_v49 = vld [vmem:[%s7967_s5 + $0x104] ss:$8 sps:$4 sm:$0xff]  }
  0xf1   : > { %1446 = vmatpush1.bf16.msra.mxu0 %v6127_v50  ;;  %v5322_v50 = vcombine.low %v7607_v14, %v7610_v15  ;;  %v6290_v14 = vld [vmem:[#allocation2 + $0x20] ss:$16 sps:$4 sm:$0xff]  }
  0xf2   : > { %1447 = vmatprep.subr.bf16.mxu0 %v6132_v53  ;;  %v6244_v53 = vld [vmem:[%s7967_s5 + $0x110] ss:$8 sps:$4 sm:$0xff]  }
  0xf3   : > { %v6293_v15 = vld [vmem:[#allocation4 + $0x20] ss:$16 sps:$4 sm:$0xff]  }
  0xf5   : > { %1448 = vmatpush1.bf16.msra.mxu0 %v6130_v54  ;;  %v6993_v54 = vmov 0  }
  0xf6   : > { %1449 = vmatprep.subr.bf16.mxu0 %v6135_v57  ;;  %v6258_v57 = vld [vmem:[%s7967_s5 + $0x134] ss:$8 sps:$4 sm:$0xff]  }
  0xf9   : > { %1450 = vmatpush1.bf16.msra.mxu0 %v6133_v58  ;;  %v6256_v58 = vld [vmem:[%s7967_s5 + $0x130] ss:$8 sps:$4 sm:$0xff]  }
  0xfa   : > { %1451 = vmatprep.subr.bf16.mxu0 %v6138_v60  ;;  %v6262_v60 = vld [vmem:[%s7967_s5 + $0x140] ss:$8 sps:$4 sm:$0xff]  }
  0xfd   : > { %1452 = vmatpush1.bf16.msra.mxu0 %v6136_v62  ;;  %v6268_v62 = vld [vmem:[%s7967_s5 + $0x150] ss:$8 sps:$4 sm:$0xff]  }
  0xfe   : > { %1453 = vmatprep.subr.bf16.mxu0 %v6141_v63  ;;  %v6276_v63 = vld [vmem:[%s7967_s5 + $0x164] ss:$8 sps:$4 sm:$0xff]  }
 0x101   : > { %1454 = vmatpush1.bf16.msra.mxu0 %v6139_v0  ;;  %v6274_v0 = vld [vmem:[%s7967_s5 + $0x160] ss:$8 sps:$4 sm:$0xff]  }
 0x102   : > { %1455 = vmatprep.subr.bf16.mxu0 %v6144_v1  ;;  %v6282_v1 = vld [vmem:[%s7967_s5 + $0x174] ss:$8 sps:$4 sm:$0xff]  }
 0x105   : > { %1456 = vmatpush1.bf16.msra.mxu0 %v6142_v2  ;;  %v6280_v2 = vld [vmem:[%s7967_s5 + $0x170] ss:$8 sps:$4 sm:$0xff]  }
 0x106   : > { %1457 = vmatprep.subr.bf16.mxu0 %v6147_v3  ;;  %v6283_v3 = vld [vmem:[%s7551_s18 + $0x8] ss:$12 sps:$4 sm:$0xff]   ;;  %s519_s18 = scalar_lea.vmem %s7989_s19, %s5314_s15 }
 0x109   : > { %1458 = vmatpush1.bf16.msra.mxu0 %v6145_v4 }
 0x10a   : > { %1459 = vmatprep.subr.bf16.mxu0 %v6150_v5 }
 0x10d   : > { %1460 = vmatpush1.bf16.msra.mxu0 %v6148_v6 }
 0x10e   : > { %1461 = vmatprep.subr.bf16.mxu0 %v6153_v7 }
 0x111   : > { %1462 = vmatpush1.bf16.msra.mxu0 %v6151_v8  ;;  %v6284_v8 = vld [vmem:[#allocation2] ss:$16 sps:$4 sm:$0xff]  }
 0x112   : > { %1463 = vmatprep.subr.bf16.mxu0 %v6156_v9  ;;  %v6286_v9 = vld [vmem:[#allocation2 + $0x4] ss:$16 sps:$4 sm:$0xff]  }
 0x113   : > { %2738 = vmatprep.subr.bf16.mxu1 %v6286_v9  ;;  %v659_v9 = vlaneseq }
 0x114   : > { %2739 = vmatpush1.bf16.msra.mxu1 %v6284_v8 }
 0x115   : > { %1464 = vmatpush1.bf16.msra.mxu0 %v6154_v10  ;;  %v6287_v10 = vld [vmem:[#allocation4] ss:$16 sps:$4 sm:$0xff]   ;;  %vm5189_vm4 = vcmp.lt.s32.totalorder %v659_v9, 512 }
 0x116   : > { %1465 = vmatprep.subr.bf16.mxu0 %v6159_v11  ;;  %v6289_v11 = vld [vmem:[#allocation4 + $0x4] ss:$16 sps:$4 sm:$0xff]  }
 0x119   : > { %1466 = vmatpush1.bf16.msra.mxu0 %v6157_v12  ;;  %v6292_v12 = vld [vmem:[#allocation2 + $0x24] ss:$16 sps:$4 sm:$0xff]  }
 0x11a   : > { %1478 = vmatprep.subr.bf16.mxu0 %v6162_v13  ;;  %v6295_v13 = vld [vmem:[#allocation4 + $0x24] ss:$16 sps:$4 sm:$0xff]   ;;  %2740 = vmatprep.subr.bf16.mxu1 %v6292_v12 }
 0x11b   : > { %2741 = vmatpush1.bf16.msra.mxu1 %v6290_v14 }
 0x11c   : > { %1468 = vmatmul.mubr.bf16.vlgmr.msra.gmra.mrb[0].mxu0 %v5320_v17  ;;  %v6301_v17 = vld [vmem:[#allocation4 + $0x44] ss:$16 sps:$4 sm:$0xff]  }
 0x11d   : > { %1479 = vmatpush1.bf16.msra.mxu0 %v6160_v16  ;;  %1510 = vmatprep.mubr.bf16.mxu0 %v5323_v19  ;;  %v6298_v16 = vld [vmem:[#allocation2 + $0x44] ss:$16 sps:$4 sm:$0xff]   ;;  %v6299_v19 = vld [vmem:[#allocation4 + $0x40] ss:$16 sps:$4 sm:$0xff]  }
 0x11e   : > { %1480 = vmatprep.subr.bf16.mxu0 %v6165_v18  ;;  %v6296_v18 = vld [vmem:[#allocation2 + $0x40] ss:$16 sps:$4 sm:$0xff]   ;;  %2742 = vmatprep.subr.bf16.mxu1 %v6298_v16 }
 0x11f   : > { %2743 = vmatpush1.bf16.msra.mxu1 %v6296_v18 }
 0x121   : > { %1481 = vmatpush1.bf16.msra.mxu0 %v6163_v20  ;;  %v6304_v20 = vld [vmem:[#allocation2 + $0x64] ss:$16 sps:$4 sm:$0xff]  }
 0x122   : > { %1482 = vmatprep.subr.bf16.mxu0 %v6168_v21  ;;  %v6307_v21 = vld [vmem:[#allocation4 + $0x64] ss:$16 sps:$4 sm:$0xff]   ;;  %2744 = vmatprep.subr.bf16.mxu1 %v6304_v20 }
 0x125   : > { %1483 = vmatpush1.bf16.msra.mxu0 %v6166_v22  ;;  %v6302_v22 = vld [vmem:[#allocation2 + $0x60] ss:$16 sps:$4 sm:$0xff]  }
 0x126   : > { %1484 = vmatprep.subr.bf16.mxu0 %v6171_v23  ;;  %v6305_v23 = vld [vmem:[#allocation4 + $0x60] ss:$16 sps:$4 sm:$0xff]   ;;  %2745 = vmatpush1.bf16.msra.mxu1 %v6302_v22 }
 0x129   : > { %1485 = vmatpush1.bf16.msra.mxu0 %v6169_v24  ;;  %v6310_v24 = vld [vmem:[#allocation2 + $0x84] ss:$16 sps:$4 sm:$0xff]  }
 0x12a   : > { %1486 = vmatprep.subr.bf16.mxu0 %v6174_v25  ;;  %v6313_v25 = vld [vmem:[#allocation4 + $0x84] ss:$16 sps:$4 sm:$0xff]   ;;  %2746 = vmatprep.subr.bf16.mxu1 %v6310_v24 }
 0x12d   : > { %1487 = vmatpush1.bf16.msra.mxu0 %v6172_v26  ;;  %v6308_v26 = vld [vmem:[#allocation2 + $0x80] ss:$16 sps:$4 sm:$0xff]  }
 0x12e   : > { %1488 = vmatprep.subr.bf16.mxu0 %v6177_v27  ;;  %v6311_v27 = vld [vmem:[#allocation4 + $0x80] ss:$16 sps:$4 sm:$0xff]   ;;  %2747 = vmatpush1.bf16.msra.mxu1 %v6308_v26 }
 0x131   : > { %1489 = vmatpush1.bf16.msra.mxu0 %v6175_v28  ;;  %v6316_v28 = vld [vmem:[#allocation2 + $0xa4] ss:$16 sps:$4 sm:$0xff]  }
 0x132   : > { %1490 = vmatprep.subr.bf16.mxu0 %v6180_v29  ;;  %v6319_v29 = vld [vmem:[#allocation4 + $0xa4] ss:$16 sps:$4 sm:$0xff]   ;;  %2748 = vmatprep.subr.bf16.mxu1 %v6316_v28 }
 0x135   : > { %1491 = vmatpush1.bf16.msra.mxu0 %v6178_v30  ;;  %v6314_v30 = vld [vmem:[#allocation2 + $0xa0] ss:$16 sps:$4 sm:$0xff]  }
 0x136   : > { %1492 = vmatprep.subr.bf16.mxu0 %v6185_v31  ;;  %v6317_v31 = vld [vmem:[#allocation4 + $0xa0] ss:$16 sps:$4 sm:$0xff]   ;;  %2749 = vmatpush1.bf16.msra.mxu1 %v6314_v30 }
 0x137   : > { %v6371_v30 = vld [vmem:[#allocation4 + $0x1c0] ss:$16 sps:$4 sm:$0xff]  }
 0x139   : > { %1493 = vmatpush1.bf16.msra.mxu0 %v6183_v32  ;;  %v6322_v32 = vld [vmem:[#allocation2 + $0xc4] ss:$16 sps:$4 sm:$0xff]  }
 0x13a   : > { %1494 = vmatprep.subr.bf16.mxu0 %v6191_v33  ;;  %v6325_v33 = vld [vmem:[#allocation4 + $0xc4] ss:$16 sps:$4 sm:$0xff]   ;;  %2750 = vmatprep.subr.bf16.mxu1 %v6322_v32  ;;  %v6374_v32 = vld [vmem:[#allocation2 + $0x1e0] ss:$16 sps:$4 sm:$0xff]  }
 0x13d   : > { %1495 = vmatpush1.bf16.msra.mxu0 %v6189_v34  ;;  %v6320_v34 = vld [vmem:[#allocation2 + $0xc0] ss:$16 sps:$4 sm:$0xff]  }
 0x13e   : > { %1496 = vmatprep.subr.bf16.mxu0 %v6197_v35  ;;  %v6323_v35 = vld [vmem:[#allocation4 + $0xc0] ss:$16 sps:$4 sm:$0xff]   ;;  %2751 = vmatpush1.bf16.msra.mxu1 %v6320_v34  ;;  %v6382_v34 = vld [vmem:[#allocation2 + $0x204] ss:$16 sps:$4 sm:$0xff]  }
 0x141   : > { %1497 = vmatpush1.bf16.msra.mxu0 %v6195_v36  ;;  %v6328_v36 = vld [vmem:[#allocation2 + $0xe4] ss:$16 sps:$4 sm:$0xff]  }
 0x142   : > { %1498 = vmatprep.subr.bf16.mxu0 %v6203_v37  ;;  %v6331_v37 = vld [vmem:[#allocation4 + $0xe4] ss:$16 sps:$4 sm:$0xff]   ;;  %2752 = vmatprep.subr.bf16.mxu1 %v6328_v36  ;;  %v657_v36 = vld [vmem:[%s7966_s4] sm:$0x3] }
 0x145   : > { %1499 = vmatpush1.bf16.msra.mxu0 %v6201_v38  ;;  %v6326_v38 = vld [vmem:[#allocation2 + $0xe0] ss:$16 sps:$4 sm:$0xff]  }
 0x146   : > { %1500 = vmatprep.subr.bf16.mxu0 %v6209_v39  ;;  %v6329_v39 = vld [vmem:[#allocation4 + $0xe0] ss:$16 sps:$4 sm:$0xff]   ;;  %2753 = vmatpush1.bf16.msra.mxu1 %v6326_v38 }
 0x149   : > { %1501 = vmatpush1.bf16.msra.mxu0 %v6207_v40  ;;  %v6334_v40 = vld [vmem:[#allocation2 + $0x104] ss:$16 sps:$4 sm:$0xff]  }
 0x14a   : > { %1502 = vmatprep.subr.bf16.mxu0 %v6215_v41  ;;  %v6337_v41 = vld [vmem:[#allocation4 + $0x104] ss:$16 sps:$4 sm:$0xff]   ;;  %2754 = vmatprep.subr.bf16.mxu1 %v6334_v40 }
 0x14d   : > { %1503 = vmatpush1.bf16.msra.mxu0 %v6213_v42  ;;  %v6332_v42 = vld [vmem:[#allocation2 + $0x100] ss:$16 sps:$4 sm:$0xff]  }
 0x14e   : > { %1504 = vmatprep.subr.bf16.mxu0 %v6221_v43  ;;  %v6335_v43 = vld [vmem:[#allocation4 + $0x100] ss:$16 sps:$4 sm:$0xff]   ;;  %2755 = vmatpush1.bf16.msra.mxu1 %v6332_v42 }
 0x151   : > { %1505 = vmatpush1.bf16.msra.mxu0 %v6219_v44  ;;  %v6340_v44 = vld [vmem:[#allocation2 + $0x124] ss:$16 sps:$4 sm:$0xff]  }
 0x152   : > { %1506 = vmatprep.subr.bf16.mxu0 %v6227_v45  ;;  %v6343_v45 = vld [vmem:[#allocation4 + $0x124] ss:$16 sps:$4 sm:$0xff]   ;;  %2756 = vmatprep.subr.bf16.mxu1 %v6340_v44 }
 0x155   : > { %1507 = vmatpush1.bf16.msra.mxu0 %v6225_v46  ;;  %v6338_v46 = vld [vmem:[#allocation2 + $0x120] ss:$16 sps:$4 sm:$0xff]  }
 0x156   : > { %1508 = vmatprep.subr.bf16.mxu0 %v6233_v47  ;;  %v6341_v47 = vld [vmem:[#allocation4 + $0x120] ss:$16 sps:$4 sm:$0xff]   ;;  %2757 = vmatpush1.bf16.msra.mxu1 %v6338_v46 }
 0x159   : > { %1509 = vmatpush1.bf16.msra.mxu0 %v6231_v48  ;;  %v6346_v48 = vld [vmem:[#allocation2 + $0x144] ss:$16 sps:$4 sm:$0xff]  }
 0x15a   : > { %1884 = vmatprep.subr.bf16.mxu0 %v6240_v49  ;;  %v6349_v49 = vld [vmem:[#allocation4 + $0x144] ss:$16 sps:$4 sm:$0xff]   ;;  %2758 = vmatprep.subr.bf16.mxu1 %v6346_v48 }
 0x15c   : > { %1511 = vmatmul.mubr.bf16.vlgmr.msra.gmra.mrb[0].mxu0 %v5322_v50  ;;  %v6344_v50 = vld [vmem:[#allocation2 + $0x140] ss:$16 sps:$4 sm:$0xff]  }
 0x15d   : > { %1885 = vmatpush1.bf16.msra.mxu0 %v6238_v51  ;;  %1916 = vmatprep.mubr.bf16.mxu0 %v6993_v54  ;;  %v6347_v51 = vld [vmem:[#allocation4 + $0x140] ss:$16 sps:$4 sm:$0xff]  }
 0x15e   : > { %1886 = vmatprep.subr.bf16.mxu0 %v6246_v52  ;;  %v6352_v52 = vld [vmem:[#allocation2 + $0x164] ss:$16 sps:$4 sm:$0xff]   ;;  %2759 = vmatpush1.bf16.msra.mxu1 %v6344_v50 }
 0x15f   : > { %2760 = vmatprep.subr.bf16.mxu1 %v6352_v52 }
 0x161   : > { %1887 = vmatpush1.bf16.msra.mxu0 %v6244_v53  ;;  %v6355_v53 = vld [vmem:[#allocation4 + $0x164] ss:$16 sps:$4 sm:$0xff]  }
 0x162   : > { %1888 = vmatprep.subr.bf16.mxu0 %v6252_v55  ;;  %v6350_v55 = vld [vmem:[#allocation2 + $0x160] ss:$16 sps:$4 sm:$0xff]  }
 0x163   : > { %2761 = vmatpush1.bf16.msra.mxu1 %v6350_v55  ;;  %v6380_v55 = vld [vmem:[#allocation2 + $0x200] ss:$16 sps:$4 sm:$0xff]  }
 0x165   : > { %1889 = vmatpush1.bf16.msra.mxu0 %v6250_v56  ;;  %v6353_v56 = vld [vmem:[#allocation4 + $0x160] ss:$16 sps:$4 sm:$0xff]  }
 0x166   : > { %1890 = vmatprep.subr.bf16.mxu0 %v6258_v57  ;;  %v6358_v57 = vld [vmem:[#allocation2 + $0x184] ss:$16 sps:$4 sm:$0xff]  }
 0x167   : > { %2762 = vmatprep.subr.bf16.mxu1 %v6358_v57 }
 0x169   : > { %1891 = vmatpush1.bf16.msra.mxu0 %v6256_v58  ;;  %v6361_v58 = vld [vmem:[#allocation4 + $0x184] ss:$16 sps:$4 sm:$0xff]  }
 0x16a   : > { %1892 = vmatprep.subr.bf16.mxu0 %v6264_v59  ;;  %v6356_v59 = vld [vmem:[#allocation2 + $0x180] ss:$16 sps:$4 sm:$0xff]  }
 0x16b   : > { %2763 = vmatpush1.bf16.msra.mxu1 %v6356_v59  ;;  %v6391_v59 = vld [vmem:[#allocation4 + $0x224] ss:$16 sps:$4 sm:$0xff]  }
 0x16d   : > { %1893 = vmatpush1.bf16.msra.mxu0 %v6262_v60  ;;  %v6359_v60 = vld [vmem:[#allocation4 + $0x180] ss:$16 sps:$4 sm:$0xff]  }
 0x16e   : > { %1894 = vmatprep.subr.bf16.mxu0 %v6270_v61  ;;  %v6364_v61 = vld [vmem:[#allocation2 + $0x1a4] ss:$16 sps:$4 sm:$0xff]  }
 0x16f   : > { %2764 = vmatprep.subr.bf16.mxu1 %v6364_v61  ;;  %v6386_v61 = vld [vmem:[#allocation2 + $0x220] ss:$16 sps:$4 sm:$0xff]  }
 0x171   : > { %1895 = vmatpush1.bf16.msra.mxu0 %v6268_v62  ;;  %v6367_v62 = vld [vmem:[#allocation4 + $0x1a4] ss:$16 sps:$4 sm:$0xff]  }
 0x172   : > { %1896 = vmatprep.subr.bf16.mxu0 %v6276_v63  ;;  %v6362_v63 = vld [vmem:[#allocation2 + $0x1a0] ss:$16 sps:$4 sm:$0xff]  }
 0x173   : > { %2765 = vmatpush1.bf16.msra.mxu1 %v6362_v63  ;;  %v6394_v63 = vld [vmem:[#allocation2 + $0x244] ss:$16 sps:$4 sm:$0xff]  }
 0x175   : > { %1897 = vmatpush1.bf16.msra.mxu0 %v6274_v0  ;;  %v6365_v0 = vld [vmem:[#allocation4 + $0x1a0] ss:$16 sps:$4 sm:$0xff]  }
 0x176   : > { %1898 = vmatprep.subr.bf16.mxu0 %v6282_v1 }
 0x179   : > { %1899 = vmatpush1.bf16.msra.mxu0 %v6280_v2 }
 0x17a   : > { %3700 = vmatprep.subr.bf16.mxu0 %v6289_v11  ;;  %v1573_v11 = vld [vmem:[%s7968_s6] sm:$0x3] }
 0x17c   : > { %1917 = vmatmul.mubr.bf16.vlgmr.msra.gmra.mrb[4].mxu0 %v6283_v3 }
 0x17d   : > { %3701 = vmatpush1.bf16.msra.mxu0 %v6287_v10  ;;  %v7770_v10 = vshrl.u32 %v659_v9, 7 }
 0x17e   : > { %3702 = vmatprep.subr.bf16.mxu0 %v6295_v13 }
 0x17f   : > { %v7776_v12 = vsub.s32 0, %v7770_v10  ;;  %v7779_v13 = vsub.s32 1, %v7770_v10 }
 0x181   : > { %3703 = vmatpush1.bf16.msra.mxu0 %v6293_v15  ;;  %v1578_v14 = vrot.slane %v1573_v11, %v7776_v12  ;;  %v1582_v15 = vrot.slane %v1573_v11, %v7779_v13  ;;  %v6398_v11 = vld [vmem:[#allocation2 + $0x260] ss:$16 sps:$4 sm:$0xff]  }
 0x182   : > { %3704 = vmatprep.subr.bf16.mxu0 %v6301_v17 }
 0x185   : > { %3705 = vmatpush1.bf16.msra.mxu0 %v6299_v19 }
 0x186   : > { %3706 = vmatprep.subr.bf16.mxu0 %v6307_v21 }
 0x189   : > { %3707 = vmatpush1.bf16.msra.mxu0 %v6305_v23 }
 0x18a   : > { %3708 = vmatprep.subr.bf16.mxu0 %v6313_v25 }
 0x18d   : > { %3709 = vmatpush1.bf16.msra.mxu0 %v6311_v27 }
 0x18e   : > { %3710 = vmatprep.subr.bf16.mxu0 %v6319_v29  ;;  %v6373_v29 = vld [vmem:[#allocation4 + $0x1c4] ss:$16 sps:$4 sm:$0xff]  }
 0x191   : > { %3711 = vmatpush1.bf16.msra.mxu0 %v6317_v31  ;;  %v6379_v31 = vld [vmem:[#allocation4 + $0x1e4] ss:$16 sps:$4 sm:$0xff]  }
 0x192   : > { %v7761_v4 = vpop.f32.mrb[0].mxu1  ;;  %3712 = vmatprep.subr.bf16.mxu0 %v6325_v33  ;;  %v6377_v33 = vld [vmem:[#allocation4 + $0x1e0] ss:$16 sps:$4 sm:$0xff]  }
 0x193   : > { %v7763_v5 = vpop.f32.mrb[1].mxu1  ;;  %v1876_v16 = vadd.f32 %v7761_v4, %v1578_v14 }
 0x194   : > { %v7765_v6 = vpop.f32.mrb[2].mxu1  ;;  %v1878_v17 = vadd.f32 %v7763_v5, %v1582_v15  ;;  %v6370_v5 = vld [vmem:[#allocation2 + $0x1c4] ss:$16 sps:$4 sm:$0xff]  }
 0x195   : > { %v7767_v7 = vpop.f32.mrb[3].mxu1  ;;  %3713 = vmatpush1.bf16.msra.mxu0 %v6323_v35  ;;  %v1880_v19 = vadd.f32 %v7765_v6, %v1578_v14  ;;  %v6368_v6 = vld [vmem:[#allocation2 + $0x1c0] ss:$16 sps:$4 sm:$0xff]   ;;  %2766 = vmatprep.subr.bf16.mxu1 %v6370_v5  ;;  %v6385_v35 = vld [vmem:[#allocation4 + $0x204] ss:$16 sps:$4 sm:$0xff]  }
 0x196   : > { %3714 = vmatprep.subr.bf16.mxu0 %v6331_v37  ;;  %v1882_v22 = vadd.f32 %v7767_v7, %v1582_v15  ;;  %2767 = vmatpush1.bf16.msra.mxu1 %v6368_v6  ;;  %v6376_v7 = vld [vmem:[#allocation2 + $0x1e4] ss:$16 sps:$4 sm:$0xff]   ;;  %v662_v37 = vrot.slane %v657_v36, %v7776_v12  ;;  %v6401_v14 = vld [vmem:[#allocation4 + $0x260] ss:$16 sps:$4 sm:$0xff]  }
 0x197   : > { %2768 = vmatprep.subr.bf16.mxu1 %v6376_v7  ;;  %v6406_v15 = vld [vmem:[#allocation2 + $0x284] ss:$16 sps:$4 sm:$0xff]   ;;  %v6425_v6 = vld [vmem:[#allocation4 + $0x2e0] ss:$16 sps:$4 sm:$0xff]  }
 0x198   : > { %v6427_v5 = vld [vmem:[#allocation4 + $0x2e4] ss:$16 sps:$4 sm:$0xff]  }
 0x199   : > { %3715 = vmatpush1.bf16.msra.mxu0 %v6329_v39  ;;  %v666_v39 = vrot.slane %v657_v36, %v7779_v13  ;;  %v6433_v7 = vld [vmem:[#allocation4 + $0x304] ss:$16 sps:$4 sm:$0xff]   ;;  %v6437_v36 = vld [vmem:[#allocation4 + $0x320] ss:$16 sps:$4 sm:$0xff]  }
 0x19a   : > { %3716 = vmatprep.subr.bf16.mxu0 %v6337_v41  ;;  %2769 = vmatpush1.bf16.msra.mxu1 %v6374_v32  ;;  %v6431_v32 = vld [vmem:[#allocation4 + $0x300] ss:$16 sps:$4 sm:$0xff]  }
 0x19b   : > { %2781 = vmatprep.subr.bf16.mxu1 %v6382_v34  ;;  %v6439_v34 = vld [vmem:[#allocation4 + $0x324] ss:$16 sps:$4 sm:$0xff]  }
 0x19d   : > { %3717 = vmatpush1.bf16.msra.mxu0 %v6335_v43 }
 0x19e   : > { %3718 = vmatprep.subr.bf16.mxu0 %v6343_v45 }
 0x1a1   : > { %3719 = vmatpush1.bf16.msra.mxu0 %v6341_v47 }
 0x1a2   : > { %3720 = vmatprep.subr.bf16.mxu0 %v6349_v49 }
 0x1a5   : > { %3721 = vmatpush1.bf16.msra.mxu0 %v6347_v51 }
 0x1a6   : > { %3722 = vmatprep.subr.bf16.mxu0 %v6355_v53 }
 0x1a9   : > { %3723 = vmatpush1.bf16.msra.mxu0 %v6353_v56  ;;  %v6383_v56 = vld [vmem:[#allocation4 + $0x200] ss:$16 sps:$4 sm:$0xff]  }
 0x1aa   : > { %3724 = vmatprep.subr.bf16.mxu0 %v6361_v58  ;;  %v6388_v58 = vld [vmem:[#allocation2 + $0x224] ss:$16 sps:$4 sm:$0xff]  }
 0x1ad   : > { %3725 = vmatpush1.bf16.msra.mxu0 %v6359_v60 }
 0x1ae   : > { %3726 = vmatprep.subr.bf16.mxu0 %v6367_v62  ;;  %v6389_v62 = vld [vmem:[#allocation4 + $0x220] ss:$16 sps:$4 sm:$0xff]  }
 0x1b1   : > { %3727 = vmatpush1.bf16.msra.mxu0 %v6365_v0  ;;  %v6397_v0 = vld [vmem:[#allocation4 + $0x244] ss:$16 sps:$4 sm:$0xff]  }
 0x1b2   : > { %3728 = vmatprep.subr.bf16.mxu0 %v6373_v29  ;;  %v6422_v29 = vld [vmem:[#allocation2 + $0x2e0] ss:$16 sps:$4 sm:$0xff]  }
 0x1b5   : > { %3729 = vmatpush1.bf16.msra.mxu0 %v6371_v30  ;;  %v6430_v30 = vld [vmem:[#allocation2 + $0x304] ss:$16 sps:$4 sm:$0xff]  }
 0x1b6   : > { %3730 = vmatprep.subr.bf16.mxu0 %v6379_v31  ;;  %v6428_v31 = vld [vmem:[#allocation2 + $0x300] ss:$16 sps:$4 sm:$0xff]  }
 0x1b9   : > { %3731 = vmatpush1.bf16.msra.mxu0 %v6377_v33  ;;  %v6436_v33 = vld [vmem:[#allocation2 + $0x324] ss:$16 sps:$4 sm:$0xff]  }
 0x1ba   : > { %3743 = vmatprep.subr.bf16.mxu0 %v6385_v35  ;;  %v6434_v35 = vld [vmem:[#allocation2 + $0x320] ss:$16 sps:$4 sm:$0xff]  }
 0x22f   : > { %v1512_v1 = vpop.f32.mrb[0].mxu0 }
 0x230   : > { %v1514_v2 = vpop.f32.mrb[1].mxu0  ;;  %v5896_v41 = vadd.f32 %v1512_v1, %v662_v37  ;;  %v6392_v1 = vld [vmem:[#allocation2 + $0x240] ss:$16 sps:$4 sm:$0xff]  }
 0x231   : > { %v1516_v3 = vpop.f32.mrb[2].mxu0  ;;  %v5897_v43 = vadd.f32 %v1514_v2, %v666_v39  ;;  %v6395_v2 = vld [vmem:[#allocation4 + $0x240] ss:$16 sps:$4 sm:$0xff]  }
 0x232   : > { %v1518_v8 = vpop.f32.mrb[3].mxu0  ;;  %v5898_v44 = vadd.f32 %v1516_v3, %v662_v37  ;;  %v6400_v3 = vld [vmem:[#allocation2 + $0x264] ss:$16 sps:$4 sm:$0xff]  }
 0x233   : > { %v5899_v45 = vadd.f32 %v1518_v8, %v666_v39  ;;  %v6403_v8 = vld [vmem:[#allocation4 + $0x264] ss:$16 sps:$4 sm:$0xff]   ;;  %v6440_v39 = vld [vmem:[#allocation2 + $0x340] ss:$16 sps:$4 sm:$0xff]  }
 0x234   : > { %v6442_v37 = vld [vmem:[#allocation2 + $0x344] ss:$16 sps:$4 sm:$0xff]  }
 0x24f   : > { %v1918_v18 = vpop.f32.mrb[4].mxu0 }
 0x250   : > { %v7786_v20 = vadd.f32 %v1918_v18, %v1876_v16  ;;  %v1920_v21 = vpop.f32.mrb[5].mxu0  ;;  %v6409_v16 = vld [vmem:[#allocation4 + $0x284] ss:$16 sps:$4 sm:$0xff]   ;;  %v6407_v18 = vld [vmem:[#allocation4 + $0x280] ss:$16 sps:$4 sm:$0xff]  }
 0x251   : > { %v1921_v23 = vadd.f32 %v1920_v21, %v1878_v17  ;;  %v1922_v24 = vpop.f32.mrb[6].mxu0  ;;  %v6404_v17 = vld [vmem:[#allocation2 + $0x280] ss:$16 sps:$4 sm:$0xff]   ;;  %v6415_v21 = vld [vmem:[#allocation4 + $0x2a4] ss:$16 sps:$4 sm:$0xff]  }
 0x252   : > { %v7789_v25 = vadd.f32 %v1922_v24, %v1880_v19  ;;  %v1924_v26 = vpop.f32.mrb[7].mxu0  ;;  %v6412_v19 = vld [vmem:[#allocation2 + $0x2a4] ss:$16 sps:$4 sm:$0xff]  }
 0x253   : > { %v1925_v27 = vadd.f32 %v1924_v26, %v1882_v22  ;;  %v1927_v28 = vadd.f32 %v1921_v23, %v7786_v20  ;;  %v6410_v22 = vld [vmem:[#allocation2 + $0x2a0] ss:$16 sps:$4 sm:$0xff]   ;;  %v6418_v24 = vld [vmem:[#allocation2 + $0x2c4] ss:$16 sps:$4 sm:$0xff]  }
 0x254   : > { %v6421_v26 = vld [vmem:[#allocation4 + $0x2c4] ss:$16 sps:$4 sm:$0xff]  }
 0x255   : > { %1928 = vadd.xlane.f32.xlu0 %v1927_v28  ;;  %v1930_v4 = vadd.f32 %v1925_v27, %v7789_v25  ;;  %v6419_v28 = vld [vmem:[#allocation4 + $0x2c0] ss:$16 sps:$4 sm:$0xff]  }
 0x259   : > { %1931 = vadd.xlane.f32.xlu0 %v1930_v4  ;;  %v6424_v4 = vld [vmem:[#allocation2 + $0x2e4] ss:$16 sps:$4 sm:$0xff]  }
 0x2e2   : > { %v1929_v38 = vpop.xlane.xlu0 %1928 }
 0x2e3   : > { %v7798_v40 = vmul.f32 0.00390625, %v1929_v38  ;;  %v6445_v38 = vld [vmem:[#allocation4 + $0x344] ss:$16 sps:$4 sm:$0xff]  }
 0x2e5   : > { %v7803_v47 = vadd.f32 %v5896_v41, %v7798_v40  ;;  %v7806_v48 = vadd.f32 %v5897_v43, %v7798_v40  ;;  %v7826_v57 = vadd.f32 %v7798_v40, %v1921_v23  ;;  %v6413_v23 = vld [vmem:[#allocation4 + $0x2a0] ss:$16 sps:$4 sm:$0xff]   ;;  %v6451_v43 = vld [vmem:[#allocation4 + $0x364] ss:$16 sps:$4 sm:$0xff]  }
 0x2e6   : > { %v1932_v42 = vpop.xlane.xlu0 %1931  ;;  %v6443_v41 = vld [vmem:[#allocation4 + $0x340] ss:$16 sps:$4 sm:$0xff]  }
 0x2e7   : > { %v7800_v46 = vmul.f32 0.00390625, %v1932_v42  ;;  %v6448_v42 = vld [vmem:[#allocation2 + $0x364] ss:$16 sps:$4 sm:$0xff]  }
 0x2e9   : > { %v7809_v49 = vadd.f32 %v5898_v44, %v7800_v46  ;;  %v7812_v50 = vadd.f32 %v5899_v45, %v7800_v46  ;;  %v7815_v51 = vadd.f32 %v7800_v46, %v1925_v27  ;;  %v6416_v27 = vld [vmem:[#allocation2 + $0x2c0] ss:$16 sps:$4 sm:$0xff]  }
 0x2ea   : > { %v6446_v44 = vld [vmem:[#allocation2 + $0x360] ss:$16 sps:$4 sm:$0xff]  }
 0x2eb   : > { %v7819_v52 = vpack.c.bf16 %v7809_v49, %v7803_v47  ;;  %v7823_v53 = vpack.c.bf16 %v7812_v50, %v7806_v48  ;;  %v7832_v60 = vpack.c.bf16 %v7815_v51, %v7826_v57  ;;  %v6449_v45 = vld [vmem:[#allocation4 + $0x360] ss:$16 sps:$4 sm:$0xff]  }
 0x2ed   : > { %2770 = vmatprep.mubr.bf16.mxu1 %v7823_v53  ;;  %3732 = vmatprep.mubr.bf16.mxu0 %v7823_v53 }
 0x2ee   : > { %2771 = vmatmul.mubr.bf16.vlgmr.msra.gmra.mrb[4].mxu1 %v7819_v52  ;;  %3733 = vmatmul.mubr.bf16.vlgmr.msra.gmra.mrb[8].mxu0 %v7819_v52 }
 0x2ef   : > { %2782 = vmatpush1.bf16.msra.mxu1 %v6380_v55  ;;  %3744 = vmatpush1.bf16.msra.mxu0 %v6383_v56  ;;  %v6454_v55 = vld [vmem:[#allocation2 + $0x384] ss:$16 sps:$4 sm:$0xff]  }
 0x2f0   : > { %2813 = vmatprep.mubr.bf16.mxu1 %v7832_v60  ;;  %3775 = vmatprep.mubr.bf16.mxu0 %v7832_v60  ;;  %v6457_v56 = vld [vmem:[#allocation4 + $0x384] ss:$16 sps:$4 sm:$0xff]  }
 0x2f1   : > { %2783 = vmatprep.subr.bf16.mxu1 %v6388_v58  ;;  %3745 = vmatprep.subr.bf16.mxu0 %v6391_v59  ;;  %v6452_v58 = vld [vmem:[#allocation2 + $0x380] ss:$16 sps:$4 sm:$0xff]  }
 0x2f2   : > { %v6455_v59 = vld [vmem:[#allocation4 + $0x380] ss:$16 sps:$4 sm:$0xff]  }
 0x2f3   : > { %2784 = vmatpush1.bf16.msra.mxu1 %v6386_v61  ;;  %3746 = vmatpush1.bf16.msra.mxu0 %v6389_v62  ;;  %v6460_v61 = vld [vmem:[#allocation2 + $0x3a4] ss:$16 sps:$4 sm:$0xff]  }
 0x2f4   : > { %2785 = vmatprep.subr.bf16.mxu1 %v6394_v63  ;;  %3747 = vmatprep.subr.bf16.mxu0 %v6397_v0  ;;  %v6463_v62 = vld [vmem:[#allocation4 + $0x3a4] ss:$16 sps:$4 sm:$0xff]   ;;  %v6458_v63 = vld [vmem:[#allocation2 + $0x3a0] ss:$16 sps:$4 sm:$0xff]  }
 0x2f5   : > { %v6461_v0 = vld [vmem:[#allocation4 + $0x3a0] ss:$16 sps:$4 sm:$0xff]  }
 0x2f7   : > { %2786 = vmatpush1.bf16.msra.mxu1 %v6392_v1  ;;  %3748 = vmatpush1.bf16.msra.mxu0 %v6395_v2  ;;  %v6466_v1 = vld [vmem:[#allocation2 + $0x3c4] ss:$16 sps:$4 sm:$0xff]  }
 0x2f8   : > { %2787 = vmatprep.subr.bf16.mxu1 %v6400_v3  ;;  %3749 = vmatprep.subr.bf16.mxu0 %v6403_v8  ;;  %v6469_v2 = vld [vmem:[#allocation4 + $0x3c4] ss:$16 sps:$4 sm:$0xff]   ;;  %v6464_v3 = vld [vmem:[#allocation2 + $0x3c0] ss:$16 sps:$4 sm:$0xff]  }
 0x2f9   : > { %v6467_v8 = vld [vmem:[#allocation4 + $0x3c0] ss:$16 sps:$4 sm:$0xff]  }
 0x2fb   : > { %2788 = vmatpush1.bf16.msra.mxu1 %v6398_v11  ;;  %3750 = vmatpush1.bf16.msra.mxu0 %v6401_v14  ;;  %v6472_v11 = vld [vmem:[#allocation2 + $0x3e4] ss:$16 sps:$4 sm:$0xff]  }
 0x2fc   : > { %2789 = vmatprep.subr.bf16.mxu1 %v6406_v15  ;;  %3751 = vmatprep.subr.bf16.mxu0 %v6409_v16  ;;  %v6475_v14 = vld [vmem:[#allocation4 + $0x3e4] ss:$16 sps:$4 sm:$0xff]   ;;  %v6470_v15 = vld [vmem:[#allocation2 + $0x3e0] ss:$16 sps:$4 sm:$0xff]  }
 0x2fd   : > { %v6473_v16 = vld [vmem:[#allocation4 + $0x3e0] ss:$16 sps:$4 sm:$0xff]  }
 0x2ff   : > { %2790 = vmatpush1.bf16.msra.mxu1 %v6404_v17  ;;  %3752 = vmatpush1.bf16.msra.mxu0 %v6407_v18  ;;  %v7840_v17 = vadd.f32 %v7800_v46, %v7789_v25  ;;  %v6478_v18 = vld [vmem:[#allocation2 + $0xc] ss:$16 sps:$4 sm:$0xff]   ;;  %v6487_v46 = vld [vmem:[#allocation6 + $0x24] ss:$16 sps:$4 sm:$0xff]  }
 0x300   : > { %2791 = vmatprep.subr.bf16.mxu1 %v6412_v19  ;;  %3753 = vmatprep.subr.bf16.mxu0 %v6415_v21  ;;  %v6481_v19 = vld [vmem:[#allocation6 + $0x4] ss:$16 sps:$4 sm:$0xff]   ;;  %v7844_v21 = vadd.f32 %v7798_v40, %v7786_v20  ;;  %v6484_v25 = vld [vmem:[#allocation2 + $0x2c] ss:$16 sps:$4 sm:$0xff]   ;;  %v6482_v20 = vld [vmem:[#allocation2 + $0x28] ss:$16 sps:$4 sm:$0xff]  }
 0x301   : > { %v6485_v40 = vld [vmem:[#allocation6 + $0x20] ss:$16 sps:$4 sm:$0xff]  }
 0x303   : > { %2792 = vmatpush1.bf16.msra.mxu1 %v6410_v22  ;;  %3754 = vmatpush1.bf16.msra.mxu0 %v6413_v23  ;;  %v6476_v22 = vld [vmem:[#allocation2 + $0x8] ss:$16 sps:$4 sm:$0xff]   ;;  %v7848_v23 = vpack.c.bf16 %v7840_v17, %v7844_v21 }
 0x304   : > { %2793 = vmatprep.subr.bf16.mxu1 %v6418_v24  ;;  %3755 = vmatprep.subr.bf16.mxu0 %v6421_v26  ;;  %v6479_v24 = vld [vmem:[#allocation6] ss:$16 sps:$4 sm:$0xff]   ;;  %v6490_v26 = vld [vmem:[#allocation2 + $0x4c] ss:$16 sps:$4 sm:$0xff]  }
 0x307   : > { %2794 = vmatpush1.bf16.msra.mxu1 %v6416_v27  ;;  %3756 = vmatpush1.bf16.msra.mxu0 %v6419_v28  ;;  %v6493_v27 = vld [vmem:[#allocation6 + $0x44] ss:$16 sps:$4 sm:$0xff]   ;;  %v6488_v28 = vld [vmem:[#allocation2 + $0x48] ss:$16 sps:$4 sm:$0xff]  }
 0x308   : > { %2795 = vmatprep.subr.bf16.mxu1 %v6424_v4  ;;  %3757 = vmatprep.subr.bf16.mxu0 %v6427_v5  ;;  %v6491_v4 = vld [vmem:[#allocation6 + $0x40] ss:$16 sps:$4 sm:$0xff]   ;;  %v6496_v5 = vld [vmem:[#allocation2 + $0x6c] ss:$16 sps:$4 sm:$0xff]  }
 0x30b   : > { %2796 = vmatpush1.bf16.msra.mxu1 %v6422_v29  ;;  %3758 = vmatpush1.bf16.msra.mxu0 %v6425_v6  ;;  %v6499_v29 = vld [vmem:[#allocation6 + $0x64] ss:$16 sps:$4 sm:$0xff]   ;;  %v6494_v6 = vld [vmem:[#allocation2 + $0x68] ss:$16 sps:$4 sm:$0xff]  }
 0x30c   : > { %2797 = vmatprep.subr.bf16.mxu1 %v6430_v30  ;;  %3759 = vmatprep.subr.bf16.mxu0 %v6433_v7  ;;  %v6497_v30 = vld [vmem:[#allocation6 + $0x60] ss:$16 sps:$4 sm:$0xff]   ;;  %v6502_v7 = vld [vmem:[#allocation2 + $0x8c] ss:$16 sps:$4 sm:$0xff]  }
 0x30f   : > { %2798 = vmatpush1.bf16.msra.mxu1 %v6428_v31  ;;  %3760 = vmatpush1.bf16.msra.mxu0 %v6431_v32  ;;  %v6505_v31 = vld [vmem:[#allocation6 + $0x84] ss:$16 sps:$4 sm:$0xff]   ;;  %v6500_v32 = vld [vmem:[#allocation2 + $0x88] ss:$16 sps:$4 sm:$0xff]  }
 0x310   : > { %2799 = vmatprep.subr.bf16.mxu1 %v6436_v33  ;;  %3761 = vmatprep.subr.bf16.mxu0 %v6439_v34  ;;  %v6503_v33 = vld [vmem:[#allocation6 + $0x80] ss:$16 sps:$4 sm:$0xff]   ;;  %v6508_v34 = vld [vmem:[#allocation2 + $0xac] ss:$16 sps:$4 sm:$0xff]  }
 0x313   : > { %2800 = vmatpush1.bf16.msra.mxu1 %v6434_v35  ;;  %3762 = vmatpush1.bf16.msra.mxu0 %v6437_v36  ;;  %v6511_v35 = vld [vmem:[#allocation6 + $0xa4] ss:$16 sps:$4 sm:$0xff]   ;;  %v6506_v36 = vld [vmem:[#allocation2 + $0xa8] ss:$16 sps:$4 sm:$0xff]  }
 0x314   : > { %2801 = vmatprep.subr.bf16.mxu1 %v6442_v37  ;;  %3763 = vmatprep.subr.bf16.mxu0 %v6445_v38  ;;  %v6509_v37 = vld [vmem:[#allocation6 + $0xa0] ss:$16 sps:$4 sm:$0xff]   ;;  %v6514_v38 = vld [vmem:[#allocation2 + $0xcc] ss:$16 sps:$4 sm:$0xff]  }
 0x317   : > { %2802 = vmatpush1.bf16.msra.mxu1 %v6440_v39  ;;  %3764 = vmatpush1.bf16.msra.mxu0 %v6443_v41  ;;  %v6517_v39 = vld [vmem:[#allocation6 + $0xc4] ss:$16 sps:$4 sm:$0xff]   ;;  %v6512_v41 = vld [vmem:[#allocation2 + $0xc8] ss:$16 sps:$4 sm:$0xff]  }
 0x318   : > { %2803 = vmatprep.subr.bf16.mxu1 %v6448_v42  ;;  %3765 = vmatprep.subr.bf16.mxu0 %v6451_v43  ;;  %v6515_v42 = vld [vmem:[#allocation6 + $0xc0] ss:$16 sps:$4 sm:$0xff]   ;;  %v6520_v43 = vld [vmem:[#allocation2 + $0xec] ss:$16 sps:$4 sm:$0xff]  }
 0x31b   : > { %2804 = vmatpush1.bf16.msra.mxu1 %v6446_v44  ;;  %3766 = vmatpush1.bf16.msra.mxu0 %v6449_v45  ;;  %v6523_v44 = vld [vmem:[#allocation6 + $0xe4] ss:$16 sps:$4 sm:$0xff]   ;;  %v6518_v45 = vld [vmem:[#allocation2 + $0xe8] ss:$16 sps:$4 sm:$0xff]  }
 0x31c   : > { %2805 = vmatprep.subr.bf16.mxu1 %v6454_v55  ;;  %3767 = vmatprep.subr.bf16.mxu0 %v6457_v56  ;;  %v6521_v55 = vld [vmem:[#allocation6 + $0xe0] ss:$16 sps:$4 sm:$0xff]   ;;  %v6526_v56 = vld [vmem:[#allocation2 + $0x10c] ss:$16 sps:$4 sm:$0xff]  }
 0x31f   : > { %2806 = vmatpush1.bf16.msra.mxu1 %v6452_v58  ;;  %3768 = vmatpush1.bf16.msra.mxu0 %v6455_v59  ;;  %v6529_v58 = vld [vmem:[#allocation6 + $0x104] ss:$16 sps:$4 sm:$0xff]   ;;  %v6524_v59 = vld [vmem:[#allocation2 + $0x108] ss:$16 sps:$4 sm:$0xff]  }
 0x320   : > { %2807 = vmatprep.subr.bf16.mxu1 %v6460_v61  ;;  %3769 = vmatprep.subr.bf16.mxu0 %v6463_v62  ;;  %v6527_v61 = vld [vmem:[#allocation6 + $0x100] ss:$16 sps:$4 sm:$0xff]   ;;  %v6532_v62 = vld [vmem:[#allocation2 + $0x12c] ss:$16 sps:$4 sm:$0xff]  }
 0x323   : > { %2808 = vmatpush1.bf16.msra.mxu1 %v6458_v63  ;;  %3770 = vmatpush1.bf16.msra.mxu0 %v6461_v0  ;;  %v6535_v63 = vld [vmem:[#allocation6 + $0x124] ss:$16 sps:$4 sm:$0xff]   ;;  %v6530_v0 = vld [vmem:[#allocation2 + $0x128] ss:$16 sps:$4 sm:$0xff]  }
 0x324   : > { %2809 = vmatprep.subr.bf16.mxu1 %v6466_v1  ;;  %3771 = vmatprep.subr.bf16.mxu0 %v6469_v2  ;;  %v6533_v1 = vld [vmem:[#allocation6 + $0x120] ss:$16 sps:$4 sm:$0xff]   ;;  %v6538_v2 = vld [vmem:[#allocation2 + $0x14c] ss:$16 sps:$4 sm:$0xff]  }
 0x327   : > { %2810 = vmatpush1.bf16.msra.mxu1 %v6464_v3  ;;  %3772 = vmatpush1.bf16.msra.mxu0 %v6467_v8  ;;  %v6541_v3 = vld [vmem:[#allocation6 + $0x144] ss:$16 sps:$4 sm:$0xff]   ;;  %v6536_v8 = vld [vmem:[#allocation2 + $0x148] ss:$16 sps:$4 sm:$0xff]  }
 0x328   : > { %2811 = vmatprep.subr.bf16.mxu1 %v6472_v11  ;;  %3773 = vmatprep.subr.bf16.mxu0 %v6475_v14  ;;  %v6539_v11 = vld [vmem:[#allocation6 + $0x140] ss:$16 sps:$4 sm:$0xff]   ;;  %v6544_v14 = vld [vmem:[#allocation2 + $0x16c] ss:$16 sps:$4 sm:$0xff]  }
 0x32b   : > { %2812 = vmatpush1.bf16.msra.mxu1 %v6470_v15  ;;  %3774 = vmatpush1.bf16.msra.mxu0 %v6473_v16  ;;  %v6547_v15 = vld [vmem:[#allocation6 + $0x164] ss:$16 sps:$4 sm:$0xff]   ;;  %v6542_v16 = vld [vmem:[#allocation2 + $0x168] ss:$16 sps:$4 sm:$0xff]  }
 0x32c   : > { %2824 = vmatprep.subr.bf16.mxu1 %v6478_v18  ;;  %4662 = vmatprep.subr.bf16.mxu0 %v6481_v19  ;;  %v6545_v18 = vld [vmem:[#allocation6 + $0x160] ss:$16 sps:$4 sm:$0xff]   ;;  %v6550_v19 = vld [vmem:[#allocation2 + $0x18c] ss:$16 sps:$4 sm:$0xff]  }
 0x32e   : > { %2814 = vmatmul.mubr.bf16.vlgmr.msra.gmra.mrb[4].mxu1 %v7848_v23  ;;  %3776 = vmatmul.mubr.bf16.vlgmr.msra.gmra.mrb[8].mxu0 %v7848_v23 }
 0x32f   : > { %2825 = vmatpush1.bf16.msra.mxu1 %v6476_v22  ;;  %2856 = vmatprep.mubr.bf16.mxu1 %v7823_v53  ;;  %v6553_v22 = vld [vmem:[#allocation6 + $0x184] ss:$16 sps:$4 sm:$0xff]  }
 0x330   : > { %4663 = vmatpush1.bf16.msra.mxu0 %v6479_v24  ;;  %4694 = vmatprep.mubr.bf16.mxu0 %v7823_v53  ;;  %v6548_v24 = vld [vmem:[#allocation2 + $0x188] ss:$16 sps:$4 sm:$0xff]  }
 0x331   : > { %2826 = vmatprep.subr.bf16.mxu1 %v6484_v25  ;;  %4664 = vmatprep.subr.bf16.mxu0 %v6487_v46  ;;  %v6551_v25 = vld [vmem:[#allocation6 + $0x180] ss:$16 sps:$4 sm:$0xff]   ;;  %v6556_v46 = vld [vmem:[#allocation2 + $0x1ac] ss:$16 sps:$4 sm:$0xff]  }
 0x333   : > { %2827 = vmatpush1.bf16.msra.mxu1 %v6482_v20  ;;  %v6559_v20 = vld [vmem:[#allocation6 + $0x1a4] ss:$16 sps:$4 sm:$0xff]  }
 0x334   : > { %4665 = vmatpush1.bf16.msra.mxu0 %v6485_v40  ;;  %2828 = vmatprep.subr.bf16.mxu1 %v6490_v26  ;;  %v6554_v40 = vld [vmem:[#allocation2 + $0x1a8] ss:$16 sps:$4 sm:$0xff]   ;;  %v6557_v26 = vld [vmem:[#allocation6 + $0x1a0] ss:$16 sps:$4 sm:$0xff]  }
 0x335   : > { %4666 = vmatprep.subr.bf16.mxu0 %v6493_v27  ;;  %v6562_v27 = vld [vmem:[#allocation2 + $0x1cc] ss:$16 sps:$4 sm:$0xff]  }
 0x337   : > { %2829 = vmatpush1.bf16.msra.mxu1 %v6488_v28  ;;  %v6565_v28 = vld [vmem:[#allocation6 + $0x1c4] ss:$16 sps:$4 sm:$0xff]  }
 0x338   : > { %4667 = vmatpush1.bf16.msra.mxu0 %v6491_v4  ;;  %2830 = vmatprep.subr.bf16.mxu1 %v6496_v5  ;;  %v6560_v4 = vld [vmem:[#allocation2 + $0x1c8] ss:$16 sps:$4 sm:$0xff]   ;;  %v6563_v5 = vld [vmem:[#allocation6 + $0x1c0] ss:$16 sps:$4 sm:$0xff]  }
 0x339   : > { %4668 = vmatprep.subr.bf16.mxu0 %v6499_v29  ;;  %v6568_v29 = vld [vmem:[#allocation2 + $0x1ec] ss:$16 sps:$4 sm:$0xff]  }
 0x33b   : > { %2831 = vmatpush1.bf16.msra.mxu1 %v6494_v6  ;;  %v6571_v6 = vld [vmem:[#allocation6 + $0x1e4] ss:$16 sps:$4 sm:$0xff]  }
 0x33c   : > { %4669 = vmatpush1.bf16.msra.mxu0 %v6497_v30  ;;  %2832 = vmatprep.subr.bf16.mxu1 %v6502_v7  ;;  %v6566_v30 = vld [vmem:[#allocation2 + $0x1e8] ss:$16 sps:$4 sm:$0xff]   ;;  %v6569_v7 = vld [vmem:[#allocation6 + $0x1e0] ss:$16 sps:$4 sm:$0xff]  }
 0x33d   : > { %4670 = vmatprep.subr.bf16.mxu0 %v6505_v31  ;;  %v6574_v31 = vld [vmem:[#allocation2 + $0x20c] ss:$16 sps:$4 sm:$0xff]  }
 0x33f   : > { %2833 = vmatpush1.bf16.msra.mxu1 %v6500_v32  ;;  %v6577_v32 = vld [vmem:[#allocation6 + $0x204] ss:$16 sps:$4 sm:$0xff]  }
 0x340   : > { %4671 = vmatpush1.bf16.msra.mxu0 %v6503_v33  ;;  %2834 = vmatprep.subr.bf16.mxu1 %v6508_v34  ;;  %v6572_v33 = vld [vmem:[#allocation2 + $0x208] ss:$16 sps:$4 sm:$0xff]   ;;  %v6575_v34 = vld [vmem:[#allocation6 + $0x200] ss:$16 sps:$4 sm:$0xff]  }
 0x341   : > { %4672 = vmatprep.subr.bf16.mxu0 %v6511_v35  ;;  %v6580_v35 = vld [vmem:[#allocation2 + $0x22c] ss:$16 sps:$4 sm:$0xff]  }
 0x343   : > { %2835 = vmatpush1.bf16.msra.mxu1 %v6506_v36  ;;  %v6583_v36 = vld [vmem:[#allocation6 + $0x224] ss:$16 sps:$4 sm:$0xff]  }
 0x344   : > { %4673 = vmatpush1.bf16.msra.mxu0 %v6509_v37  ;;  %2836 = vmatprep.subr.bf16.mxu1 %v6514_v38  ;;  %v6578_v37 = vld [vmem:[#allocation2 + $0x228] ss:$16 sps:$4 sm:$0xff]   ;;  %v6581_v38 = vld [vmem:[#allocation6 + $0x220] ss:$16 sps:$4 sm:$0xff]  }
 0x345   : > { %4674 = vmatprep.subr.bf16.mxu0 %v6517_v39  ;;  %v6586_v39 = vld [vmem:[#allocation2 + $0x24c] ss:$16 sps:$4 sm:$0xff]  }
 0x347   : > { %2837 = vmatpush1.bf16.msra.mxu1 %v6512_v41  ;;  %v6589_v41 = vld [vmem:[#allocation6 + $0x244] ss:$16 sps:$4 sm:$0xff]  }
 0x348   : > { %4675 = vmatpush1.bf16.msra.mxu0 %v6515_v42  ;;  %2838 = vmatprep.subr.bf16.mxu1 %v6520_v43  ;;  %v6584_v42 = vld [vmem:[#allocation2 + $0x248] ss:$16 sps:$4 sm:$0xff]   ;;  %v6587_v43 = vld [vmem:[#allocation6 + $0x240] ss:$16 sps:$4 sm:$0xff]  }
 0x349   : > { %4676 = vmatprep.subr.bf16.mxu0 %v6523_v44  ;;  %v6592_v44 = vld [vmem:[#allocation2 + $0x26c] ss:$16 sps:$4 sm:$0xff]  }
 0x34b   : > { %2839 = vmatpush1.bf16.msra.mxu1 %v6518_v45  ;;  %v6595_v45 = vld [vmem:[#allocation6 + $0x264] ss:$16 sps:$4 sm:$0xff]  }
 0x34c   : > { %4677 = vmatpush1.bf16.msra.mxu0 %v6521_v55  ;;  %2840 = vmatprep.subr.bf16.mxu1 %v6526_v56  ;;  %v6590_v55 = vld [vmem:[#allocation2 + $0x268] ss:$16 sps:$4 sm:$0xff]   ;;  %v6593_v56 = vld [vmem:[#allocation6 + $0x260] ss:$16 sps:$4 sm:$0xff]  }
 0x34d   : > { %4678 = vmatprep.subr.bf16.mxu0 %v6529_v58  ;;  %v6598_v58 = vld [vmem:[#allocation2 + $0x28c] ss:$16 sps:$4 sm:$0xff]  }
 0x34f   : > { %2841 = vmatpush1.bf16.msra.mxu1 %v6524_v59  ;;  %v6601_v59 = vld [vmem:[#allocation6 + $0x284] ss:$16 sps:$4 sm:$0xff]  }
 0x350   : > { %4679 = vmatpush1.bf16.msra.mxu0 %v6527_v61  ;;  %2842 = vmatprep.subr.bf16.mxu1 %v6532_v62  ;;  %v6596_v61 = vld [vmem:[#allocation2 + $0x288] ss:$16 sps:$4 sm:$0xff]   ;;  %v6599_v62 = vld [vmem:[#allocation6 + $0x280] ss:$16 sps:$4 sm:$0xff]  }
 0x351   : > { %4680 = vmatprep.subr.bf16.mxu0 %v6535_v63  ;;  %v6604_v63 = vld [vmem:[#allocation2 + $0x2ac] ss:$16 sps:$4 sm:$0xff]  }
 0x353   : > { %2843 = vmatpush1.bf16.msra.mxu1 %v6530_v0  ;;  %v6607_v0 = vld [vmem:[#allocation6 + $0x2a4] ss:$16 sps:$4 sm:$0xff]  }
 0x354   : > { %4681 = vmatpush1.bf16.msra.mxu0 %v6533_v1  ;;  %2844 = vmatprep.subr.bf16.mxu1 %v6538_v2  ;;  %v6602_v1 = vld [vmem:[#allocation2 + $0x2a8] ss:$16 sps:$4 sm:$0xff]   ;;  %v6605_v2 = vld [vmem:[#allocation6 + $0x2a0] ss:$16 sps:$4 sm:$0xff]  }
 0x355   : > { %4682 = vmatprep.subr.bf16.mxu0 %v6541_v3  ;;  %v6610_v3 = vld [vmem:[#allocation2 + $0x2cc] ss:$16 sps:$4 sm:$0xff]  }
 0x357   : > { %2845 = vmatpush1.bf16.msra.mxu1 %v6536_v8  ;;  %v6613_v8 = vld [vmem:[#allocation6 + $0x2c4] ss:$16 sps:$4 sm:$0xff]  }
 0x358   : > { %4683 = vmatpush1.bf16.msra.mxu0 %v6539_v11  ;;  %2846 = vmatprep.subr.bf16.mxu1 %v6544_v14  ;;  %v6608_v11 = vld [vmem:[#allocation2 + $0x2c8] ss:$16 sps:$4 sm:$0xff]   ;;  %v6611_v14 = vld [vmem:[#allocation6 + $0x2c0] ss:$16 sps:$4 sm:$0xff]  }
 0x359   : > { %4684 = vmatprep.subr.bf16.mxu0 %v6547_v15  ;;  %v6616_v15 = vld [vmem:[#allocation2 + $0x2ec] ss:$16 sps:$4 sm:$0xff]  }
 0x35b   : > { %2847 = vmatpush1.bf16.msra.mxu1 %v6542_v16  ;;  %v6619_v16 = vld [vmem:[#allocation6 + $0x2e4] ss:$16 sps:$4 sm:$0xff]  }
 0x35c   : > { %4685 = vmatpush1.bf16.msra.mxu0 %v6545_v18  ;;  %2848 = vmatprep.subr.bf16.mxu1 %v6550_v19  ;;  %v6614_v18 = vld [vmem:[#allocation2 + $0x2e8] ss:$16 sps:$4 sm:$0xff]   ;;  %v6617_v19 = vld [vmem:[#allocation6 + $0x2e0] ss:$16 sps:$4 sm:$0xff]  }
 0x35d   : > { %4686 = vmatprep.subr.bf16.mxu0 %v6553_v22  ;;  %v6622_v22 = vld [vmem:[#allocation2 + $0x30c] ss:$16 sps:$4 sm:$0xff]  }
 0x35f   : > { %2849 = vmatpush1.bf16.msra.mxu1 %v6548_v24  ;;  %v6625_v24 = vld [vmem:[#allocation6 + $0x304] ss:$16 sps:$4 sm:$0xff]  }
 0x360   : > { %4687 = vmatpush1.bf16.msra.mxu0 %v6551_v25  ;;  %2850 = vmatprep.subr.bf16.mxu1 %v6556_v46  ;;  %v6620_v25 = vld [vmem:[#allocation2 + $0x308] ss:$16 sps:$4 sm:$0xff]   ;;  %v6623_v46 = vld [vmem:[#allocation6 + $0x300] ss:$16 sps:$4 sm:$0xff]  }
 0x361   : > { %4688 = vmatprep.subr.bf16.mxu0 %v6559_v20  ;;  %v6628_v20 = vld [vmem:[#allocation2 + $0x32c] ss:$16 sps:$4 sm:$0xff]  }
 0x363   : > { %2851 = vmatpush1.bf16.msra.mxu1 %v6554_v40  ;;  %v6631_v40 = vld [vmem:[#allocation6 + $0x324] ss:$16 sps:$4 sm:$0xff]  }
 0x364   : > { %4689 = vmatpush1.bf16.msra.mxu0 %v6557_v26  ;;  %2852 = vmatprep.subr.bf16.mxu1 %v6562_v27  ;;  %v6626_v26 = vld [vmem:[#allocation2 + $0x328] ss:$16 sps:$4 sm:$0xff]   ;;  %v6629_v27 = vld [vmem:[#allocation6 + $0x320] ss:$16 sps:$4 sm:$0xff]  }
 0x365   : > { %4690 = vmatprep.subr.bf16.mxu0 %v6565_v28  ;;  %v6634_v28 = vld [vmem:[#allocation2 + $0x34c] ss:$16 sps:$4 sm:$0xff]  }
 0x367   : > { %2853 = vmatpush1.bf16.msra.mxu1 %v6560_v4  ;;  %v6637_v4 = vld [vmem:[#allocation6 + $0x344] ss:$16 sps:$4 sm:$0xff]  }
 0x368   : > { %4691 = vmatpush1.bf16.msra.mxu0 %v6563_v5  ;;  %2854 = vmatprep.subr.bf16.mxu1 %v6568_v29  ;;  %v6632_v5 = vld [vmem:[#allocation2 + $0x348] ss:$16 sps:$4 sm:$0xff]   ;;  %v6635_v29 = vld [vmem:[#allocation6 + $0x340] ss:$16 sps:$4 sm:$0xff]  }
 0x369   : > { %4692 = vmatprep.subr.bf16.mxu0 %v6571_v6  ;;  %v6640_v6 = vld [vmem:[#allocation2 + $0x36c] ss:$16 sps:$4 sm:$0xff]  }
 0x36b   : > { %2855 = vmatpush1.bf16.msra.mxu1 %v6566_v30  ;;  %v6643_v30 = vld [vmem:[#allocation6 + $0x364] ss:$16 sps:$4 sm:$0xff]  }
 0x36c   : > { %4693 = vmatpush1.bf16.msra.mxu0 %v6569_v7  ;;  %2867 = vmatprep.subr.bf16.mxu1 %v6574_v31  ;;  %v6638_v7 = vld [vmem:[#allocation2 + $0x368] ss:$16 sps:$4 sm:$0xff]   ;;  %v6641_v31 = vld [vmem:[#allocation6 + $0x360] ss:$16 sps:$4 sm:$0xff]  }
 0x36d   : > { %4705 = vmatprep.subr.bf16.mxu0 %v6577_v32  ;;  %v6646_v32 = vld [vmem:[#allocation2 + $0x38c] ss:$16 sps:$4 sm:$0xff]  }
 0x36e   : > { %2857 = vmatmul.mubr.bf16.vlgmr.msra.gmra.mrb[8].mxu1 %v7819_v52 }
 0x36f   : > { %4695 = vmatmul.mubr.bf16.vlgmr.msra.gmra.mrb[12].mxu0 %v7819_v52  ;;  %2868 = vmatpush1.bf16.msra.mxu1 %v6572_v33  ;;  %v6649_v33 = vld [vmem:[#allocation6 + $0x384] ss:$16 sps:$4 sm:$0xff]  }
 0x370   : > { %2899 = vmatprep.mubr.bf16.mxu1 %v7832_v60  ;;  %4706 = vmatpush1.bf16.msra.mxu0 %v6575_v34  ;;  %v6644_v34 = vld [vmem:[#allocation2 + $0x388] ss:$16 sps:$4 sm:$0xff]  }
 0x371   : > { %4737 = vmatprep.mubr.bf16.mxu0 %v7832_v60  ;;  %2869 = vmatprep.subr.bf16.mxu1 %v6580_v35  ;;  %v6647_v35 = vld [vmem:[#allocation6 + $0x380] ss:$16 sps:$4 sm:$0xff]  }
 0x372   : > { %4707 = vmatprep.subr.bf16.mxu0 %v6583_v36  ;;  %v6652_v36 = vld [vmem:[#allocation2 + $0x3ac] ss:$16 sps:$4 sm:$0xff]  }
 0x373   : > { %2870 = vmatpush1.bf16.msra.mxu1 %v6578_v37  ;;  %v6655_v37 = vld [vmem:[#allocation6 + $0x3a4] ss:$16 sps:$4 sm:$0xff]  }
 0x374   : > { %4708 = vmatpush1.bf16.msra.mxu0 %v6581_v38  ;;  %2871 = vmatprep.subr.bf16.mxu1 %v6586_v39  ;;  %v6650_v38 = vld [vmem:[#allocation2 + $0x3a8] ss:$16 sps:$4 sm:$0xff]   ;;  %v6653_v39 = vld [vmem:[#allocation6 + $0x3a0] ss:$16 sps:$4 sm:$0xff]  }
 0x375   : > { %4709 = vmatprep.subr.bf16.mxu0 %v6589_v41  ;;  %v6658_v41 = vld [vmem:[#allocation2 + $0x3cc] ss:$16 sps:$4 sm:$0xff]  }
 0x377   : > { %2872 = vmatpush1.bf16.msra.mxu1 %v6584_v42  ;;  %v6661_v42 = vld [vmem:[#allocation6 + $0x3c4] ss:$16 sps:$4 sm:$0xff]  }
 0x378   : > { %4710 = vmatpush1.bf16.msra.mxu0 %v6587_v43  ;;  %2873 = vmatprep.subr.bf16.mxu1 %v6592_v44  ;;  %v6656_v43 = vld [vmem:[#allocation2 + $0x3c8] ss:$16 sps:$4 sm:$0xff]   ;;  %v6659_v44 = vld [vmem:[#allocation6 + $0x3c0] ss:$16 sps:$4 sm:$0xff]  }
 0x379   : > { %4711 = vmatprep.subr.bf16.mxu0 %v6595_v45  ;;  %v6664_v45 = vld [vmem:[#allocation2 + $0x3ec] ss:$16 sps:$4 sm:$0xff]  }
 0x37b   : > { %2874 = vmatpush1.bf16.msra.mxu1 %v6590_v55  ;;  %v6667_v55 = vld [vmem:[#allocation6 + $0x3e4] ss:$16 sps:$4 sm:$0xff]  }
 0x37c   : > { %4712 = vmatpush1.bf16.msra.mxu0 %v6593_v56  ;;  %2875 = vmatprep.subr.bf16.mxu1 %v6598_v58  ;;  %v6662_v56 = vld [vmem:[#allocation2 + $0x3e8] ss:$16 sps:$4 sm:$0xff]   ;;  %v6665_v58 = vld [vmem:[#allocation6 + $0x3e0] ss:$16 sps:$4 sm:$0xff]  }
 0x37d   : > { %4713 = vmatprep.subr.bf16.mxu0 %v6601_v59  ;;  %v6670_v59 = vld [vmem:[#allocation4 + $0xc] ss:$16 sps:$4 sm:$0xff]  }
 0x37f   : > { %2876 = vmatpush1.bf16.msra.mxu1 %v6596_v61  ;;  %v6668_v61 = vld [vmem:[#allocation4 + $0x8] ss:$16 sps:$4 sm:$0xff]  }
 0x380   : > { %4714 = vmatpush1.bf16.msra.mxu0 %v6599_v62  ;;  %2877 = vmatprep.subr.bf16.mxu1 %v6604_v63  ;;  %v6673_v62 = vld [vmem:[#allocation4 + $0x2c] ss:$16 sps:$4 sm:$0xff]   ;;  %v6671_v63 = vld [vmem:[#allocation4 + $0x28] ss:$16 sps:$4 sm:$0xff]  }
 0x381   : > { %4715 = vmatprep.subr.bf16.mxu0 %v6607_v0  ;;  %v6676_v0 = vld [vmem:[#allocation4 + $0x4c] ss:$16 sps:$4 sm:$0xff]  }
 0x383   : > { %2878 = vmatpush1.bf16.msra.mxu1 %v6602_v1  ;;  %v6674_v1 = vld [vmem:[#allocation4 + $0x48] ss:$16 sps:$4 sm:$0xff]  }
 0x384   : > { %4716 = vmatpush1.bf16.msra.mxu0 %v6605_v2  ;;  %2879 = vmatprep.subr.bf16.mxu1 %v6610_v3  ;;  %v6679_v2 = vld [vmem:[#allocation4 + $0x6c] ss:$16 sps:$4 sm:$0xff]   ;;  %v6677_v3 = vld [vmem:[#allocation4 + $0x68] ss:$16 sps:$4 sm:$0xff]  }
 0x385   : > { %4717 = vmatprep.subr.bf16.mxu0 %v6613_v8  ;;  %v6682_v8 = vld [vmem:[#allocation4 + $0x8c] ss:$16 sps:$4 sm:$0xff]  }
 0x387   : > { %2880 = vmatpush1.bf16.msra.mxu1 %v6608_v11  ;;  %v6680_v11 = vld [vmem:[#allocation4 + $0x88] ss:$16 sps:$4 sm:$0xff]  }
 0x388   : > { %4718 = vmatpush1.bf16.msra.mxu0 %v6611_v14  ;;  %2881 = vmatprep.subr.bf16.mxu1 %v6616_v15  ;;  %v6685_v14 = vld [vmem:[#allocation4 + $0xac] ss:$16 sps:$4 sm:$0xff]   ;;  %v6683_v15 = vld [vmem:[#allocation4 + $0xa8] ss:$16 sps:$4 sm:$0xff]  }
 0x389   : > { %4719 = vmatprep.subr.bf16.mxu0 %v6619_v16  ;;  %v6688_v16 = vld [vmem:[#allocation4 + $0xcc] ss:$16 sps:$4 sm:$0xff]  }
 0x38b   : > { %2882 = vmatpush1.bf16.msra.mxu1 %v6614_v18  ;;  %v6686_v18 = vld [vmem:[#allocation4 + $0xc8] ss:$16 sps:$4 sm:$0xff]  }
 0x38c   : > { %4720 = vmatpush1.bf16.msra.mxu0 %v6617_v19  ;;  %2883 = vmatprep.subr.bf16.mxu1 %v6622_v22  ;;  %v6691_v19 = vld [vmem:[#allocation4 + $0xec] ss:$16 sps:$4 sm:$0xff]   ;;  %v6689_v22 = vld [vmem:[#allocation4 + $0xe8] ss:$16 sps:$4 sm:$0xff]  }
 0x38d   : > { %4721 = vmatprep.subr.bf16.mxu0 %v6625_v24  ;;  %v6694_v24 = vld [vmem:[#allocation4 + $0x10c] ss:$16 sps:$4 sm:$0xff]  }
 0x38f   : > { %2884 = vmatpush1.bf16.msra.mxu1 %v6620_v25  ;;  %v6692_v25 = vld [vmem:[#allocation4 + $0x108] ss:$16 sps:$4 sm:$0xff]  }
 0x390   : > { %4722 = vmatpush1.bf16.msra.mxu0 %v6623_v46  ;;  %2885 = vmatprep.subr.bf16.mxu1 %v6628_v20  ;;  %v6697_v46 = vld [vmem:[#allocation4 + $0x12c] ss:$16 sps:$4 sm:$0xff]   ;;  %v6695_v20 = vld [vmem:[#allocation4 + $0x128] ss:$16 sps:$4 sm:$0xff]  }
 0x391   : > { %4723 = vmatprep.subr.bf16.mxu0 %v6631_v40  ;;  %v6700_v40 = vld [vmem:[#allocation4 + $0x14c] ss:$16 sps:$4 sm:$0xff]  }
 0x393   : > { %2886 = vmatpush1.bf16.msra.mxu1 %v6626_v26  ;;  %v6698_v26 = vld [vmem:[#allocation4 + $0x148] ss:$16 sps:$4 sm:$0xff]  }
 0x394   : > { %4724 = vmatpush1.bf16.msra.mxu0 %v6629_v27  ;;  %2887 = vmatprep.subr.bf16.mxu1 %v6634_v28  ;;  %v6703_v27 = vld [vmem:[#allocation4 + $0x16c] ss:$16 sps:$4 sm:$0xff]   ;;  %v6701_v28 = vld [vmem:[#allocation4 + $0x168] ss:$16 sps:$4 sm:$0xff]  }
 0x395   : > { %4725 = vmatprep.subr.bf16.mxu0 %v6637_v4  ;;  %v6706_v4 = vld [vmem:[#allocation4 + $0x18c] ss:$16 sps:$4 sm:$0xff]  }
 0x397   : > { %2888 = vmatpush1.bf16.msra.mxu1 %v6632_v5  ;;  %v6704_v5 = vld [vmem:[#allocation4 + $0x188] ss:$16 sps:$4 sm:$0xff]  }
 0x398   : > { %4726 = vmatpush1.bf16.msra.mxu0 %v6635_v29  ;;  %2889 = vmatprep.subr.bf16.mxu1 %v6640_v6  ;;  %v6709_v29 = vld [vmem:[#allocation4 + $0x1ac] ss:$16 sps:$4 sm:$0xff]   ;;  %v6707_v6 = vld [vmem:[#allocation4 + $0x1a8] ss:$16 sps:$4 sm:$0xff]  }
 0x399   : > { %4727 = vmatprep.subr.bf16.mxu0 %v6643_v30  ;;  %v6712_v30 = vld [vmem:[#allocation4 + $0x1cc] ss:$16 sps:$4 sm:$0xff]  }
 0x39b   : > { %2890 = vmatpush1.bf16.msra.mxu1 %v6638_v7  ;;  %v6710_v7 = vld [vmem:[#allocation4 + $0x1c8] ss:$16 sps:$4 sm:$0xff]  }
 0x39c   : > { %4728 = vmatpush1.bf16.msra.mxu0 %v6641_v31  ;;  %2891 = vmatprep.subr.bf16.mxu1 %v6646_v32  ;;  %v6715_v31 = vld [vmem:[#allocation4 + $0x1ec] ss:$16 sps:$4 sm:$0xff]   ;;  %v6713_v32 = vld [vmem:[#allocation4 + $0x1e8] ss:$16 sps:$4 sm:$0xff]  }
 0x39d   : > { %4729 = vmatprep.subr.bf16.mxu0 %v6649_v33  ;;  %v6718_v33 = vld [vmem:[#allocation4 + $0x20c] ss:$16 sps:$4 sm:$0xff]  }
 0x39f   : > { %2892 = vmatpush1.bf16.msra.mxu1 %v6644_v34  ;;  %v6716_v34 = vld [vmem:[#allocation4 + $0x208] ss:$16 sps:$4 sm:$0xff]  }
 0x3a0   : > { %4730 = vmatpush1.bf16.msra.mxu0 %v6647_v35  ;;  %2893 = vmatprep.subr.bf16.mxu1 %v6652_v36  ;;  %v6721_v35 = vld [vmem:[#allocation4 + $0x22c] ss:$16 sps:$4 sm:$0xff]   ;;  %v6719_v36 = vld [vmem:[#allocation4 + $0x228] ss:$16 sps:$4 sm:$0xff]  }
 0x3a1   : > { %4731 = vmatprep.subr.bf16.mxu0 %v6655_v37  ;;  %v6724_v37 = vld [vmem:[#allocation4 + $0x24c] ss:$16 sps:$4 sm:$0xff]  }
 0x3a3   : > { %2894 = vmatpush1.bf16.msra.mxu1 %v6650_v38  ;;  %v6722_v38 = vld [vmem:[#allocation4 + $0x248] ss:$16 sps:$4 sm:$0xff]  }
 0x3a4   : > { %4732 = vmatpush1.bf16.msra.mxu0 %v6653_v39  ;;  %2895 = vmatprep.subr.bf16.mxu1 %v6658_v41  ;;  %v6727_v39 = vld [vmem:[#allocation4 + $0x26c] ss:$16 sps:$4 sm:$0xff]   ;;  %v6725_v41 = vld [vmem:[#allocation4 + $0x268] ss:$16 sps:$4 sm:$0xff]  }
 0x3a5   : > { %4733 = vmatprep.subr.bf16.mxu0 %v6661_v42  ;;  %v6730_v42 = vld [vmem:[#allocation4 + $0x28c] ss:$16 sps:$4 sm:$0xff]  }
 0x3a7   : > { %2896 = vmatpush1.bf16.msra.mxu1 %v6656_v43  ;;  %v6728_v43 = vld [vmem:[#allocation4 + $0x288] ss:$16 sps:$4 sm:$0xff]  }
 0x3a8   : > { %4734 = vmatpush1.bf16.msra.mxu0 %v6659_v44  ;;  %2897 = vmatprep.subr.bf16.mxu1 %v6664_v45  ;;  %v6733_v44 = vld [vmem:[#allocation4 + $0x2ac] ss:$16 sps:$4 sm:$0xff]   ;;  %v7866_v45 = vld [vmem:[%s7970_s8] sm:$0xf] }
 0x3a9   : > { %4735 = vmatprep.subr.bf16.mxu0 %v6667_v55  ;;  %v7871_v55 = vld [vmem:[%s7972_s10] sm:$0xf] }
 0x3ab   : > { %2898 = vmatpush1.bf16.msra.mxu1 %v6662_v56  ;;  %v6731_v56 = vld [vmem:[#allocation4 + $0x2a8] ss:$16 sps:$4 sm:$0xff]  }
 0x3ac   : > { %4736 = vmatpush1.bf16.msra.mxu0 %v6665_v58  ;;  %3786 = vmatprep.subr.bf16.mxu1 %v6670_v59  ;;  %v2081_v58 = vrot.slane %v7866_v45, %v7776_v12  ;;  %v3043_v59 = vrot.slane %v7871_v55, %v7776_v12 }
 0x3ae   : > { %2900 = vmatmul.mubr.bf16.vlgmr.msra.gmra.mrb[8].mxu1 %v7848_v23 }
 0x3af   : > { %4738 = vmatmul.mubr.bf16.vlgmr.msra.gmra.mrb[12].mxu0 %v7848_v23  ;;  %3787 = vmatpush1.bf16.msra.mxu1 %v6668_v61  ;;  %v6736_v61 = vld [vmem:[#allocation4 + $0x2cc] ss:$16 sps:$4 sm:$0xff]  }
 0x3b0   : > { %3818 = vmatprep.mubr.bf16.mxu1 %v7823_v53  ;;  %3788 = vmatprep.subr.bf16.mxu1 %v6673_v62 }
 0x3b3   : > { %3789 = vmatpush1.bf16.msra.mxu1 %v6671_v63 }
 0x3b4   : > { %3790 = vmatprep.subr.bf16.mxu1 %v6676_v0  ;;  %v2085_v0 = vrot.slane %v7866_v45, %v7779_v13 }
 0x3b7   : > { %3791 = vmatpush1.bf16.msra.mxu1 %v6674_v1  ;;  %v3047_v1 = vrot.slane %v7871_v55, %v7779_v13 }
 0x3b8   : > { %3792 = vmatprep.subr.bf16.mxu1 %v6679_v2 }
 0x3bb   : > { %3793 = vmatpush1.bf16.msra.mxu1 %v6677_v3 }
 0x3bc   : > { %3794 = vmatprep.subr.bf16.mxu1 %v6682_v8 }
 0x3bf   : > { %3795 = vmatpush1.bf16.msra.mxu1 %v6680_v11 }
 0x3c0   : > { %3796 = vmatprep.subr.bf16.mxu1 %v6685_v14  ;;  %v6734_v14 = vld [vmem:[#allocation4 + $0x2c8] ss:$16 sps:$4 sm:$0xff]  }
 0x3c3   : > { %3797 = vmatpush1.bf16.msra.mxu1 %v6683_v15 }
 0x3c4   : > { %3798 = vmatprep.subr.bf16.mxu1 %v6688_v16 }
 0x3c7   : > { %3799 = vmatpush1.bf16.msra.mxu1 %v6686_v18 }
 0x3c8   : > { %3800 = vmatprep.subr.bf16.mxu1 %v6691_v19 }
 0x3cb   : > { %3801 = vmatpush1.bf16.msra.mxu1 %v6689_v22 }
 0x3cc   : > { %3802 = vmatprep.subr.bf16.mxu1 %v6694_v24 }
 0x3cf   : > { %3803 = vmatpush1.bf16.msra.mxu1 %v6692_v25  ;;  %v6739_v25 = vld [vmem:[#allocation4 + $0x2ec] ss:$16 sps:$4 sm:$0xff]  }
 0x3d0   : > { %3804 = vmatprep.subr.bf16.mxu1 %v6697_v46 }
 0x3d3   : > { %3805 = vmatpush1.bf16.msra.mxu1 %v6695_v20 }
 0x3d4   : > { %3806 = vmatprep.subr.bf16.mxu1 %v6700_v40 }
 0x3d7   : > { %3807 = vmatpush1.bf16.msra.mxu1 %v6698_v26 }
 0x3d8   : > { %3808 = vmatprep.subr.bf16.mxu1 %v6703_v27 }
 0x3db   : > { %3809 = vmatpush1.bf16.msra.mxu1 %v6701_v28 }
 0x3dc   : > { %3810 = vmatprep.subr.bf16.mxu1 %v6706_v4 }
 0x3df   : > { %3811 = vmatpush1.bf16.msra.mxu1 %v6704_v5 }
 0x3e0   : > { %3812 = vmatprep.subr.bf16.mxu1 %v6709_v29  ;;  %v6737_v29 = vld [vmem:[#allocation4 + $0x2e8] ss:$16 sps:$4 sm:$0xff]  }
 0x3e3   : > { %3813 = vmatpush1.bf16.msra.mxu1 %v6707_v6  ;;  %v6742_v6 = vld [vmem:[#allocation4 + $0x30c] ss:$16 sps:$4 sm:$0xff]  }
 0x3e4   : > { %3814 = vmatprep.subr.bf16.mxu1 %v6712_v30  ;;  %v6740_v30 = vld [vmem:[#allocation4 + $0x308] ss:$16 sps:$4 sm:$0xff]  }
 0x3e7   : > { %3815 = vmatpush1.bf16.msra.mxu1 %v6710_v7  ;;  %v6745_v7 = vld [vmem:[#allocation4 + $0x32c] ss:$16 sps:$4 sm:$0xff]  }
 0x3e8   : > { %3816 = vmatprep.subr.bf16.mxu1 %v6715_v31  ;;  %v6743_v31 = vld [vmem:[#allocation4 + $0x328] ss:$16 sps:$4 sm:$0xff]  }
 0x3eb   : > { %3817 = vmatpush1.bf16.msra.mxu1 %v6713_v32  ;;  %v6748_v32 = vld [vmem:[#allocation4 + $0x34c] ss:$16 sps:$4 sm:$0xff]  }
 0x3ec   : > { %3829 = vmatprep.subr.bf16.mxu1 %v6718_v33  ;;  %v6746_v33 = vld [vmem:[#allocation4 + $0x348] ss:$16 sps:$4 sm:$0xff]  }
 0x3ee   : > { %3819 = vmatmul.mubr.bf16.vlgmr.msra.gmra.mrb[12].mxu1 %v7819_v52 }
 0x3ef   : > { %3830 = vmatpush1.bf16.msra.mxu1 %v6716_v34  ;;  %3861 = vmatprep.mubr.bf16.mxu1 %v7832_v60  ;;  %v6751_v34 = vld [vmem:[#allocation4 + $0x36c] ss:$16 sps:$4 sm:$0xff]  }
 0x3f0   : > { %3831 = vmatprep.subr.bf16.mxu1 %v6721_v35  ;;  %v6749_v35 = vld [vmem:[#allocation4 + $0x368] ss:$16 sps:$4 sm:$0xff]  }
 0x3f3   : > { %3832 = vmatpush1.bf16.msra.mxu1 %v6719_v36  ;;  %v6754_v36 = vld [vmem:[#allocation4 + $0x38c] ss:$16 sps:$4 sm:$0xff]  }
 0x3f4   : > { %3833 = vmatprep.subr.bf16.mxu1 %v6724_v37  ;;  %v6752_v37 = vld [vmem:[#allocation4 + $0x388] ss:$16 sps:$4 sm:$0xff]  }
 0x3f7   : > { %3834 = vmatpush1.bf16.msra.mxu1 %v6722_v38  ;;  %v6757_v38 = vld [vmem:[#allocation4 + $0x3ac] ss:$16 sps:$4 sm:$0xff]  }
 0x3f8   : > { %3835 = vmatprep.subr.bf16.mxu1 %v6727_v39  ;;  %v6755_v39 = vld [vmem:[#allocation4 + $0x3a8] ss:$16 sps:$4 sm:$0xff]  }
 0x3fb   : > { %3836 = vmatpush1.bf16.msra.mxu1 %v6725_v41  ;;  %v6760_v41 = vld [vmem:[#allocation4 + $0x3cc] ss:$16 sps:$4 sm:$0xff]  }
 0x3fc   : > { %3837 = vmatprep.subr.bf16.mxu1 %v6730_v42  ;;  %v6758_v42 = vld [vmem:[#allocation4 + $0x3c8] ss:$16 sps:$4 sm:$0xff]  }
 0x3ff   : > { %3838 = vmatpush1.bf16.msra.mxu1 %v6728_v43  ;;  %v6763_v43 = vld [vmem:[#allocation4 + $0x3ec] ss:$16 sps:$4 sm:$0xff]  }
 0x400   : > { %3839 = vmatprep.subr.bf16.mxu1 %v6733_v44  ;;  %v6761_v44 = vld [vmem:[#allocation4 + $0x3e8] ss:$16 sps:$4 sm:$0xff]  }
 0x401   : > { %v2815_v62 = vpop.f32.mrb[4].mxu1  ;;  %v3777_v63 = vpop.f32.mrb[8].mxu0 }
 0x402   : > { %v2817_v2 = vpop.f32.mrb[5].mxu1  ;;  %v3779_v3 = vpop.f32.mrb[9].mxu0  ;;  %v5908_v15 = vadd.f32 %v2815_v62, %v2081_v58  ;;  %v5916_v16 = vadd.f32 %v3777_v63, %v3043_v59  ;;  %v6772_v62 = vld [vmem:[#allocation6 + $0x4c] ss:$16 sps:$4 sm:$0xff]   ;;  %v6770_v63 = vld [vmem:[#allocation6 + $0x48] ss:$16 sps:$4 sm:$0xff]  }
 0x403   : > { %v2819_v8 = vpop.f32.mrb[6].mxu1  ;;  %v3781_v11 = vpop.f32.mrb[10].mxu0  ;;  %3840 = vmatpush1.bf16.msra.mxu1 %v6731_v56  ;;  %v5909_v46 = vadd.f32 %v2817_v2, %v2085_v0  ;;  %v5917_v20 = vadd.f32 %v3779_v3, %v3047_v1  ;;  %v6766_v56 = vld [vmem:[#allocation6 + $0xc] ss:$16 sps:$4 sm:$0xff]   ;;  %v6776_v3 = vld [vmem:[#allocation6 + $0x88] ss:$16 sps:$4 sm:$0xff]  }
 0x404   : > { %v5910_v18 = vadd.f32 %v2819_v8, %v2081_v58  ;;  %v5918_v19 = vadd.f32 %v3781_v11, %v3043_v59  ;;  %v2821_v22 = vpop.f32.mrb[7].mxu1  ;;  %v3783_v24 = vpop.f32.mrb[11].mxu0  ;;  %3841 = vmatprep.subr.bf16.mxu1 %v6736_v61  ;;  %v6764_v58 = vld [vmem:[#allocation6 + $0x8] ss:$16 sps:$4 sm:$0xff]   ;;  %v6769_v59 = vld [vmem:[#allocation6 + $0x2c] ss:$16 sps:$4 sm:$0xff]  }
 0x405   : > { %v5911_v40 = vadd.f32 %v2821_v22, %v2085_v0  ;;  %v5919_v26 = vadd.f32 %v3783_v24, %v3047_v1  ;;  %v6767_v61 = vld [vmem:[#allocation6 + $0x28] ss:$16 sps:$4 sm:$0xff]   ;;  %v6775_v0 = vld [vmem:[#allocation6 + $0x6c] ss:$16 sps:$4 sm:$0xff]  }
 0x406   : > { %v4834_v27 = vpack.c.bf16 %v5910_v18, %v5908_v15  ;;  %v4838_v28 = vpack.c.bf16 %v5918_v19, %v5916_v16  ;;  %v6773_v1 = vld [vmem:[#allocation6 + $0x68] ss:$16 sps:$4 sm:$0xff]   ;;  %v6778_v2 = vld [vmem:[#allocation6 + $0x8c] ss:$16 sps:$4 sm:$0xff]  }
 0x407   : > { %v4835_v4 = vpack.c.bf16 %v5911_v40, %v5909_v46  ;;  %v4839_v5 = vpack.c.bf16 %v5919_v26, %v5917_v20  ;;  %3842 = vmatpush1.bf16.msra.mxu1 %v6734_v14  ;;  %v6781_v8 = vld [vmem:[#allocation6 + $0xac] ss:$16 sps:$4 sm:$0xff]   ;;  %v6779_v11 = vld [vmem:[#allocation6 + $0xa8] ss:$16 sps:$4 sm:$0xff]  }
 0x408   : > { %3843 = vmatprep.subr.bf16.mxu1 %v6739_v25  ;;  %v6784_v14 = vld [vmem:[#allocation6 + $0xcc] ss:$16 sps:$4 sm:$0xff]   ;;  %v6785_v16 = vld [vmem:[#allocation6 + $0xe8] ss:$16 sps:$4 sm:$0xff]  }
 0x409   : > { %4842 = vmatprep.subr.bf16.mxu0 %v4839_v5  ;;  %4874 = vmatprep.mubr.bf16.mxu0 %v4835_v4  ;;  %v6787_v15 = vld [vmem:[#allocation6 + $0xec] ss:$16 sps:$4 sm:$0xff]   ;;  %v6788_v19 = vld [vmem:[#allocation6 + $0x108] ss:$16 sps:$4 sm:$0xff]  }
 0x40a   : > { %4843 = vmatpush1.bf16.xpose.msra.mxu0 %v4838_v28  ;;  %v6790_v18 = vld [vmem:[#allocation6 + $0x10c] ss:$16 sps:$4 sm:$0xff]   ;;  %v6791_v24 = vld [vmem:[#allocation6 + $0x128] ss:$16 sps:$4 sm:$0xff]  }
 0x40b   : > { %3844 = vmatpush1.bf16.msra.mxu1 %v6737_v29  ;;  %v6793_v22 = vld [vmem:[#allocation6 + $0x12c] ss:$16 sps:$4 sm:$0xff]   ;;  %v6794_v46 = vld [vmem:[#allocation6 + $0x148] ss:$16 sps:$4 sm:$0xff]  }
 0x40c   : > { %3845 = vmatprep.subr.bf16.mxu1 %v6742_v6  ;;  %v6796_v25 = vld [vmem:[#allocation6 + $0x14c] ss:$16 sps:$4 sm:$0xff]   ;;  %v6797_v40 = vld [vmem:[#allocation6 + $0x168] ss:$16 sps:$4 sm:$0xff]  }
 0x40d   : > { %v6799_v20 = vld [vmem:[#allocation6 + $0x16c] ss:$16 sps:$4 sm:$0xff]   ;;  %v6803_v4 = vld [vmem:[#allocation6 + $0x1a8] ss:$16 sps:$4 sm:$0xff]  }
 0x40e   : > { %v6802_v26 = vld [vmem:[#allocation6 + $0x18c] ss:$16 sps:$4 sm:$0xff]   ;;  %v6806_v29 = vld [vmem:[#allocation6 + $0x1c8] ss:$16 sps:$4 sm:$0xff]  }
 0x40f   : > { %3846 = vmatpush1.bf16.msra.mxu1 %v6740_v30  ;;  %v6805_v28 = vld [vmem:[#allocation6 + $0x1ac] ss:$16 sps:$4 sm:$0xff]   ;;  %v6809_v30 = vld [vmem:[#allocation6 + $0x1e8] ss:$16 sps:$4 sm:$0xff]  }
 0x410   : > { %3847 = vmatprep.subr.bf16.mxu1 %v6745_v7  ;;  %v6808_v5 = vld [vmem:[#allocation6 + $0x1cc] ss:$16 sps:$4 sm:$0xff]  }
 0x411   : > { %4875 = vmatmul.mubr.bf16.vlgmr.msra.gmra.mrb[16].mxu0 %v4834_v27  ;;  %v6800_v27 = vld [vmem:[#allocation6 + $0x188] ss:$16 sps:$4 sm:$0xff]   ;;  %v6811_v6 = vld [vmem:[#allocation6 + $0x1ec] ss:$16 sps:$4 sm:$0xff]  }
 0x412   : > { %v6814_v7 = vld [vmem:[#allocation6 + $0x20c] ss:$16 sps:$4 sm:$0xff]  }
 0x413   : > { %3848 = vmatpush1.bf16.msra.mxu1 %v6743_v31  ;;  %v6812_v31 = vld [vmem:[#allocation6 + $0x208] ss:$16 sps:$4 sm:$0xff]  }
 0x414   : > { %3849 = vmatprep.subr.bf16.mxu1 %v6748_v32  ;;  %v6817_v32 = vld [vmem:[#allocation6 + $0x22c] ss:$16 sps:$4 sm:$0xff]  }
 0x417   : > { %3850 = vmatpush1.bf16.msra.mxu1 %v6746_v33  ;;  %v6815_v33 = vld [vmem:[#allocation6 + $0x228] ss:$16 sps:$4 sm:$0xff]  }
 0x418   : > { %3851 = vmatprep.subr.bf16.mxu1 %v6751_v34  ;;  %v6820_v34 = vld [vmem:[#allocation6 + $0x24c] ss:$16 sps:$4 sm:$0xff]  }
 0x41b   : > { %3852 = vmatpush1.bf16.msra.mxu1 %v6749_v35  ;;  %v6818_v35 = vld [vmem:[#allocation6 + $0x248] ss:$16 sps:$4 sm:$0xff]  }
 0x41c   : > { %3853 = vmatprep.subr.bf16.mxu1 %v6754_v36  ;;  %v6823_v36 = vld [vmem:[#allocation6 + $0x26c] ss:$16 sps:$4 sm:$0xff]  }
 0x41f   : > { %3854 = vmatpush1.bf16.msra.mxu1 %v6752_v37  ;;  %v6821_v37 = vld [vmem:[#allocation6 + $0x268] ss:$16 sps:$4 sm:$0xff]  }
 0x420   : > { %3855 = vmatprep.subr.bf16.mxu1 %v6757_v38  ;;  %v6826_v38 = vld [vmem:[#allocation6 + $0x28c] ss:$16 sps:$4 sm:$0xff]  }
 0x423   : > { %3856 = vmatpush1.bf16.msra.mxu1 %v6755_v39  ;;  %v6824_v39 = vld [vmem:[#allocation6 + $0x288] ss:$16 sps:$4 sm:$0xff]  }
 0x424   : > { %3857 = vmatprep.subr.bf16.mxu1 %v6760_v41  ;;  %v7886_v41 = vsub.s32 2, %v7770_v10 }
 0x427   : > { %3858 = vmatpush1.bf16.msra.mxu1 %v6758_v42  ;;  %v7894_v42 = vld [vmem:[%s7974_s12] sm:$0xf] }
 0x428   : > { %3859 = vmatprep.subr.bf16.mxu1 %v6763_v43  ;;  %v6827_v43 = vld [vmem:[#allocation6 + $0x2a8] ss:$16 sps:$4 sm:$0xff]  }
 0x42b   : > { %3860 = vmatpush1.bf16.msra.mxu1 %v6761_v44  ;;  %v2089_v44 = vrot.slane %v7866_v45, %v7886_v41 }
 0x42c   : > { %4748 = vmatprep.subr.bf16.mxu1 %v6766_v56  ;;  %v6832_v56 = vld [vmem:[#allocation6 + $0x2cc] ss:$16 sps:$4 sm:$0xff]  }
 0x42e   : > { %3862 = vmatmul.mubr.bf16.vlgmr.msra.gmra.mrb[12].mxu1 %v7848_v23 }
 0x42f   : > { %4749 = vmatpush1.bf16.msra.mxu1 %v6764_v58  ;;  %4780 = vmatprep.mubr.bf16.mxu1 %v7823_v53  ;;  %v6782_v53 = vld [vmem:[#allocation6 + $0xc8] ss:$16 sps:$4 sm:$0xff]  }
 0x430   : > { %4750 = vmatprep.subr.bf16.mxu1 %v6769_v59  ;;  %v4005_v59 = vrot.slane %v7894_v42, %v7776_v12 }
 0x433   : > { %4751 = vmatpush1.bf16.msra.mxu1 %v6767_v61 }
 0x434   : > { %4752 = vmatprep.subr.bf16.mxu1 %v6772_v62 }
 0x437   : > { %4753 = vmatpush1.bf16.msra.mxu1 %v6770_v63 }
 0x438   : > { %4754 = vmatprep.subr.bf16.mxu1 %v6775_v0  ;;  %v4009_v0 = vrot.slane %v7894_v42, %v7779_v13 }
 0x43b   : > { %4755 = vmatpush1.bf16.msra.mxu1 %v6773_v1 }
 0x43c   : > { %4756 = vmatprep.subr.bf16.mxu1 %v6778_v2 }
 0x43f   : > { %4757 = vmatpush1.bf16.msra.mxu1 %v6776_v3  ;;  %v6830_v3 = vld [vmem:[#allocation6 + $0x2c8] ss:$16 sps:$4 sm:$0xff]  }
 0x440   : > { %4758 = vmatprep.subr.bf16.mxu1 %v6781_v8 }
 0x443   : > { %4759 = vmatpush1.bf16.msra.mxu1 %v6779_v11 }
 0x444   : > { %4760 = vmatprep.subr.bf16.mxu1 %v6784_v14 }
 0x447   : > { %4761 = vmatpush1.bf16.msra.mxu1 %v6782_v53 }
 0x448   : > { %4762 = vmatprep.subr.bf16.mxu1 %v6787_v15  ;;  %v6835_v15 = vld [vmem:[#allocation6 + $0x2ec] ss:$16 sps:$4 sm:$0xff]  }
 0x44b   : > { %4763 = vmatpush1.bf16.msra.mxu1 %v6785_v16 }
 0x44c   : > { %4764 = vmatprep.subr.bf16.mxu1 %v6790_v18 }
 0x44f   : > { %4765 = vmatpush1.bf16.msra.mxu1 %v6788_v19 }
 0x450   : > { %4766 = vmatprep.subr.bf16.mxu1 %v6793_v22 }
 0x453   : > { %4767 = vmatpush1.bf16.msra.mxu1 %v6791_v24 }
 0x454   : > { %4768 = vmatprep.subr.bf16.mxu1 %v6796_v25 }
 0x457   : > { %4769 = vmatpush1.bf16.msra.mxu1 %v6794_v46 }
 0x458   : > { %4770 = vmatprep.subr.bf16.mxu1 %v6799_v20 }
 0x45b   : > { %4771 = vmatpush1.bf16.msra.mxu1 %v6797_v40 }
 0x45c   : > { %4772 = vmatprep.subr.bf16.mxu1 %v6802_v26  ;;  %v6833_v26 = vld [vmem:[#allocation6 + $0x2e8] ss:$16 sps:$4 sm:$0xff]  }
 0x45f   : > { %4773 = vmatpush1.bf16.msra.mxu1 %v6800_v27 }
 0x460   : > { %4774 = vmatprep.subr.bf16.mxu1 %v6805_v28  ;;  %v6838_v28 = vld [vmem:[#allocation6 + $0x30c] ss:$16 sps:$4 sm:$0xff]  }
 0x463   : > { %4775 = vmatpush1.bf16.msra.mxu1 %v6803_v4  ;;  %v6836_v4 = vld [vmem:[#allocation6 + $0x308] ss:$16 sps:$4 sm:$0xff]  }
 0x464   : > { %4776 = vmatprep.subr.bf16.mxu1 %v6808_v5  ;;  %v6841_v5 = vld [vmem:[#allocation6 + $0x32c] ss:$16 sps:$4 sm:$0xff]  }
 0x467   : > { %4777 = vmatpush1.bf16.msra.mxu1 %v6806_v29  ;;  %v6839_v29 = vld [vmem:[#allocation6 + $0x328] ss:$16 sps:$4 sm:$0xff]  }
 0x468   : > { %4778 = vmatprep.subr.bf16.mxu1 %v6811_v6  ;;  %v6844_v6 = vld [vmem:[#allocation6 + $0x34c] ss:$16 sps:$4 sm:$0xff]  }
 0x46b   : > { %4779 = vmatpush1.bf16.msra.mxu1 %v6809_v30  ;;  %v6842_v30 = vld [vmem:[#allocation6 + $0x348] ss:$16 sps:$4 sm:$0xff]  }
 0x46c   : > { %4791 = vmatprep.subr.bf16.mxu1 %v6814_v7  ;;  %v6847_v7 = vld [vmem:[#allocation6 + $0x36c] ss:$16 sps:$4 sm:$0xff]  }
 0x46e   : > { %4781 = vmatmul.mubr.bf16.vlgmr.msra.gmra.mrb[16].mxu1 %v7819_v52  ;;  %v6829_v52 = vld [vmem:[#allocation6 + $0x2ac] ss:$16 sps:$4 sm:$0xff]  }
 0x46f   : > { %4792 = vmatpush1.bf16.msra.mxu1 %v6812_v31  ;;  %4823 = vmatprep.mubr.bf16.mxu1 %v7832_v60  ;;  %v7889_v60 = vsub.s32 3, %v7770_v10  ;;  %v6845_v31 = vld [vmem:[#allocation6 + $0x368] ss:$16 sps:$4 sm:$0xff]  }
 0x470   : > { %4793 = vmatprep.subr.bf16.mxu1 %v6817_v32  ;;  %v6850_v32 = vld [vmem:[#allocation6 + $0x38c] ss:$16 sps:$4 sm:$0xff]  }
 0x471   : > { %v2093_v61 = vrot.slane %v7866_v45, %v7889_v60 }
 0x473   : > { %4794 = vmatpush1.bf16.msra.mxu1 %v6815_v33  ;;  %v6848_v33 = vld [vmem:[#allocation6 + $0x388] ss:$16 sps:$4 sm:$0xff]  }
 0x474   : > { %4795 = vmatprep.subr.bf16.mxu1 %v6820_v34  ;;  %v6853_v34 = vld [vmem:[#allocation6 + $0x3ac] ss:$16 sps:$4 sm:$0xff]  }
 0x477   : > { %4796 = vmatpush1.bf16.msra.mxu1 %v6818_v35  ;;  %v6851_v35 = vld [vmem:[#allocation6 + $0x3a8] ss:$16 sps:$4 sm:$0xff]  }
 0x478   : > { %4797 = vmatprep.subr.bf16.mxu1 %v6823_v36  ;;  %v6856_v36 = vld [vmem:[#allocation6 + $0x3cc] ss:$16 sps:$4 sm:$0xff]  }
 0x47b   : > { %4798 = vmatpush1.bf16.msra.mxu1 %v6821_v37  ;;  %v6854_v37 = vld [vmem:[#allocation6 + $0x3c8] ss:$16 sps:$4 sm:$0xff]  }
 0x47c   : > { %4799 = vmatprep.subr.bf16.mxu1 %v6826_v38  ;;  %v6859_v38 = vld [vmem:[#allocation6 + $0x3ec] ss:$16 sps:$4 sm:$0xff]  }
 0x47f   : > { %4800 = vmatpush1.bf16.msra.mxu1 %v6824_v39  ;;  %v6857_v39 = vld [vmem:[#allocation6 + $0x3e8] ss:$16 sps:$4 sm:$0xff]  }
 0x480   : > { %4801 = vmatprep.subr.bf16.mxu1 %v6829_v52  ;;  %v3051_v52 = vrot.slane %v7871_v55, %v7886_v41 }
 0x481   : > { %v2901_v58 = vpop.f32.mrb[8].mxu1 }
 0x482   : > { %v4739_v62 = vpop.f32.mrb[12].mxu0  ;;  %v2903_v63 = vpop.f32.mrb[9].mxu1  ;;  %v7904_v8 = vadd.f32 %v2901_v58, %v2089_v44 }
 0x483   : > { %v4741_v1 = vpop.f32.mrb[13].mxu0  ;;  %v2905_v2 = vpop.f32.mrb[10].mxu1  ;;  %4802 = vmatpush1.bf16.msra.mxu1 %v6827_v43  ;;  %v7908_v16 = vadd.f32 %v4739_v62, %v4005_v59  ;;  %v5913_v45 = vadd.f32 %v2903_v63, %v2093_v61 }
 0x484   : > { %v7906_v11 = vadd.f32 %v2905_v2, %v2089_v44  ;;  %v4743_v14 = vpop.f32.mrb[14].mxu0  ;;  %v2907_v53 = vpop.f32.mrb[11].mxu1  ;;  %4803 = vmatprep.subr.bf16.mxu1 %v6832_v56  ;;  %v5925_v24 = vadd.f32 %v4741_v1, %v4009_v0  ;;  %v3055_v44 = vrot.slane %v7871_v55, %v7889_v60 }
 0x485   : > { %v7910_v18 = vadd.f32 %v4743_v14, %v4005_v59  ;;  %v5915_v19 = vadd.f32 %v2907_v53, %v2093_v61  ;;  %v4745_v22 = vpop.f32.mrb[15].mxu0 }
 0x486   : > { %v4836_v25 = vpack.c.bf16 %v7906_v11, %v7904_v8  ;;  %v5927_v46 = vadd.f32 %v4745_v22, %v4009_v0 }
 0x487   : > { %v4950_v20 = vpack.c.bf16 %v7910_v18, %v7908_v16  ;;  %v4837_v40 = vpack.c.bf16 %v5915_v19, %v5913_v45  ;;  %4804 = vmatpush1.bf16.msra.mxu1 %v6830_v3  ;;  %v4017_v3 = vrot.slane %v7894_v42, %v7889_v60 }
 0x488   : > { %v4951_v27 = vpack.c.bf16 %v5927_v46, %v5925_v24  ;;  %4805 = vmatprep.subr.bf16.mxu1 %v6835_v15 }
 0x489   : > { %4915 = vmatprep.mubr.bf16.mxu0 %v4837_v40 }
 0x48b   : > { %4806 = vmatpush1.bf16.msra.mxu1 %v6833_v26 }
 0x48c   : > { %4807 = vmatprep.subr.bf16.mxu1 %v6838_v28 }
 0x48f   : > { %4808 = vmatpush1.bf16.msra.mxu1 %v6836_v4 }
 0x490   : > { %4809 = vmatprep.subr.bf16.mxu1 %v6841_v5 }
 0x493   : > { %4810 = vmatpush1.bf16.msra.mxu1 %v6839_v29 }
 0x494   : > { %4811 = vmatprep.subr.bf16.mxu1 %v6844_v6 }
 0x497   : > { %4812 = vmatpush1.bf16.msra.mxu1 %v6842_v30 }
 0x498   : > { %4813 = vmatprep.subr.bf16.mxu1 %v6847_v7 }
 0x49b   : > { %4814 = vmatpush1.bf16.msra.mxu1 %v6845_v31 }
 0x49c   : > { %4815 = vmatprep.subr.bf16.mxu1 %v6850_v32 }
 0x49f   : > { %4816 = vmatpush1.bf16.msra.mxu1 %v6848_v33 }
 0x4a0   : > { %4817 = vmatprep.subr.bf16.mxu1 %v6853_v34 }
 0x4a3   : > { %4818 = vmatpush1.bf16.msra.mxu1 %v6851_v35 }
 0x4a4   : > { %4819 = vmatprep.subr.bf16.mxu1 %v6856_v36 }
 0x4a7   : > { %4820 = vmatpush1.bf16.msra.mxu1 %v6854_v37 }
 0x4a8   : > { %4821 = vmatprep.subr.bf16.mxu1 %v6859_v38 }
 0x4ab   : > { %4822 = vmatpush1.bf16.msra.mxu1 %v6857_v39 }
 0x4ae   : > { %4824 = vmatmul.mubr.bf16.vlgmr.msra.gmra.mrb[16].mxu1 %v7848_v23  ;;  %v4013_v23 = vrot.slane %v7894_v42, %v7886_v41 }
 0x501   : > { %v3863_v43 = vpop.f32.mrb[12].mxu1 }
 0x502   : > { %v3865_v56 = vpop.f32.mrb[13].mxu1  ;;  %v5920_v59 = vadd.f32 %v3863_v43, %v3051_v52 }
 0x503   : > { %v3867_v58 = vpop.f32.mrb[14].mxu1  ;;  %v5921_v63 = vadd.f32 %v3865_v56, %v3055_v44 }
 0x504   : > { %v5922_v61 = vadd.f32 %v3867_v58, %v3051_v52  ;;  %v3869_v62 = vpop.f32.mrb[15].mxu1 }
 0x505   : > { %v5923_v0 = vadd.f32 %v3869_v62, %v3055_v44 }
 0x506   : > { %v4840_v1 = vpack.c.bf16 %v5922_v61, %v5920_v59 }
 0x507   : > { %v4841_v2 = vpack.c.bf16 %v5923_v0, %v5921_v63 }
 0x509   : > { %4883 = vmatprep.subr.bf16.mxu0 %v4841_v2 }
 0x50a   : > { %4884 = vmatpush1.bf16.xpose.msra.mxu0 %v4840_v1 }
 0x50b   : > { %4957 = vmatprep.subr.bf16.mxu0 %v4951_v27 }
 0x511   : > { %4916 = vmatmul.mubr.bf16.vlgmr.msra.gmra.mrb[16].mxu0 %v4836_v25 }
 0x512   : > { %4958 = vmatpush1.bf16.msra.mxu0 %v4950_v20  ;;  %4989 = vmatprep.mubr.bf16.mxu0 %v6993_v54 }
 0x581   : > { %v4825_v55 = vpop.f32.mrb[16].mxu1 }
 0x582   : > { %v4827_v8 = vpop.f32.mrb[17].mxu1  ;;  %v5928_v14 = vadd.f32 %v4825_v55, %v4013_v23 }
 0x583   : > { %v4829_v11 = vpop.f32.mrb[18].mxu1  ;;  %v5929_v16 = vadd.f32 %v4827_v8, %v4017_v3 }
 0x584   : > { %v5930_v53 = vadd.f32 %v4829_v11, %v4013_v23  ;;  %v4831_v15 = vpop.f32.mrb[19].mxu1 }
 0x585   : > { %v5931_v45 = vadd.f32 %v4831_v15, %v4017_v3 }
 0x586   : > { %v4952_v18 = vpack.c.bf16 %v5930_v53, %v5928_v14 }
 0x587   : > { %v4953_v19 = vpack.c.bf16 %v5931_v45, %v5929_v16 }
 0x589   : > { %5000 = vmatprep.subr.bf16.mxu0 %v4953_v19 }
 0x5e4   : > { %v4917_v22 = vpop.f32.mrb[16].mxu0 }
 0x5e5   : > { %v4924_v24 = vmul.f32 0.044194173, %v4917_v22  ;;  %v4919_v25 = vpop.f32.mrb[17].mxu0 }
 0x5e6   : > { %v4920_v46 = vpop.f32.mrb[18].mxu0 }
 0x5e7   : > { %v4925_v20 = vmul.f32 0.044194173, %v4920_v46  ;;  %v4922_v40 = vpop.f32.mrb[19].mxu0  ;;  %v4927_v26 = vsel %vm4926_vm0, %v4924_v24, -inf }
 0x5e8   : > { %4928 = vmax.xlane.f32.xlu1 %v4927_v26 }
 0x5e9   : > { %v4930_v42 = vsel %vm4926_vm0, %v4925_v20, -inf }
 0x5ec   : > { %4931 = vmax.xlane.f32.xlu1 %v4930_v42 }
 0x675   : > { %v4929_v27 = vpop.xlane.xlu1 %4928 }
 0x676   : > { %v4933_v28 = vsub.f32 %v4924_v24, %v4929_v27 }
 0x678   : > { %v4935_v4 = vmul.f32 1.442695, %v4933_v28 }
 0x679   : > { %v4932_v5 = vpop.xlane.xlu1 %4931 }
 0x67a   : > { %6860 = vpow2.f32 %v4935_v4  ;;  %v4934_v29 = vsub.f32 %v4925_v20, %v4932_v5 }
 0x67c   : > { %v4937_v6 = vmul.f32 1.442695, %v4934_v29 }
 0x67e   : > { %6862 = vpow2.f32 %v4937_v6 }
 0x684   : > { %v6861_v30 = vpop.eup %6860 }
 0x685   : > { %v4939_v7 = vsel %vm4926_vm0, %v6861_v30, 0.0 }
 0x686   : > { %4940 = vadd.xlane.f32.xlu0 %v4939_v7 }
 0x688   : > { %v6863_v31 = vpop.eup %6862 }
 0x689   : > { %v4942_v32 = vsel %vm4926_vm0, %v6863_v31, 0.0 }
 0x68a   : > { %4943 = vadd.xlane.f32.xlu1 %v4942_v32 }
 0x713   : > { %v4941_v33 = vpop.xlane.xlu0 %4940 }
 0x714   : > { %6864 = vrcp.f32 %v4941_v33 }
 0x717   : > { %v4944_v34 = vpop.xlane.xlu1 %4943 }
 0x718   : > { %6866 = vrcp.f32 %v4944_v34 }
 0x71e   : > { %v6865_v35 = vpop.eup %6864 }
 0x71f   : > { %v4947_v37 = vmul.f32 %v6865_v35, %v6861_v30 }
 0x722   : > { %v6867_v36 = vpop.eup %6866 }
 0x723   : > { %v4948_v38 = vmul.f32 %v6867_v36, %v6863_v31 }
 0x725   : > { %v4949_v39 = vpack.c.bf16 %v4948_v38, %v4947_v37 }
 0x727   : > { %5887 = vmatmul.mubr.msk.bf16.vlgmr.msra.gmra.mrb[20].mxu0 %vm4926_vm0, %v4949_v39 }
 0x728   : > { %5001 = vmatpush1.bf16.msra.mxu0 %v4952_v18  ;;  %5032 = vmatprep.mubr.bf16.mxu0 %v6993_v54 }
 0x72f   : > { %5888 = vmatmul.mubr.msk.bf16.vlgmr.msra.gmra.mrb[24].mxu0 %vm4926_vm0, %v4949_v39 }
 0x7fa   : > { %v4991_v52 = vpop.f32.mrb[20].mxu0 }
 0x7fb   : > { %v4993_v43 = vpop.f32.mrb[21].mxu0  ;;  %v5043_v56 = vadd.f32 %v4991_v52, %v7803_v47 }
 0x7fc   : > { %v4995_v44 = vpop.f32.mrb[22].mxu0  ;;  %v5044_v61 = vadd.f32 %v4993_v43, %v7806_v48 }
 0x7fd   : > { %v5047_v58 = vadd.f32 %v4995_v44, %v7809_v49  ;;  %v4997_v59 = vpop.f32.mrb[23].mxu0 }
 0x7fe   : > { %v5048_v62 = vadd.f32 %v4997_v59, %v7812_v50 }
 0x7ff   : > { %v5051_v63 = vadd.f32 %v5047_v58, %v5043_v56  ;;  %v6994_v56 = vmov 1966171168  }
 0x800   : > { %v5058_v0 = vadd.f32 %v5048_v62, %v5044_v61  ;;  %v5116_v58 = vunpack.c.l.s4 %v6994_v56 }
 0x801   : > { %v5052_v1 = vrot.slane %v5051_v63, 4 }
 0x802   : > { %v5059_v2 = vrot.slane %v5058_v0, 4  ;;  %v5034_v23 = vpop.f32.mrb[24].mxu0  ;;  %v5117_v62 = vunpack.c.0.s8 %v5116_v58 }
 0x803   : > { %v5053_v54 = vadd.f32 %v5052_v1, %v5051_v63  ;;  %v5036_v55 = vpop.f32.mrb[25].mxu0  ;;  %v5045_v14 = vadd.f32 %v5034_v23, %v7844_v21 }
 0x804   : > { %v5060_v3 = vadd.f32 %v5059_v2, %v5058_v0  ;;  %v5038_v8 = vpop.f32.mrb[26].mxu0  ;;  %v5046_v48 = vadd.f32 %v5036_v55, %v7826_v57  ;;  %v5120_v0 = vsub.s32 %v5117_v62, %v7770_v10 }
 0x805   : > { %v5054_v11 = vrot.slane %v5053_v54, 2  ;;  %v5049_v47 = vadd.f32 %v5038_v8, %v7840_v17  ;;  %v5040_v49 = vpop.f32.mrb[27].mxu0 }
 0x806   : > { %v5061_v53 = vrot.slane %v5060_v3, 2  ;;  %v5050_v50 = vadd.f32 %v5040_v49, %v7815_v51 }
 0x807   : > { %v5055_v15 = vadd.f32 %v5054_v11, %v5053_v54  ;;  %v5065_v16 = vadd.f32 %v5049_v47, %v5045_v14 }
 0x808   : > { %v5062_v45 = vadd.f32 %v5061_v53, %v5060_v3  ;;  %v5072_v18 = vadd.f32 %v5050_v50, %v5046_v48  ;;  %v5084_v3 = vld [vmem:[%s515_s17] sm:$0xf] }
 0x809   : > { %v5056_v19 = vrot.slane %v5055_v15, 1  ;;  %v5066_v22 = vrot.slane %v5065_v16, 4 }
 0x80a   : > { %v5063_v24 = vrot.slane %v5062_v45, 1  ;;  %v5073_v25 = vrot.slane %v5072_v18, 4 }
 0x80b   : > { %v5057_v46 = vadd.f32 %v5056_v19, %v5055_v15  ;;  %v5067_v20 = vadd.f32 %v5066_v22, %v5065_v16 }
 0x80c   : > { %v5064_v40 = vadd.f32 %v5063_v24, %v5062_v45  ;;  %v5074_v21 = vadd.f32 %v5073_v25, %v5072_v18 }
 0x80d   : > { %v5889_v26 = vmul.f32 -0.0625, %v5057_v46  ;;  %v5068_v17 = vrot.slane %v5067_v20, 2 }
 0x80e   : > { %v5890_v42 = vmul.f32 -0.0625, %v5064_v40  ;;  %v5075_v27 = vrot.slane %v5074_v21, 2 }
 0x80f   : > { %v5089_v28 = vmul.f32 1.442695, %v5889_v26  ;;  %v5069_v57 = vadd.f32 %v5068_v17, %v5067_v20 }
 0x810   : > { %v5091_v4 = vmul.f32 1.442695, %v5890_v42  ;;  %v5076_v51 = vadd.f32 %v5075_v27, %v5074_v21 }
 0x811   : > { %6868 = vpow2.f32 %v5089_v28  ;;  %v5070_v5 = vrot.slane %v5069_v57, 1 }
 0x812   : > { %6870 = vpow2.f32 %v5091_v4  ;;  %v5077_v29 = vrot.slane %v5076_v51, 1 }
 0x813   : > { %v5071_v6 = vadd.f32 %v5070_v5, %v5069_v57 }
 0x814   : > { %v5078_v30 = vadd.f32 %v5077_v29, %v5076_v51 }
 0x815   : > { %v5891_v7 = vmul.f32 -0.0625, %v5071_v6 }
 0x816   : > { %v5892_v31 = vmul.f32 -0.0625, %v5078_v30 }
 0x817   : > { %v5093_v32 = vmul.f32 1.442695, %v5891_v7 }
 0x818   : > { %v5095_v33 = vmul.f32 1.442695, %v5892_v31 }
 0x819   : > { %6872 = vpow2.f32 %v5093_v32 }
 0x81a   : > { %6874 = vpow2.f32 %v5095_v33 }
 0x81b   : > { %v6869_v34 = vpop.eup %6868 }
 0x81c   : > { %v6871_v35 = vpop.eup %6870  ;;  %v5097_v36 = vadd.f32 1.0, %v6869_v34 }
 0x81d   : > { %v5098_v37 = vadd.f32 1.0, %v6871_v35 }
 0x81e   : > { %6876 = vrcp.f32 %v5097_v36 }
 0x81f   : > { %6878 = vrcp.f32 %v5098_v37 }
 0x823   : > { %v6873_v38 = vpop.eup %6872 }
 0x824   : > { %v6875_v39 = vpop.eup %6874  ;;  %v5099_v52 = vadd.f32 1.0, %v6873_v38 }
 0x825   : > { %v5100_v43 = vadd.f32 1.0, %v6875_v39 }
 0x826   : > { %6880 = vrcp.f32 %v5099_v52 }
 0x827   : > { %6882 = vrcp.f32 %v5100_v43 }
 0x828   : > { %v6877_v44 = vpop.eup %6876 }
 0x829   : > { %v6879_v59 = vpop.eup %6878 }
 0x82a   : > { %v5113_v61 = vcombine.low %v6877_v44, %v6879_v59 }
 0x82c   : > { %v5121_v23 = vrot.slane %v5113_v61, %v5120_v0 }
 0x830   : > { %v6881_v63 = vpop.eup %6880 }
 0x831   : > { %v6883_v1 = vpop.eup %6882 }
 0x832   : > { %v5114_v2 = vcombine.low %v6881_v63, %v6883_v1 }
 0x834   : > { %v5128_v54 = vrot.slane %v5114_v2, %v5120_v0 }
 0x836   : > { %v5129_v55 = vcombine.low %v5121_v23, %v5128_v54 }
 0x838   : > { %v5136_v8 = vrot.slane %v5129_v55, %v5120_v0 }
 0x83a   : > { %v5138_v11 = vmul.f32 %v5136_v8, %v5084_v3 }
 0x83c   : > { %v5139_v14 = vmul.f32 %v5138_v11, %v5138_v11 }
 0x83e   : > { %v5144_v47 = vrot.slane %v5139_v14, %v7776_v12  ;;  %v5148_v10 = vrot.slane %v5139_v14, %v7779_v13  ;;  %v5152_v49 = vrot.slane %v5139_v14, %v7886_v41  ;;  %v5156_v53 = vrot.slane %v5139_v14, %v7889_v60 }
 0x840   : > { %v5162_v48 = vsel %vm5161_vm1, %v5144_v47, 0.0  ;;  %v5163_v50 = vsel %vm5161_vm1, %v5148_v10, 0.0  ;;  %v5165_v16 = vsel %vm5161_vm1, %v5152_v49, 0.0  ;;  %v5167_v18 = vsel %vm5161_vm1, %v5156_v53, 0.0 }
 0x841   : > { %v5164_v15 = vadd.f32 %v5163_v50, %v5162_v48 }
 0x843   : > { %v5166_v45 = vadd.f32 %v5165_v16, %v5164_v15 }
 0x845   : > { %v5168_v19 = vadd.f32 %v5167_v18, %v5166_v45 }
 0x847   : > { %5169 = vadd.xlane.f32.xlu0 %v5168_v19 }
 0x8d4   : > { %v5170_v22 = vpop.xlane.xlu0 %5169 }
 0x8d5   : > { %6884 = vrsqrt.f32 %v5170_v22  ;;  %vm5173_vm2 = vcmp.eq.f32.partialorder %v5170_v22, inf  ;;  %v5176_v46 = vand.u32 2147483648, %v5170_v22  ;;  %vm5175_vm3 = vcmp.eq.f32.partialorder %v5170_v22, 0.0 }
 0x8df   : > { %v6885_v24 = vpop.eup %6884 }
 0x8e0   : > { %v5172_v25 = vmul.f32 %v6885_v24, %v5170_v22 }
 0x8e2   : > { %v5174_v13 = vsel %vm5173_vm2, %v5170_v22, %v5172_v25 }
 0x8e3   : > { %v5177_v41 = vsel %vm5175_vm3, %v5176_v46, %v5174_v13 }
 0x8e4   : > { %v5178_v20 = vadd.f32 1e-08, %v5177_v41 }
 0x8e6   : > { %6886 = vrcp.f32 %v5178_v20 }
 0x8f0   : > { %v6887_v60 = vpop.eup %6886 }
 0x8f1   : > { %v5184_v40 = vrot.slane %v6887_v60, %v7776_v12 }
 0x8f3   : > { %v5186_v21 = vmul.f32 %v5184_v40, %v5138_v11 }
 0x8f5   : > { %5191 = vst.msk [vmem:[%s519_s18] sm:$0xf] %vm5189_vm4, %v5186_v21 }
 0x8f6 PF: > { %s7990_s21 = sld [smem:[#allocation9_spill]] }
 0x8fc   : > { %s25_s25 = sadd.s32 1, %s7990_s21  }
 0x8fd   : > { %p22_p9 = scmp.ge.s32.totalorder %s25_s25, 4  }
 0x8ff   :  { %24 = sbr.rel (!%p22_p9) target bundleno = 4 (0x4), region = 121 }
 0x906   :  { %5211 = vsyncpa [#allocation3], 1 }
 0x907   :  { %5213 = vsyncpa [#allocation3 + $0x1], 1 }
 0x908   :  { %5214 = vsyncpa [#allocation5], 1 }

</bundles_post_ra>
